<compile_context>
chip_gen: v7x
topology: tpu7x:2x2x1
jax: 0.10.0
libtpu: 0.0.40
codegen_flags: <defaults>
</compile_context>

<pallas_src>
import functools
import math

import jax
import jax.numpy as jnp
from jax import lax
from jax.experimental import pallas as pl
from jax.experimental.pallas import tpu as pltpu


# -----------------------------------------------------------------------------
# Fused kernel: one grid step == one batch tile of B images.
# -----------------------------------------------------------------------------
def convnet_kernel(x_ref, b1w_ref, b1b_ref, b2w_ref, b2b_ref,
                   w1_ref, w1b_ref, w2_ref, w2b_ref, w3_ref, w3b_ref, o_ref):
    f32, bf16 = jnp.float32, jnp.bfloat16
    B = x_ref.shape[2]                               # batch tile (static)

    def pool_relu(a0, a1, bias):
        # relu(bias + 2x2 max-pool): the two pool-column parities live in the two
        # 128-lane-aligned halves of the conv accumulators, so every slice is
        # vreg-aligned (pure VPU max).  Bias + ReLU are hoisted out of the four
        # pool branches (relu(max_i a_i + b) == max_i relu(a_i + b)).
        m = jnp.maximum(jnp.maximum(a0[:, :128], a0[:, 128:]),
                        jnp.maximum(a1[:, :128], a1[:, 128:]))
        return jnp.maximum(m + bias, 0.0)

    # ---- conv1 (+bias+ReLU+2x2/2 maxpool) ------------------------------------
    # x_ref[j, s, b, w*3+c] = image b, input row 4s+j.  Conv output rows 4t+j
    # (t=0..6) at kernel-row tap kh need input rows 4t+(j+kh): a contiguous slice
    # of residue class (j+kh)%4, and (7, B, 96) -> (7B, 96) is a free reshape
    # (B is a multiple of 16), so every tap is ONE GEMM with M = 7*B.
    def conv1_rows(j):
        acc = None
        for kh in range(5):
            jj = j + kh
            lhs = x_ref[jj % 4, jj // 4:jj // 4 + 7, :, :].reshape(7 * B, 96)
            t = jnp.dot(lhs, b1w_ref[kh], preferred_element_type=f32)   # (7B, 256)
            acc = t if acc is None else acc + t
        return acc

    b1 = b1b_ref[...]                                                   # (1, 128)
    # pooled1[m][t*B + b, pc*6 + f] = pooled row 2t+m of image b (pad lanes = 0).
    pooled1 = [pool_relu(conv1_rows(0), conv1_rows(1), b1).astype(bf16),
               pool_relu(conv1_rows(2), conv1_rows(3), b1).astype(bf16)]

    # ---- conv2 (+bias+ReLU+2x2/2 maxpool) ------------------------------------
    def conv2_rows(q):
        acc = None
        for kh in range(5):
            jj = q + kh
            lhs = pooled1[jj % 2][(jj // 2) * B:(jj // 2 + 5) * B, :]    # (5B, 128)
            t = jnp.dot(lhs, b2w_ref[kh], preferred_element_type=f32)    # (5B, 256)
            acc = t if acc is None else acc + t
        return acc

    b2 = b2b_ref[...]
    # pooled2[s*B + b, w*16 + c] = row s of the 5x5x16 feature map of image b.
    pooled2 = pool_relu(conv2_rows(0), conv2_rows(1), b2).astype(bf16)   # (5B, 128)

    # ---- fc1 (PyTorch flatten order folded into per-row weight blocks) + ReLU -
    h = None
    for s in range(5):
        t = jnp.dot(pooled2[s * B:(s + 1) * B, :], w1_ref[s],
                    preferred_element_type=f32)                          # (B, 120)
        h = t if h is None else h + t
    h = jnp.maximum(h + w1b_ref[...], 0.0).astype(bf16)

    # ---- fc2 + ReLU, fc3 ------------------------------------------------------
    h = jnp.maximum(jnp.dot(h, w2_ref[...], preferred_element_type=f32)
                    + w2b_ref[...], 0.0).astype(bf16)
    o_ref[...] = (jnp.dot(h, w3_ref[...], preferred_element_type=f32)
                  + w3b_ref[...])


# -----------------------------------------------------------------------------
# Wrapper-side (one-time) weight preprocessing
# -----------------------------------------------------------------------------
def _banded_conv_weight(wt, w_in, pw_out, k_pad):
    """Per-tap banded conv weight with both pool-column parities along N.

    B[kh][w*C + c, p*128 + pw*F + f] = wt[f, c, kh, w - (2*pw + p)] (0 if the
    width tap is out of range).  K is zero-padded to k_pad rows and each
    parity's N block to 128 lanes, so every in-kernel lane slice is vreg-aligned
    and downstream K becomes 128.
    """
    F, C, KH, KW = wt.shape
    w_idx = jnp.arange(w_in)
    taps = []
    for kh in range(KH):
        halves = []
        for p in range(2):
            ow = 2 * jnp.arange(pw_out) + p                        # (PW,)
            kw = w_idx[:, None] - ow[None, :]                      # (W, PW)
            valid = (kw >= 0) & (kw < KW)
            g = wt[:, :, kh, :][:, :, jnp.clip(kw, 0, KW - 1)]     # (F, C, W, PW)
            g = jnp.where(valid[None, None], g, 0.0)
            g = jnp.transpose(g, (2, 1, 3, 0)).reshape(w_in * C, pw_out * F)
            halves.append(jnp.pad(g, ((0, k_pad - w_in * C),
                                      (0, 128 - pw_out * F))))     # (k_pad, 128)
        taps.append(jnp.concatenate(halves, axis=1))               # (k_pad, 256)
    return jnp.stack(taps)                                         # (KH, k_pad, 256)


def prepare_params(params, dtype=jnp.bfloat16):
    """One-time conversion of PyTorch-layout params to kernel-ready operands."""
    c1w, c1b = params["conv1"]        # (6,3,5,5), (6,)
    c2w, c2b = params["conv2"]        # (16,6,5,5), (16,)
    f1w, f1b = params["fc1"]          # (120,400), (120,)
    f2w, f2b = params["fc2"]          # (84,120), (84,)
    f3w, f3b = params["fc3"]          # (10,84), (10,)

    b1w = _banded_conv_weight(c1w, w_in=32, pw_out=14, k_pad=96)    # (5, 96, 256)
    b2w = _banded_conv_weight(c2w, w_in=14, pw_out=5, k_pad=128)    # (5, 128, 256)
    b1b = jnp.pad(jnp.tile(c1b, 14), (0, 128 - 84))[None, :]        # (1, 128)
    b2b = jnp.pad(jnp.tile(c2b, 5), (0, 128 - 80))[None, :]         # (1, 128)

    # fc1 consumes pooled2's (h-row, w*16+c lane) layout: fold PyTorch's
    # (c*25 + h*5 + w) flatten order into reordered, zero-row-padded blocks.
    w1 = f1w.reshape(120, 16, 5, 5).transpose(2, 3, 1, 0).reshape(5, 80, 120)
    w1 = jnp.pad(w1, ((0, 0), (0, 128 - 80), (0, 0)))               # (5, 128, 120)

    return {
        "b1w": b1w.astype(dtype), "b1b": b1b,
        "b2w": b2w.astype(dtype), "b2b": b2b,
        "w1": w1.astype(dtype), "w1b": f1b[None, :],
        "w2": f2w.T.astype(dtype), "w2b": f2b[None, :],
        "w3": f3w.T.astype(dtype), "w3b": f3b[None, :],
    }


# -----------------------------------------------------------------------------
# Forward pass
# -----------------------------------------------------------------------------
def _round_up(v, m):
    return (v + m - 1) // m * m


@functools.partial(jax.jit, static_argnames=("b_tile",))
def _forward(x_nchw, prepped, b_tile):
    n = x_nchw.shape[0]
    n_pad = _round_up(n, b_tile)

    # Single fused relayout + bf16 cast: NCHW -> (row%4, row//4, batch, w*3+c).
    # (In a training/serving loop this would be done once per dataset, outside
    #  the hot path; it moves only ~6 KB/image of bf16.)
    x = x_nchw.astype(jnp.bfloat16)
    if n_pad != n:
        x = jnp.pad(x, ((0, n_pad - n), (0, 0), (0, 0), (0, 0)))
    x = (x.reshape(n_pad, 3, 8, 4, 32)           # (b, c, s, j, w), row = 4s + j
          .transpose(3, 2, 0, 4, 1)              # (j, s, b, w, c)
          .reshape(4, 8, n_pad, 96))

    w_names = ("b1w", "b1b", "b2w", "b2b", "w1", "w1b", "w2", "w2b", "w3", "w3b")
    weights = [prepped[k] for k in w_names]

    def wspec(arr):                              # full block, constant index map
        nd = arr.ndim
        return pl.BlockSpec(arr.shape, lambda i, _nd=nd: (0,) * _nd)

    flops_per_img = 2 * (28 * 28 * 75 * 6 + 10 * 10 * 150 * 16
                         + 400 * 120 + 120 * 84 + 84 * 10)
    bytes_accessed = (x.size * 2
                      + sum(int(w.size) * w.dtype.itemsize for w in weights)
                      + n_pad * 10 * 4)

    out = pl.pallas_call(
        convnet_kernel,
        out_shape=jax.ShapeDtypeStruct((n_pad, 10), jnp.float32),
        grid=(n_pad // b_tile,),
        in_specs=[pl.BlockSpec((4, 8, b_tile, 96), lambda i: (0, 0, i, 0))]
                 + [wspec(w) for w in weights],
        out_specs=pl.BlockSpec((b_tile, 10), lambda i: (i, 0)),
        compiler_params=pltpu.CompilerParams(
            dimension_semantics=("parallel",),
            vmem_limit_bytes=32 * 1024 * 1024),
        cost_estimate=pl.CostEstimate(
            flops=n_pad * flops_per_img, transcendentals=0,
            bytes_accessed=int(bytes_accessed)),
    )(x, *weights)
    return out[:n]


def convnet_forward(x_nchw, prepped, b_tile=None):
    n = x_nchw.shape[0]
    if b_tile is None:
        # Cap at 256 so stacked M per GEMM is a multiple of 256 (v6e/v7x MXU)
        # and of 128 (v5e), while the per-step VMEM footprint stays ~14 MiB.
        b_tile = min(256, _round_up(max(n, 1), 16))
    return _forward(x_nchw, prepped, b_tile=b_tile)


# -----------------------------------------------------------------------------
# Deterministic PyTorch-layout init and a plain-JAX reference for self-check
# -----------------------------------------------------------------------------
def init_params(key):
    ks = jax.random.split(key, 10)

    def uni(k, shape, fan_in):
        bound = 1.0 / math.sqrt(fan_in)
        return jax.random.uniform(k, shape, jnp.float32, -bound, bound)

    return {
        "conv1": (uni(ks[0], (6, 3, 5, 5), 75), uni(ks[1], (6,), 75)),
        "conv2": (uni(ks[2], (16, 6, 5, 5), 150), uni(ks[3], (16,), 150)),
        "fc1": (uni(ks[4], (120, 400), 400), uni(ks[5], (120,), 400)),
        "fc2": (uni(ks[6], (84, 120), 120), uni(ks[7], (84,), 120)),
        "fc3": (uni(ks[8], (10, 84), 84), uni(ks[9], (10,), 84)),
    }


def reference_forward(x_nchw, params):
    c1w, c1b = params["conv1"]
    c2w, c2b = params["conv2"]
    f1w, f1b = params["fc1"]
    f2w, f2b = params["fc2"]
    f3w, f3b = params["fc3"]
    x = jnp.transpose(x_nchw, (0, 2, 3, 1))

    def conv_relu_pool(y, w, b):
        y = lax.conv_general_dilated(
            y, jnp.transpose(w, (2, 3, 1, 0)), (1, 1), "VALID",
            dimension_numbers=("NHWC", "HWIO", "NHWC")) + b
        y = jnp.maximum(y, 0.0)
        return lax.reduce_window(y, -jnp.inf, lax.max,
                                 (1, 2, 2, 1), (1, 2, 2, 1), "VALID")

    y = conv_relu_pool(x, c1w, c1b)                      # (N, 14, 14, 6)
    y = conv_relu_pool(y, c2w, c2b)                      # (N, 5, 5, 16)
    feat = jnp.transpose(y, (0, 3, 1, 2)).reshape(y.shape[0], 400)
    h = jnp.maximum(feat @ f1w.T + f1b, 0.0)
    h = jnp.maximum(h @ f2w.T + f2b, 0.0)
    return h @ f3w.T + f3b


if __name__ == "__main__":
    key = jax.random.PRNGKey(0)
    pkey, xkey = jax.random.split(key)
    params = init_params(pkey)
    prepped = prepare_params(params)

    # Small correctness check (exercises batch padding: 6 -> B_TILE=16).
    x_small = jax.random.normal(xkey, (6, 3, 32, 32), dtype=jnp.float32)
    out_small = jax.block_until_ready(convnet_forward(x_small, prepped))
    assert out_small.shape == (6, 10) and out_small.dtype == jnp.float32
    ref_small = jax.block_until_ready(reference_forward(x_small, params))
    err_s = float(jnp.max(jnp.abs(out_small - ref_small)))
    assert jnp.allclose(out_small, ref_small, atol=7e-2, rtol=7e-2), err_s

    # Throughput-shaped check: B_TILE=256, grid=(2,) (parallel steps / 2 TCs on v7x).
    x_big = jax.random.normal(jax.random.PRNGKey(1), (512, 3, 32, 32),
                              dtype=jnp.float32)
    out_big = jax.block_until_ready(convnet_forward(x_big, prepped))
    ref_big = jax.block_until_ready(reference_forward(x_big, params))
    err_b = float(jnp.max(jnp.abs(out_big - ref_big)))
    assert out_big.shape == (512, 10)
    assert jnp.allclose(out_big, ref_big, atol=7e-2, rtol=7e-2), err_b

    print("KERNEL_OK")
</pallas_src>

<mosaic_0001>
module attributes {stable_mosaic.version = 11 : i64} {
  func.func @convnet_kernel(%arg0: i32, %arg1: memref<4x8x16x96xbf16, #tpu.memory_space<vmem>>, %arg2: memref<5x96x256xbf16, #tpu.memory_space<vmem>>, %arg3: memref<1x128xf32, #tpu.memory_space<vmem>>, %arg4: memref<5x128x256xbf16, #tpu.memory_space<vmem>>, %arg5: memref<1x128xf32, #tpu.memory_space<vmem>>, %arg6: memref<5x128x120xbf16, #tpu.memory_space<vmem>>, %arg7: memref<1x120xf32, #tpu.memory_space<vmem>>, %arg8: memref<120x84xbf16, #tpu.memory_space<vmem>>, %arg9: memref<1x84xf32, #tpu.memory_space<vmem>>, %arg10: memref<84x10xbf16, #tpu.memory_space<vmem>>, %arg11: memref<1x10xf32, #tpu.memory_space<vmem>>, %arg12: memref<16x10xf32, #tpu.memory_space<vmem>>) attributes {dimension_semantics = [#tpu.dimension_semantics<parallel>], iteration_bounds = array<i64: 1>, scalar_prefetch = 0 : i64, scratch_operands = 0 : i64, tpu.core_type = #tpu.core_type<tc>, window_params = [{transform_indices = @transform_0, window_bounds = array<i64: 4, 8, 16, 96>}, {pipeline_mode = #tpu.pipeline_mode<synchronous>, transform_indices = @transform_1, window_bounds = array<i64: 5, 96, 256>}, {pipeline_mode = #tpu.pipeline_mode<synchronous>, transform_indices = @transform_2, window_bounds = array<i64: 1, 128>}, {pipeline_mode = #tpu.pipeline_mode<synchronous>, transform_indices = @transform_3, window_bounds = array<i64: 5, 128, 256>}, {pipeline_mode = #tpu.pipeline_mode<synchronous>, transform_indices = @transform_4, window_bounds = array<i64: 1, 128>}, {pipeline_mode = #tpu.pipeline_mode<synchronous>, transform_indices = @transform_5, window_bounds = array<i64: 5, 128, 120>}, {pipeline_mode = #tpu.pipeline_mode<synchronous>, transform_indices = @transform_6, window_bounds = array<i64: 1, 120>}, {pipeline_mode = #tpu.pipeline_mode<synchronous>, transform_indices = @transform_7, window_bounds = array<i64: 120, 84>}, {pipeline_mode = #tpu.pipeline_mode<synchronous>, transform_indices = @transform_8, window_bounds = array<i64: 1, 84>}, {pipeline_mode = #tpu.pipeline_mode<synchronous>, transform_indices = @transform_9, window_bounds = array<i64: 84, 10>}, {pipeline_mode = #tpu.pipeline_mode<synchronous>, transform_indices = @transform_10, window_bounds = array<i64: 1, 10>}, {transform_indices = @transform_11, window_bounds = array<i64: 16, 10>}]} {
    %c0 = arith.constant 0 : index
    %c0_0 = arith.constant 0 : index
    %0 = vector.load %arg3[%c0, %c0_0] : memref<1x128xf32, #tpu.memory_space<vmem>>, vector<1x128xf32>
    %c0_1 = arith.constant 0 : index
    %c0_2 = arith.constant 0 : index
    %c0_3 = arith.constant 0 : index
    %c0_4 = arith.constant 0 : index
    %1 = vector.load %arg1[%c0_1, %c0_2, %c0_3, %c0_4] : memref<4x8x16x96xbf16, #tpu.memory_space<vmem>>, vector<1x7x16x96xbf16>
    %2 = vector.shape_cast %1 : vector<1x7x16x96xbf16> to vector<7x16x96xbf16>
    %3 = vector.shape_cast %2 : vector<7x16x96xbf16> to vector<112x96xbf16>
    %c0_5 = arith.constant 0 : index
    %c0_6 = arith.constant 0 : index
    %c0_7 = arith.constant 0 : index
    %4 = vector.load %arg2[%c0_5, %c0_6, %c0_7] : memref<5x96x256xbf16, #tpu.memory_space<vmem>>, vector<1x96x256xbf16>
    %5 = vector.shape_cast %4 : vector<1x96x256xbf16> to vector<96x256xbf16>
    %cst = arith.constant dense<0.000000e+00> : vector<112x256xf32>
    %6 = tpu.matmul %3, %5, %cst {dimension_numbers = #tpu.dot_dimension_numbers<[1], [0], [0], [1], [0, 0, 1, 1], [], []>} : vector<112x96xbf16>, vector<96x256xbf16>, vector<112x256xf32> -> vector<112x256xf32>
    %c1 = arith.constant 1 : index
    %c0_8 = arith.constant 0 : index
    %c0_9 = arith.constant 0 : index
    %c0_10 = arith.constant 0 : index
    %7 = vector.load %arg1[%c1, %c0_8, %c0_9, %c0_10] : memref<4x8x16x96xbf16, #tpu.memory_space<vmem>>, vector<1x7x16x96xbf16>
    %8 = vector.shape_cast %7 : vector<1x7x16x96xbf16> to vector<7x16x96xbf16>
    %9 = vector.shape_cast %8 : vector<7x16x96xbf16> to vector<112x96xbf16>
    %c1_11 = arith.constant 1 : index
    %c0_12 = arith.constant 0 : index
    %c0_13 = arith.constant 0 : index
    %10 = vector.load %arg2[%c1_11, %c0_12, %c0_13] : memref<5x96x256xbf16, #tpu.memory_space<vmem>>, vector<1x96x256xbf16>
    %11 = vector.shape_cast %10 : vector<1x96x256xbf16> to vector<96x256xbf16>
    %cst_14 = arith.constant dense<0.000000e+00> : vector<112x256xf32>
    %12 = tpu.matmul %9, %11, %cst_14 {dimension_numbers = #tpu.dot_dimension_numbers<[1], [0], [0], [1], [0, 0, 1, 1], [], []>} : vector<112x96xbf16>, vector<96x256xbf16>, vector<112x256xf32> -> vector<112x256xf32>
    %13 = arith.addf %6, %12 : vector<112x256xf32>
    %c2 = arith.constant 2 : index
    %c0_15 = arith.constant 0 : index
    %c0_16 = arith.constant 0 : index
    %c0_17 = arith.constant 0 : index
    %14 = vector.load %arg1[%c2, %c0_15, %c0_16, %c0_17] : memref<4x8x16x96xbf16, #tpu.memory_space<vmem>>, vector<1x7x16x96xbf16>
    %15 = vector.shape_cast %14 : vector<1x7x16x96xbf16> to vector<7x16x96xbf16>
    %16 = vector.shape_cast %15 : vector<7x16x96xbf16> to vector<112x96xbf16>
    %c2_18 = arith.constant 2 : index
    %c0_19 = arith.constant 0 : index
    %c0_20 = arith.constant 0 : index
    %17 = vector.load %arg2[%c2_18, %c0_19, %c0_20] : memref<5x96x256xbf16, #tpu.memory_space<vmem>>, vector<1x96x256xbf16>
    %18 = vector.shape_cast %17 : vector<1x96x256xbf16> to vector<96x256xbf16>
    %cst_21 = arith.constant dense<0.000000e+00> : vector<112x256xf32>
    %19 = tpu.matmul %16, %18, %cst_21 {dimension_numbers = #tpu.dot_dimension_numbers<[1], [0], [0], [1], [0, 0, 1, 1], [], []>} : vector<112x96xbf16>, vector<96x256xbf16>, vector<112x256xf32> -> vector<112x256xf32>
    %20 = arith.addf %13, %19 : vector<112x256xf32>
    %c3 = arith.constant 3 : index
    %c0_22 = arith.constant 0 : index
    %c0_23 = arith.constant 0 : index
    %c0_24 = arith.constant 0 : index
    %21 = vector.load %arg1[%c3, %c0_22, %c0_23, %c0_24] : memref<4x8x16x96xbf16, #tpu.memory_space<vmem>>, vector<1x7x16x96xbf16>
    %22 = vector.shape_cast %21 : vector<1x7x16x96xbf16> to vector<7x16x96xbf16>
    %23 = vector.shape_cast %22 : vector<7x16x96xbf16> to vector<112x96xbf16>
    %c3_25 = arith.constant 3 : index
    %c0_26 = arith.constant 0 : index
    %c0_27 = arith.constant 0 : index
    %24 = vector.load %arg2[%c3_25, %c0_26, %c0_27] : memref<5x96x256xbf16, #tpu.memory_space<vmem>>, vector<1x96x256xbf16>
    %25 = vector.shape_cast %24 : vector<1x96x256xbf16> to vector<96x256xbf16>
    %cst_28 = arith.constant dense<0.000000e+00> : vector<112x256xf32>
    %26 = tpu.matmul %23, %25, %cst_28 {dimension_numbers = #tpu.dot_dimension_numbers<[1], [0], [0], [1], [0, 0, 1, 1], [], []>} : vector<112x96xbf16>, vector<96x256xbf16>, vector<112x256xf32> -> vector<112x256xf32>
    %27 = arith.addf %20, %26 : vector<112x256xf32>
    %c0_29 = arith.constant 0 : index
    %c1_30 = arith.constant 1 : index
    %c0_31 = arith.constant 0 : index
    %c0_32 = arith.constant 0 : index
    %28 = vector.load %arg1[%c0_29, %c1_30, %c0_31, %c0_32] : memref<4x8x16x96xbf16, #tpu.memory_space<vmem>>, vector<1x7x16x96xbf16>
    %29 = vector.shape_cast %28 : vector<1x7x16x96xbf16> to vector<7x16x96xbf16>
    %30 = vector.shape_cast %29 : vector<7x16x96xbf16> to vector<112x96xbf16>
    %c4 = arith.constant 4 : index
    %c0_33 = arith.constant 0 : index
    %c0_34 = arith.constant 0 : index
    %31 = vector.load %arg2[%c4, %c0_33, %c0_34] : memref<5x96x256xbf16, #tpu.memory_space<vmem>>, vector<1x96x256xbf16>
    %32 = vector.shape_cast %31 : vector<1x96x256xbf16> to vector<96x256xbf16>
    %cst_35 = arith.constant dense<0.000000e+00> : vector<112x256xf32>
    %33 = tpu.matmul %30, %32, %cst_35 {dimension_numbers = #tpu.dot_dimension_numbers<[1], [0], [0], [1], [0, 0, 1, 1], [], []>} : vector<112x96xbf16>, vector<96x256xbf16>, vector<112x256xf32> -> vector<112x256xf32>
    %34 = arith.addf %27, %33 : vector<112x256xf32>
    %c1_36 = arith.constant 1 : index
    %c0_37 = arith.constant 0 : index
    %c0_38 = arith.constant 0 : index
    %c0_39 = arith.constant 0 : index
    %35 = vector.load %arg1[%c1_36, %c0_37, %c0_38, %c0_39] : memref<4x8x16x96xbf16, #tpu.memory_space<vmem>>, vector<1x7x16x96xbf16>
    %36 = vector.shape_cast %35 : vector<1x7x16x96xbf16> to vector<7x16x96xbf16>
    %37 = vector.shape_cast %36 : vector<7x16x96xbf16> to vector<112x96xbf16>
    %c0_40 = arith.constant 0 : index
    %c0_41 = arith.constant 0 : index
    %c0_42 = arith.constant 0 : index
    %38 = vector.load %arg2[%c0_40, %c0_41, %c0_42] : memref<5x96x256xbf16, #tpu.memory_space<vmem>>, vector<1x96x256xbf16>
    %39 = vector.shape_cast %38 : vector<1x96x256xbf16> to vector<96x256xbf16>
    %cst_43 = arith.constant dense<0.000000e+00> : vector<112x256xf32>
    %40 = tpu.matmul %37, %39, %cst_43 {dimension_numbers = #tpu.dot_dimension_numbers<[1], [0], [0], [1], [0, 0, 1, 1], [], []>} : vector<112x96xbf16>, vector<96x256xbf16>, vector<112x256xf32> -> vector<112x256xf32>
    %c2_44 = arith.constant 2 : index
    %c0_45 = arith.constant 0 : index
    %c0_46 = arith.constant 0 : index
    %c0_47 = arith.constant 0 : index
    %41 = vector.load %arg1[%c2_44, %c0_45, %c0_46, %c0_47] : memref<4x8x16x96xbf16, #tpu.memory_space<vmem>>, vector<1x7x16x96xbf16>
    %42 = vector.shape_cast %41 : vector<1x7x16x96xbf16> to vector<7x16x96xbf16>
    %43 = vector.shape_cast %42 : vector<7x16x96xbf16> to vector<112x96xbf16>
    %c1_48 = arith.constant 1 : index
    %c0_49 = arith.constant 0 : index
    %c0_50 = arith.constant 0 : index
    %44 = vector.load %arg2[%c1_48, %c0_49, %c0_50] : memref<5x96x256xbf16, #tpu.memory_space<vmem>>, vector<1x96x256xbf16>
    %45 = vector.shape_cast %44 : vector<1x96x256xbf16> to vector<96x256xbf16>
    %cst_51 = arith.constant dense<0.000000e+00> : vector<112x256xf32>
    %46 = tpu.matmul %43, %45, %cst_51 {dimension_numbers = #tpu.dot_dimension_numbers<[1], [0], [0], [1], [0, 0, 1, 1], [], []>} : vector<112x96xbf16>, vector<96x256xbf16>, vector<112x256xf32> -> vector<112x256xf32>
    %47 = arith.addf %40, %46 : vector<112x256xf32>
    %c3_52 = arith.constant 3 : index
    %c0_53 = arith.constant 0 : index
    %c0_54 = arith.constant 0 : index
    %c0_55 = arith.constant 0 : index
    %48 = vector.load %arg1[%c3_52, %c0_53, %c0_54, %c0_55] : memref<4x8x16x96xbf16, #tpu.memory_space<vmem>>, vector<1x7x16x96xbf16>
    %49 = vector.shape_cast %48 : vector<1x7x16x96xbf16> to vector<7x16x96xbf16>
    %50 = vector.shape_cast %49 : vector<7x16x96xbf16> to vector<112x96xbf16>
    %c2_56 = arith.constant 2 : index
    %c0_57 = arith.constant 0 : index
    %c0_58 = arith.constant 0 : index
    %51 = vector.load %arg2[%c2_56, %c0_57, %c0_58] : memref<5x96x256xbf16, #tpu.memory_space<vmem>>, vector<1x96x256xbf16>
    %52 = vector.shape_cast %51 : vector<1x96x256xbf16> to vector<96x256xbf16>
    %cst_59 = arith.constant dense<0.000000e+00> : vector<112x256xf32>
    %53 = tpu.matmul %50, %52, %cst_59 {dimension_numbers = #tpu.dot_dimension_numbers<[1], [0], [0], [1], [0, 0, 1, 1], [], []>} : vector<112x96xbf16>, vector<96x256xbf16>, vector<112x256xf32> -> vector<112x256xf32>
    %54 = arith.addf %47, %53 : vector<112x256xf32>
    %c0_60 = arith.constant 0 : index
    %c1_61 = arith.constant 1 : index
    %c0_62 = arith.constant 0 : index
    %c0_63 = arith.constant 0 : index
    %55 = vector.load %arg1[%c0_60, %c1_61, %c0_62, %c0_63] : memref<4x8x16x96xbf16, #tpu.memory_space<vmem>>, vector<1x7x16x96xbf16>
    %56 = vector.shape_cast %55 : vector<1x7x16x96xbf16> to vector<7x16x96xbf16>
    %57 = vector.shape_cast %56 : vector<7x16x96xbf16> to vector<112x96xbf16>
    %c3_64 = arith.constant 3 : index
    %c0_65 = arith.constant 0 : index
    %c0_66 = arith.constant 0 : index
    %58 = vector.load %arg2[%c3_64, %c0_65, %c0_66] : memref<5x96x256xbf16, #tpu.memory_space<vmem>>, vector<1x96x256xbf16>
    %59 = vector.shape_cast %58 : vector<1x96x256xbf16> to vector<96x256xbf16>
    %cst_67 = arith.constant dense<0.000000e+00> : vector<112x256xf32>
    %60 = tpu.matmul %57, %59, %cst_67 {dimension_numbers = #tpu.dot_dimension_numbers<[1], [0], [0], [1], [0, 0, 1, 1], [], []>} : vector<112x96xbf16>, vector<96x256xbf16>, vector<112x256xf32> -> vector<112x256xf32>
    %61 = arith.addf %54, %60 : vector<112x256xf32>
    %c1_68 = arith.constant 1 : index
    %c1_69 = arith.constant 1 : index
    %c0_70 = arith.constant 0 : index
    %c0_71 = arith.constant 0 : index
    %62 = vector.load %arg1[%c1_68, %c1_69, %c0_70, %c0_71] : memref<4x8x16x96xbf16, #tpu.memory_space<vmem>>, vector<1x7x16x96xbf16>
    %63 = vector.shape_cast %62 : vector<1x7x16x96xbf16> to vector<7x16x96xbf16>
    %64 = vector.shape_cast %63 : vector<7x16x96xbf16> to vector<112x96xbf16>
    %c4_72 = arith.constant 4 : index
    %c0_73 = arith.constant 0 : index
    %c0_74 = arith.constant 0 : index
    %65 = vector.load %arg2[%c4_72, %c0_73, %c0_74] : memref<5x96x256xbf16, #tpu.memory_space<vmem>>, vector<1x96x256xbf16>
    %66 = vector.shape_cast %65 : vector<1x96x256xbf16> to vector<96x256xbf16>
    %cst_75 = arith.constant dense<0.000000e+00> : vector<112x256xf32>
    %67 = tpu.matmul %64, %66, %cst_75 {dimension_numbers = #tpu.dot_dimension_numbers<[1], [0], [0], [1], [0, 0, 1, 1], [], []>} : vector<112x96xbf16>, vector<96x256xbf16>, vector<112x256xf32> -> vector<112x256xf32>
    %68 = arith.addf %61, %67 : vector<112x256xf32>
    %69 = vector.extract_strided_slice %34 {offsets = [0, 0], sizes = [112, 128], strides = [1, 1]} : vector<112x256xf32> to vector<112x128xf32>
    %70 = vector.extract_strided_slice %34 {offsets = [0, 128], sizes = [112, 128], strides = [1, 1]} : vector<112x256xf32> to vector<112x128xf32>
    %71 = arith.maximumf %69, %70 : vector<112x128xf32>
    %72 = vector.extract_strided_slice %68 {offsets = [0, 0], sizes = [112, 128], strides = [1, 1]} : vector<112x256xf32> to vector<112x128xf32>
    %73 = vector.extract_strided_slice %68 {offsets = [0, 128], sizes = [112, 128], strides = [1, 1]} : vector<112x256xf32> to vector<112x128xf32>
    %74 = arith.maximumf %72, %73 : vector<112x128xf32>
    %75 = arith.maximumf %71, %74 : vector<112x128xf32>
    %76 = vector.broadcast %0 : vector<1x128xf32> to vector<112x128xf32>
    %77 = arith.addf %75, %76 : vector<112x128xf32>
    %cst_76 = arith.constant 0.000000e+00 : f32
    %78 = vector.broadcast %cst_76 : f32 to vector<112x128xf32>
    %79 = arith.maximumf %77, %78 : vector<112x128xf32>
    %80 = arith.truncf %79 : vector<112x128xf32> to vector<112x128xbf16>
    %c2_77 = arith.constant 2 : index
    %c0_78 = arith.constant 0 : index
    %c0_79 = arith.constant 0 : index
    %c0_80 = arith.constant 0 : index
    %81 = vector.load %arg1[%c2_77, %c0_78, %c0_79, %c0_80] : memref<4x8x16x96xbf16, #tpu.memory_space<vmem>>, vector<1x7x16x96xbf16>
    %82 = vector.shape_cast %81 : vector<1x7x16x96xbf16> to vector<7x16x96xbf16>
    %83 = vector.shape_cast %82 : vector<7x16x96xbf16> to vector<112x96xbf16>
    %c0_81 = arith.constant 0 : index
    %c0_82 = arith.constant 0 : index
    %c0_83 = arith.constant 0 : index
    %84 = vector.load %arg2[%c0_81, %c0_82, %c0_83] : memref<5x96x256xbf16, #tpu.memory_space<vmem>>, vector<1x96x256xbf16>
    %85 = vector.shape_cast %84 : vector<1x96x256xbf16> to vector<96x256xbf16>
    %cst_84 = arith.constant dense<0.000000e+00> : vector<112x256xf32>
    %86 = tpu.matmul %83, %85, %cst_84 {dimension_numbers = #tpu.dot_dimension_numbers<[1], [0], [0], [1], [0, 0, 1, 1], [], []>} : vector<112x96xbf16>, vector<96x256xbf16>, vector<112x256xf32> -> vector<112x256xf32>
    %c3_85 = arith.constant 3 : index
    %c0_86 = arith.constant 0 : index
    %c0_87 = arith.constant 0 : index
    %c0_88 = arith.constant 0 : index
    %87 = vector.load %arg1[%c3_85, %c0_86, %c0_87, %c0_88] : memref<4x8x16x96xbf16, #tpu.memory_space<vmem>>, vector<1x7x16x96xbf16>
    %88 = vector.shape_cast %87 : vector<1x7x16x96xbf16> to vector<7x16x96xbf16>
    %89 = vector.shape_cast %88 : vector<7x16x96xbf16> to vector<112x96xbf16>
    %c1_89 = arith.constant 1 : index
    %c0_90 = arith.constant 0 : index
    %c0_91 = arith.constant 0 : index
    %90 = vector.load %arg2[%c1_89, %c0_90, %c0_91] : memref<5x96x256xbf16, #tpu.memory_space<vmem>>, vector<1x96x256xbf16>
    %91 = vector.shape_cast %90 : vector<1x96x256xbf16> to vector<96x256xbf16>
    %cst_92 = arith.constant dense<0.000000e+00> : vector<112x256xf32>
    %92 = tpu.matmul %89, %91, %cst_92 {dimension_numbers = #tpu.dot_dimension_numbers<[1], [0], [0], [1], [0, 0, 1, 1], [], []>} : vector<112x96xbf16>, vector<96x256xbf16>, vector<112x256xf32> -> vector<112x256xf32>
    %93 = arith.addf %86, %92 : vector<112x256xf32>
    %c0_93 = arith.constant 0 : index
    %c1_94 = arith.constant 1 : index
    %c0_95 = arith.constant 0 : index
    %c0_96 = arith.constant 0 : index
    %94 = vector.load %arg1[%c0_93, %c1_94, %c0_95, %c0_96] : memref<4x8x16x96xbf16, #tpu.memory_space<vmem>>, vector<1x7x16x96xbf16>
    %95 = vector.shape_cast %94 : vector<1x7x16x96xbf16> to vector<7x16x96xbf16>
    %96 = vector.shape_cast %95 : vector<7x16x96xbf16> to vector<112x96xbf16>
    %c2_97 = arith.constant 2 : index
    %c0_98 = arith.constant 0 : index
    %c0_99 = arith.constant 0 : index
    %97 = vector.load %arg2[%c2_97, %c0_98, %c0_99] : memref<5x96x256xbf16, #tpu.memory_space<vmem>>, vector<1x96x256xbf16>
    %98 = vector.shape_cast %97 : vector<1x96x256xbf16> to vector<96x256xbf16>
    %cst_100 = arith.constant dense<0.000000e+00> : vector<112x256xf32>
    %99 = tpu.matmul %96, %98, %cst_100 {dimension_numbers = #tpu.dot_dimension_numbers<[1], [0], [0], [1], [0, 0, 1, 1], [], []>} : vector<112x96xbf16>, vector<96x256xbf16>, vector<112x256xf32> -> vector<112x256xf32>
    %100 = arith.addf %93, %99 : vector<112x256xf32>
    %c1_101 = arith.constant 1 : index
    %c1_102 = arith.constant 1 : index
    %c0_103 = arith.constant 0 : index
    %c0_104 = arith.constant 0 : index
    %101 = vector.load %arg1[%c1_101, %c1_102, %c0_103, %c0_104] : memref<4x8x16x96xbf16, #tpu.memory_space<vmem>>, vector<1x7x16x96xbf16>
    %102 = vector.shape_cast %101 : vector<1x7x16x96xbf16> to vector<7x16x96xbf16>
    %103 = vector.shape_cast %102 : vector<7x16x96xbf16> to vector<112x96xbf16>
    %c3_105 = arith.constant 3 : index
    %c0_106 = arith.constant 0 : index
    %c0_107 = arith.constant 0 : index
    %104 = vector.load %arg2[%c3_105, %c0_106, %c0_107] : memref<5x96x256xbf16, #tpu.memory_space<vmem>>, vector<1x96x256xbf16>
    %105 = vector.shape_cast %104 : vector<1x96x256xbf16> to vector<96x256xbf16>
    %cst_108 = arith.constant dense<0.000000e+00> : vector<112x256xf32>
    %106 = tpu.matmul %103, %105, %cst_108 {dimension_numbers = #tpu.dot_dimension_numbers<[1], [0], [0], [1], [0, 0, 1, 1], [], []>} : vector<112x96xbf16>, vector<96x256xbf16>, vector<112x256xf32> -> vector<112x256xf32>
    %107 = arith.addf %100, %106 : vector<112x256xf32>
    %c2_109 = arith.constant 2 : index
    %c1_110 = arith.constant 1 : index
    %c0_111 = arith.constant 0 : index
    %c0_112 = arith.constant 0 : index
    %108 = vector.load %arg1[%c2_109, %c1_110, %c0_111, %c0_112] : memref<4x8x16x96xbf16, #tpu.memory_space<vmem>>, vector<1x7x16x96xbf16>
    %109 = vector.shape_cast %108 : vector<1x7x16x96xbf16> to vector<7x16x96xbf16>
    %110 = vector.shape_cast %109 : vector<7x16x96xbf16> to vector<112x96xbf16>
    %c4_113 = arith.constant 4 : index
    %c0_114 = arith.constant 0 : index
    %c0_115 = arith.constant 0 : index
    %111 = vector.load %arg2[%c4_113, %c0_114, %c0_115] : memref<5x96x256xbf16, #tpu.memory_space<vmem>>, vector<1x96x256xbf16>
    %112 = vector.shape_cast %111 : vector<1x96x256xbf16> to vector<96x256xbf16>
    %cst_116 = arith.constant dense<0.000000e+00> : vector<112x256xf32>
    %113 = tpu.matmul %110, %112, %cst_116 {dimension_numbers = #tpu.dot_dimension_numbers<[1], [0], [0], [1], [0, 0, 1, 1], [], []>} : vector<112x96xbf16>, vector<96x256xbf16>, vector<112x256xf32> -> vector<112x256xf32>
    %114 = arith.addf %107, %113 : vector<112x256xf32>
    %c3_117 = arith.constant 3 : index
    %c0_118 = arith.constant 0 : index
    %c0_119 = arith.constant 0 : index
    %c0_120 = arith.constant 0 : index
    %115 = vector.load %arg1[%c3_117, %c0_118, %c0_119, %c0_120] : memref<4x8x16x96xbf16, #tpu.memory_space<vmem>>, vector<1x7x16x96xbf16>
    %116 = vector.shape_cast %115 : vector<1x7x16x96xbf16> to vector<7x16x96xbf16>
    %117 = vector.shape_cast %116 : vector<7x16x96xbf16> to vector<112x96xbf16>
    %c0_121 = arith.constant 0 : index
    %c0_122 = arith.constant 0 : index
    %c0_123 = arith.constant 0 : index
    %118 = vector.load %arg2[%c0_121, %c0_122, %c0_123] : memref<5x96x256xbf16, #tpu.memory_space<vmem>>, vector<1x96x256xbf16>
    %119 = vector.shape_cast %118 : vector<1x96x256xbf16> to vector<96x256xbf16>
    %cst_124 = arith.constant dense<0.000000e+00> : vector<112x256xf32>
    %120 = tpu.matmul %117, %119, %cst_124 {dimension_numbers = #tpu.dot_dimension_numbers<[1], [0], [0], [1], [0, 0, 1, 1], [], []>} : vector<112x96xbf16>, vector<96x256xbf16>, vector<112x256xf32> -> vector<112x256xf32>
    %c0_125 = arith.constant 0 : index
    %c1_126 = arith.constant 1 : index
    %c0_127 = arith.constant 0 : index
    %c0_128 = arith.constant 0 : index
    %121 = vector.load %arg1[%c0_125, %c1_126, %c0_127, %c0_128] : memref<4x8x16x96xbf16, #tpu.memory_space<vmem>>, vector<1x7x16x96xbf16>
    %122 = vector.shape_cast %121 : vector<1x7x16x96xbf16> to vector<7x16x96xbf16>
    %123 = vector.shape_cast %122 : vector<7x16x96xbf16> to vector<112x96xbf16>
    %c1_129 = arith.constant 1 : index
    %c0_130 = arith.constant 0 : index
    %c0_131 = arith.constant 0 : index
    %124 = vector.load %arg2[%c1_129, %c0_130, %c0_131] : memref<5x96x256xbf16, #tpu.memory_space<vmem>>, vector<1x96x256xbf16>
    %125 = vector.shape_cast %124 : vector<1x96x256xbf16> to vector<96x256xbf16>
    %cst_132 = arith.constant dense<0.000000e+00> : vector<112x256xf32>
    %126 = tpu.matmul %123, %125, %cst_132 {dimension_numbers = #tpu.dot_dimension_numbers<[1], [0], [0], [1], [0, 0, 1, 1], [], []>} : vector<112x96xbf16>, vector<96x256xbf16>, vector<112x256xf32> -> vector<112x256xf32>
    %127 = arith.addf %120, %126 : vector<112x256xf32>
    %c1_133 = arith.constant 1 : index
    %c1_134 = arith.constant 1 : index
    %c0_135 = arith.constant 0 : index
    %c0_136 = arith.constant 0 : index
    %128 = vector.load %arg1[%c1_133, %c1_134, %c0_135, %c0_136] : memref<4x8x16x96xbf16, #tpu.memory_space<vmem>>, vector<1x7x16x96xbf16>
    %129 = vector.shape_cast %128 : vector<1x7x16x96xbf16> to vector<7x16x96xbf16>
    %130 = vector.shape_cast %129 : vector<7x16x96xbf16> to vector<112x96xbf16>
    %c2_137 = arith.constant 2 : index
    %c0_138 = arith.constant 0 : index
    %c0_139 = arith.constant 0 : index
    %131 = vector.load %arg2[%c2_137, %c0_138, %c0_139] : memref<5x96x256xbf16, #tpu.memory_space<vmem>>, vector<1x96x256xbf16>
    %132 = vector.shape_cast %131 : vector<1x96x256xbf16> to vector<96x256xbf16>
    %cst_140 = arith.constant dense<0.000000e+00> : vector<112x256xf32>
    %133 = tpu.matmul %130, %132, %cst_140 {dimension_numbers = #tpu.dot_dimension_numbers<[1], [0], [0], [1], [0, 0, 1, 1], [], []>} : vector<112x96xbf16>, vector<96x256xbf16>, vector<112x256xf32> -> vector<112x256xf32>
    %134 = arith.addf %127, %133 : vector<112x256xf32>
    %c2_141 = arith.constant 2 : index
    %c1_142 = arith.constant 1 : index
    %c0_143 = arith.constant 0 : index
    %c0_144 = arith.constant 0 : index
    %135 = vector.load %arg1[%c2_141, %c1_142, %c0_143, %c0_144] : memref<4x8x16x96xbf16, #tpu.memory_space<vmem>>, vector<1x7x16x96xbf16>
    %136 = vector.shape_cast %135 : vector<1x7x16x96xbf16> to vector<7x16x96xbf16>
    %137 = vector.shape_cast %136 : vector<7x16x96xbf16> to vector<112x96xbf16>
    %c3_145 = arith.constant 3 : index
    %c0_146 = arith.constant 0 : index
    %c0_147 = arith.constant 0 : index
    %138 = vector.load %arg2[%c3_145, %c0_146, %c0_147] : memref<5x96x256xbf16, #tpu.memory_space<vmem>>, vector<1x96x256xbf16>
    %139 = vector.shape_cast %138 : vector<1x96x256xbf16> to vector<96x256xbf16>
    %cst_148 = arith.constant dense<0.000000e+00> : vector<112x256xf32>
    %140 = tpu.matmul %137, %139, %cst_148 {dimension_numbers = #tpu.dot_dimension_numbers<[1], [0], [0], [1], [0, 0, 1, 1], [], []>} : vector<112x96xbf16>, vector<96x256xbf16>, vector<112x256xf32> -> vector<112x256xf32>
    %141 = arith.addf %134, %140 : vector<112x256xf32>
    %c3_149 = arith.constant 3 : index
    %c1_150 = arith.constant 1 : index
    %c0_151 = arith.constant 0 : index
    %c0_152 = arith.constant 0 : index
    %142 = vector.load %arg1[%c3_149, %c1_150, %c0_151, %c0_152] : memref<4x8x16x96xbf16, #tpu.memory_space<vmem>>, vector<1x7x16x96xbf16>
    %143 = vector.shape_cast %142 : vector<1x7x16x96xbf16> to vector<7x16x96xbf16>
    %144 = vector.shape_cast %143 : vector<7x16x96xbf16> to vector<112x96xbf16>
    %c4_153 = arith.constant 4 : index
    %c0_154 = arith.constant 0 : index
    %c0_155 = arith.constant 0 : index
    %145 = vector.load %arg2[%c4_153, %c0_154, %c0_155] : memref<5x96x256xbf16, #tpu.memory_space<vmem>>, vector<1x96x256xbf16>
    %146 = vector.shape_cast %145 : vector<1x96x256xbf16> to vector<96x256xbf16>
    %cst_156 = arith.constant dense<0.000000e+00> : vector<112x256xf32>
    %147 = tpu.matmul %144, %146, %cst_156 {dimension_numbers = #tpu.dot_dimension_numbers<[1], [0], [0], [1], [0, 0, 1, 1], [], []>} : vector<112x96xbf16>, vector<96x256xbf16>, vector<112x256xf32> -> vector<112x256xf32>
    %148 = arith.addf %141, %147 : vector<112x256xf32>
    %149 = vector.extract_strided_slice %114 {offsets = [0, 0], sizes = [112, 128], strides = [1, 1]} : vector<112x256xf32> to vector<112x128xf32>
    %150 = vector.extract_strided_slice %114 {offsets = [0, 128], sizes = [112, 128], strides = [1, 1]} : vector<112x256xf32> to vector<112x128xf32>
    %151 = arith.maximumf %149, %150 : vector<112x128xf32>
    %152 = vector.extract_strided_slice %148 {offsets = [0, 0], sizes = [112, 128], strides = [1, 1]} : vector<112x256xf32> to vector<112x128xf32>
    %153 = vector.extract_strided_slice %148 {offsets = [0, 128], sizes = [112, 128], strides = [1, 1]} : vector<112x256xf32> to vector<112x128xf32>
    %154 = arith.maximumf %152, %153 : vector<112x128xf32>
    %155 = arith.maximumf %151, %154 : vector<112x128xf32>
    %156 = vector.broadcast %0 : vector<1x128xf32> to vector<112x128xf32>
    %157 = arith.addf %155, %156 : vector<112x128xf32>
    %cst_157 = arith.constant 0.000000e+00 : f32
    %158 = vector.broadcast %cst_157 : f32 to vector<112x128xf32>
    %159 = arith.maximumf %157, %158 : vector<112x128xf32>
    %160 = arith.truncf %159 : vector<112x128xf32> to vector<112x128xbf16>
    %c0_158 = arith.constant 0 : index
    %c0_159 = arith.constant 0 : index
    %161 = vector.load %arg5[%c0_158, %c0_159] : memref<1x128xf32, #tpu.memory_space<vmem>>, vector<1x128xf32>
    %162 = vector.extract_strided_slice %80 {offsets = [0, 0], sizes = [80, 128], strides = [1, 1]} : vector<112x128xbf16> to vector<80x128xbf16>
    %c0_160 = arith.constant 0 : index
    %c0_161 = arith.constant 0 : index
    %c0_162 = arith.constant 0 : index
    %163 = vector.load %arg4[%c0_160, %c0_161, %c0_162] : memref<5x128x256xbf16, #tpu.memory_space<vmem>>, vector<1x128x256xbf16>
    %164 = vector.shape_cast %163 : vector<1x128x256xbf16> to vector<128x256xbf16>
    %cst_163 = arith.constant dense<0.000000e+00> : vector<80x256xf32>
    %165 = tpu.matmul %162, %164, %cst_163 {dimension_numbers = #tpu.dot_dimension_numbers<[1], [0], [0], [1], [0, 0, 1, 1], [], []>} : vector<80x128xbf16>, vector<128x256xbf16>, vector<80x256xf32> -> vector<80x256xf32>
    %166 = vector.extract_strided_slice %160 {offsets = [0, 0], sizes = [80, 128], strides = [1, 1]} : vector<112x128xbf16> to vector<80x128xbf16>
    %c1_164 = arith.constant 1 : index
    %c0_165 = arith.constant 0 : index
    %c0_166 = arith.constant 0 : index
    %167 = vector.load %arg4[%c1_164, %c0_165, %c0_166] : memref<5x128x256xbf16, #tpu.memory_space<vmem>>, vector<1x128x256xbf16>
    %168 = vector.shape_cast %167 : vector<1x128x256xbf16> to vector<128x256xbf16>
    %cst_167 = arith.constant dense<0.000000e+00> : vector<80x256xf32>
    %169 = tpu.matmul %166, %168, %cst_167 {dimension_numbers = #tpu.dot_dimension_numbers<[1], [0], [0], [1], [0, 0, 1, 1], [], []>} : vector<80x128xbf16>, vector<128x256xbf16>, vector<80x256xf32> -> vector<80x256xf32>
    %170 = arith.addf %165, %169 : vector<80x256xf32>
    %171 = vector.extract_strided_slice %80 {offsets = [16, 0], sizes = [80, 128], strides = [1, 1]} : vector<112x128xbf16> to vector<80x128xbf16>
    %c2_168 = arith.constant 2 : index
    %c0_169 = arith.constant 0 : index
    %c0_170 = arith.constant 0 : index
    %172 = vector.load %arg4[%c2_168, %c0_169, %c0_170] : memref<5x128x256xbf16, #tpu.memory_space<vmem>>, vector<1x128x256xbf16>
    %173 = vector.shape_cast %172 : vector<1x128x256xbf16> to vector<128x256xbf16>
    %cst_171 = arith.constant dense<0.000000e+00> : vector<80x256xf32>
    %174 = tpu.matmul %171, %173, %cst_171 {dimension_numbers = #tpu.dot_dimension_numbers<[1], [0], [0], [1], [0, 0, 1, 1], [], []>} : vector<80x128xbf16>, vector<128x256xbf16>, vector<80x256xf32> -> vector<80x256xf32>
    %175 = arith.addf %170, %174 : vector<80x256xf32>
    %176 = vector.extract_strided_slice %160 {offsets = [16, 0], sizes = [80, 128], strides = [1, 1]} : vector<112x128xbf16> to vector<80x128xbf16>
    %c3_172 = arith.constant 3 : index
    %c0_173 = arith.constant 0 : index
    %c0_174 = arith.constant 0 : index
    %177 = vector.load %arg4[%c3_172, %c0_173, %c0_174] : memref<5x128x256xbf16, #tpu.memory_space<vmem>>, vector<1x128x256xbf16>
    %178 = vector.shape_cast %177 : vector<1x128x256xbf16> to vector<128x256xbf16>
    %cst_175 = arith.constant dense<0.000000e+00> : vector<80x256xf32>
    %179 = tpu.matmul %176, %178, %cst_175 {dimension_numbers = #tpu.dot_dimension_numbers<[1], [0], [0], [1], [0, 0, 1, 1], [], []>} : vector<80x128xbf16>, vector<128x256xbf16>, vector<80x256xf32> -> vector<80x256xf32>
    %180 = arith.addf %175, %179 : vector<80x256xf32>
    %181 = vector.extract_strided_slice %80 {offsets = [32, 0], sizes = [80, 128], strides = [1, 1]} : vector<112x128xbf16> to vector<80x128xbf16>
    %c4_176 = arith.constant 4 : index
    %c0_177 = arith.constant 0 : index
    %c0_178 = arith.constant 0 : index
    %182 = vector.load %arg4[%c4_176, %c0_177, %c0_178] : memref<5x128x256xbf16, #tpu.memory_space<vmem>>, vector<1x128x256xbf16>
    %183 = vector.shape_cast %182 : vector<1x128x256xbf16> to vector<128x256xbf16>
    %cst_179 = arith.constant dense<0.000000e+00> : vector<80x256xf32>
    %184 = tpu.matmul %181, %183, %cst_179 {dimension_numbers = #tpu.dot_dimension_numbers<[1], [0], [0], [1], [0, 0, 1, 1], [], []>} : vector<80x128xbf16>, vector<128x256xbf16>, vector<80x256xf32> -> vector<80x256xf32>
    %185 = arith.addf %180, %184 : vector<80x256xf32>
    %186 = vector.extract_strided_slice %160 {offsets = [0, 0], sizes = [80, 128], strides = [1, 1]} : vector<112x128xbf16> to vector<80x128xbf16>
    %c0_180 = arith.constant 0 : index
    %c0_181 = arith.constant 0 : index
    %c0_182 = arith.constant 0 : index
    %187 = vector.load %arg4[%c0_180, %c0_181, %c0_182] : memref<5x128x256xbf16, #tpu.memory_space<vmem>>, vector<1x128x256xbf16>
    %188 = vector.shape_cast %187 : vector<1x128x256xbf16> to vector<128x256xbf16>
    %cst_183 = arith.constant dense<0.000000e+00> : vector<80x256xf32>
    %189 = tpu.matmul %186, %188, %cst_183 {dimension_numbers = #tpu.dot_dimension_numbers<[1], [0], [0], [1], [0, 0, 1, 1], [], []>} : vector<80x128xbf16>, vector<128x256xbf16>, vector<80x256xf32> -> vector<80x256xf32>
    %190 = vector.extract_strided_slice %80 {offsets = [16, 0], sizes = [80, 128], strides = [1, 1]} : vector<112x128xbf16> to vector<80x128xbf16>
    %c1_184 = arith.constant 1 : index
    %c0_185 = arith.constant 0 : index
    %c0_186 = arith.constant 0 : index
    %191 = vector.load %arg4[%c1_184, %c0_185, %c0_186] : memref<5x128x256xbf16, #tpu.memory_space<vmem>>, vector<1x128x256xbf16>
    %192 = vector.shape_cast %191 : vector<1x128x256xbf16> to vector<128x256xbf16>
    %cst_187 = arith.constant dense<0.000000e+00> : vector<80x256xf32>
    %193 = tpu.matmul %190, %192, %cst_187 {dimension_numbers = #tpu.dot_dimension_numbers<[1], [0], [0], [1], [0, 0, 1, 1], [], []>} : vector<80x128xbf16>, vector<128x256xbf16>, vector<80x256xf32> -> vector<80x256xf32>
    %194 = arith.addf %189, %193 : vector<80x256xf32>
    %195 = vector.extract_strided_slice %160 {offsets = [16, 0], sizes = [80, 128], strides = [1, 1]} : vector<112x128xbf16> to vector<80x128xbf16>
    %c2_188 = arith.constant 2 : index
    %c0_189 = arith.constant 0 : index
    %c0_190 = arith.constant 0 : index
    %196 = vector.load %arg4[%c2_188, %c0_189, %c0_190] : memref<5x128x256xbf16, #tpu.memory_space<vmem>>, vector<1x128x256xbf16>
    %197 = vector.shape_cast %196 : vector<1x128x256xbf16> to vector<128x256xbf16>
    %cst_191 = arith.constant dense<0.000000e+00> : vector<80x256xf32>
    %198 = tpu.matmul %195, %197, %cst_191 {dimension_numbers = #tpu.dot_dimension_numbers<[1], [0], [0], [1], [0, 0, 1, 1], [], []>} : vector<80x128xbf16>, vector<128x256xbf16>, vector<80x256xf32> -> vector<80x256xf32>
    %199 = arith.addf %194, %198 : vector<80x256xf32>
    %200 = vector.extract_strided_slice %80 {offsets = [32, 0], sizes = [80, 128], strides = [1, 1]} : vector<112x128xbf16> to vector<80x128xbf16>
    %c3_192 = arith.constant 3 : index
    %c0_193 = arith.constant 0 : index
    %c0_194 = arith.constant 0 : index
    %201 = vector.load %arg4[%c3_192, %c0_193, %c0_194] : memref<5x128x256xbf16, #tpu.memory_space<vmem>>, vector<1x128x256xbf16>
    %202 = vector.shape_cast %201 : vector<1x128x256xbf16> to vector<128x256xbf16>
    %cst_195 = arith.constant dense<0.000000e+00> : vector<80x256xf32>
    %203 = tpu.matmul %200, %202, %cst_195 {dimension_numbers = #tpu.dot_dimension_numbers<[1], [0], [0], [1], [0, 0, 1, 1], [], []>} : vector<80x128xbf16>, vector<128x256xbf16>, vector<80x256xf32> -> vector<80x256xf32>
    %204 = arith.addf %199, %203 : vector<80x256xf32>
    %205 = vector.extract_strided_slice %160 {offsets = [32, 0], sizes = [80, 128], strides = [1, 1]} : vector<112x128xbf16> to vector<80x128xbf16>
    %c4_196 = arith.constant 4 : index
    %c0_197 = arith.constant 0 : index
    %c0_198 = arith.constant 0 : index
    %206 = vector.load %arg4[%c4_196, %c0_197, %c0_198] : memref<5x128x256xbf16, #tpu.memory_space<vmem>>, vector<1x128x256xbf16>
    %207 = vector.shape_cast %206 : vector<1x128x256xbf16> to vector<128x256xbf16>
    %cst_199 = arith.constant dense<0.000000e+00> : vector<80x256xf32>
    %208 = tpu.matmul %205, %207, %cst_199 {dimension_numbers = #tpu.dot_dimension_numbers<[1], [0], [0], [1], [0, 0, 1, 1], [], []>} : vector<80x128xbf16>, vector<128x256xbf16>, vector<80x256xf32> -> vector<80x256xf32>
    %209 = arith.addf %204, %208 : vector<80x256xf32>
    %210 = vector.extract_strided_slice %185 {offsets = [0, 0], sizes = [80, 128], strides = [1, 1]} : vector<80x256xf32> to vector<80x128xf32>
    %211 = vector.extract_strided_slice %185 {offsets = [0, 128], sizes = [80, 128], strides = [1, 1]} : vector<80x256xf32> to vector<80x128xf32>
    %212 = arith.maximumf %210, %211 : vector<80x128xf32>
    %213 = vector.extract_strided_slice %209 {offsets = [0, 0], sizes = [80, 128], strides = [1, 1]} : vector<80x256xf32> to vector<80x128xf32>
    %214 = vector.extract_strided_slice %209 {offsets = [0, 128], sizes = [80, 128], strides = [1, 1]} : vector<80x256xf32> to vector<80x128xf32>
    %215 = arith.maximumf %213, %214 : vector<80x128xf32>
    %216 = arith.maximumf %212, %215 : vector<80x128xf32>
    %217 = vector.broadcast %161 : vector<1x128xf32> to vector<80x128xf32>
    %218 = arith.addf %216, %217 : vector<80x128xf32>
    %cst_200 = arith.constant 0.000000e+00 : f32
    %219 = vector.broadcast %cst_200 : f32 to vector<80x128xf32>
    %220 = arith.maximumf %218, %219 : vector<80x128xf32>
    %221 = arith.truncf %220 : vector<80x128xf32> to vector<80x128xbf16>
    %222 = vector.extract_strided_slice %221 {offsets = [0, 0], sizes = [16, 128], strides = [1, 1]} : vector<80x128xbf16> to vector<16x128xbf16>
    %c0_201 = arith.constant 0 : index
    %c0_202 = arith.constant 0 : index
    %c0_203 = arith.constant 0 : index
    %223 = vector.load %arg6[%c0_201, %c0_202, %c0_203] : memref<5x128x120xbf16, #tpu.memory_space<vmem>>, vector<1x128x120xbf16>
    %224 = vector.shape_cast %223 : vector<1x128x120xbf16> to vector<128x120xbf16>
    %cst_204 = arith.constant dense<0.000000e+00> : vector<16x120xf32>
    %225 = tpu.matmul %222, %224, %cst_204 {dimension_numbers = #tpu.dot_dimension_numbers<[1], [0], [0], [1], [0, 0, 1, 1], [], []>} : vector<16x128xbf16>, vector<128x120xbf16>, vector<16x120xf32> -> vector<16x120xf32>
    %226 = vector.extract_strided_slice %221 {offsets = [16, 0], sizes = [16, 128], strides = [1, 1]} : vector<80x128xbf16> to vector<16x128xbf16>
    %c1_205 = arith.constant 1 : index
    %c0_206 = arith.constant 0 : index
    %c0_207 = arith.constant 0 : index
    %227 = vector.load %arg6[%c1_205, %c0_206, %c0_207] : memref<5x128x120xbf16, #tpu.memory_space<vmem>>, vector<1x128x120xbf16>
    %228 = vector.shape_cast %227 : vector<1x128x120xbf16> to vector<128x120xbf16>
    %cst_208 = arith.constant dense<0.000000e+00> : vector<16x120xf32>
    %229 = tpu.matmul %226, %228, %cst_208 {dimension_numbers = #tpu.dot_dimension_numbers<[1], [0], [0], [1], [0, 0, 1, 1], [], []>} : vector<16x128xbf16>, vector<128x120xbf16>, vector<16x120xf32> -> vector<16x120xf32>
    %230 = arith.addf %225, %229 : vector<16x120xf32>
    %231 = vector.extract_strided_slice %221 {offsets = [32, 0], sizes = [16, 128], strides = [1, 1]} : vector<80x128xbf16> to vector<16x128xbf16>
    %c2_209 = arith.constant 2 : index
    %c0_210 = arith.constant 0 : index
    %c0_211 = arith.constant 0 : index
    %232 = vector.load %arg6[%c2_209, %c0_210, %c0_211] : memref<5x128x120xbf16, #tpu.memory_space<vmem>>, vector<1x128x120xbf16>
    %233 = vector.shape_cast %232 : vector<1x128x120xbf16> to vector<128x120xbf16>
    %cst_212 = arith.constant dense<0.000000e+00> : vector<16x120xf32>
    %234 = tpu.matmul %231, %233, %cst_212 {dimension_numbers = #tpu.dot_dimension_numbers<[1], [0], [0], [1], [0, 0, 1, 1], [], []>} : vector<16x128xbf16>, vector<128x120xbf16>, vector<16x120xf32> -> vector<16x120xf32>
    %235 = arith.addf %230, %234 : vector<16x120xf32>
    %236 = vector.extract_strided_slice %221 {offsets = [48, 0], sizes = [16, 128], strides = [1, 1]} : vector<80x128xbf16> to vector<16x128xbf16>
    %c3_213 = arith.constant 3 : index
    %c0_214 = arith.constant 0 : index
    %c0_215 = arith.constant 0 : index
    %237 = vector.load %arg6[%c3_213, %c0_214, %c0_215] : memref<5x128x120xbf16, #tpu.memory_space<vmem>>, vector<1x128x120xbf16>
    %238 = vector.shape_cast %237 : vector<1x128x120xbf16> to vector<128x120xbf16>
    %cst_216 = arith.constant dense<0.000000e+00> : vector<16x120xf32>
    %239 = tpu.matmul %236, %238, %cst_216 {dimension_numbers = #tpu.dot_dimension_numbers<[1], [0], [0], [1], [0, 0, 1, 1], [], []>} : vector<16x128xbf16>, vector<128x120xbf16>, vector<16x120xf32> -> vector<16x120xf32>
    %240 = arith.addf %235, %239 : vector<16x120xf32>
    %241 = vector.extract_strided_slice %221 {offsets = [64, 0], sizes = [16, 128], strides = [1, 1]} : vector<80x128xbf16> to vector<16x128xbf16>
    %c4_217 = arith.constant 4 : index
    %c0_218 = arith.constant 0 : index
    %c0_219 = arith.constant 0 : index
    %242 = vector.load %arg6[%c4_217, %c0_218, %c0_219] : memref<5x128x120xbf16, #tpu.memory_space<vmem>>, vector<1x128x120xbf16>
    %243 = vector.shape_cast %242 : vector<1x128x120xbf16> to vector<128x120xbf16>
    %cst_220 = arith.constant dense<0.000000e+00> : vector<16x120xf32>
    %244 = tpu.matmul %241, %243, %cst_220 {dimension_numbers = #tpu.dot_dimension_numbers<[1], [0], [0], [1], [0, 0, 1, 1], [], []>} : vector<16x128xbf16>, vector<128x120xbf16>, vector<16x120xf32> -> vector<16x120xf32>
    %245 = arith.addf %240, %244 : vector<16x120xf32>
    %c0_221 = arith.constant 0 : index
    %c0_222 = arith.constant 0 : index
    %246 = vector.load %arg7[%c0_221, %c0_222] : memref<1x120xf32, #tpu.memory_space<vmem>>, vector<1x120xf32>
    %247 = vector.broadcast %246 : vector<1x120xf32> to vector<16x120xf32>
    %248 = arith.addf %245, %247 : vector<16x120xf32>
    %cst_223 = arith.constant 0.000000e+00 : f32
    %249 = vector.broadcast %cst_223 : f32 to vector<16x120xf32>
    %250 = arith.maximumf %248, %249 : vector<16x120xf32>
    %251 = arith.truncf %250 : vector<16x120xf32> to vector<16x120xbf16>
    %c0_224 = arith.constant 0 : index
    %c0_225 = arith.constant 0 : index
    %252 = vector.load %arg8[%c0_224, %c0_225] : memref<120x84xbf16, #tpu.memory_space<vmem>>, vector<120x84xbf16>
    %cst_226 = arith.constant dense<0.000000e+00> : vector<16x84xf32>
    %253 = tpu.matmul %251, %252, %cst_226 {dimension_numbers = #tpu.dot_dimension_numbers<[1], [0], [0], [1], [0, 0, 1, 1], [], []>} : vector<16x120xbf16>, vector<120x84xbf16>, vector<16x84xf32> -> vector<16x84xf32>
    %c0_227 = arith.constant 0 : index
    %c0_228 = arith.constant 0 : index
    %254 = vector.load %arg9[%c0_227, %c0_228] : memref<1x84xf32, #tpu.memory_space<vmem>>, vector<1x84xf32>
    %255 = vector.broadcast %254 : vector<1x84xf32> to vector<16x84xf32>
    %256 = arith.addf %253, %255 : vector<16x84xf32>
    %cst_229 = arith.constant 0.000000e+00 : f32
    %257 = vector.broadcast %cst_229 : f32 to vector<16x84xf32>
    %258 = arith.maximumf %256, %257 : vector<16x84xf32>
    %259 = arith.truncf %258 : vector<16x84xf32> to vector<16x84xbf16>
    %c0_230 = arith.constant 0 : index
    %c0_231 = arith.constant 0 : index
    %260 = vector.load %arg10[%c0_230, %c0_231] : memref<84x10xbf16, #tpu.memory_space<vmem>>, vector<84x10xbf16>
    %cst_232 = arith.constant dense<0.000000e+00> : vector<16x10xf32>
    %261 = tpu.matmul %259, %260, %cst_232 {dimension_numbers = #tpu.dot_dimension_numbers<[1], [0], [0], [1], [0, 0, 1, 1], [], []>} : vector<16x84xbf16>, vector<84x10xbf16>, vector<16x10xf32> -> vector<16x10xf32>
    %c0_233 = arith.constant 0 : index
    %c0_234 = arith.constant 0 : index
    %262 = vector.load %arg11[%c0_233, %c0_234] : memref<1x10xf32, #tpu.memory_space<vmem>>, vector<1x10xf32>
    %263 = vector.broadcast %262 : vector<1x10xf32> to vector<16x10xf32>
    %264 = arith.addf %261, %263 : vector<16x10xf32>
    %c0_235 = arith.constant 0 : index
    %c0_236 = arith.constant 0 : index
    %265 = vector.load %arg12[%c0_235, %c0_236] : memref<16x10xf32, #tpu.memory_space<vmem>>, vector<16x10xf32>
    tpu.vector_store %arg12[%c0_235, %c0_236], %264 {strides = array<i32>} : memref<16x10xf32, #tpu.memory_space<vmem>>, vector<16x10xf32>,
    return
  }
  func.func @transform_0(%arg0: i32) -> (i32, i32, i32, i32) {
    %c0_i32 = arith.constant 0 : i32
    %c0_i32_0 = arith.constant 0 : i32
    %c0_i32_1 = arith.constant 0 : i32
    %c0_i32_2 = arith.constant 0 : i32
    return %c0_i32, %c0_i32_0, %arg0, %c0_i32_1 : i32, i32, i32, i32
  }
  func.func @transform_1(%arg0: i32) -> (i32, i32, i32) {
    %c0_i32 = arith.constant 0 : i32
    %c0_i32_0 = arith.constant 0 : i32
    %c0_i32_1 = arith.constant 0 : i32
    %c0_i32_2 = arith.constant 0 : i32
    return %c0_i32, %c0_i32_0, %c0_i32_1 : i32, i32, i32
  }
  func.func @transform_2(%arg0: i32) -> (i32, i32) {
    %c0_i32 = arith.constant 0 : i32
    %c0_i32_0 = arith.constant 0 : i32
    %c0_i32_1 = arith.constant 0 : i32
    return %c0_i32, %c0_i32_0 : i32, i32
  }
  func.func @transform_3(%arg0: i32) -> (i32, i32, i32) {
    %c0_i32 = arith.constant 0 : i32
    %c0_i32_0 = arith.constant 0 : i32
    %c0_i32_1 = arith.constant 0 : i32
    %c0_i32_2 = arith.constant 0 : i32
    return %c0_i32, %c0_i32_0, %c0_i32_1 : i32, i32, i32
  }
  func.func @transform_4(%arg0: i32) -> (i32, i32) {
    %c0_i32 = arith.constant 0 : i32
    %c0_i32_0 = arith.constant 0 : i32
    %c0_i32_1 = arith.constant 0 : i32
    return %c0_i32, %c0_i32_0 : i32, i32
  }
  func.func @transform_5(%arg0: i32) -> (i32, i32, i32) {
    %c0_i32 = arith.constant 0 : i32
    %c0_i32_0 = arith.constant 0 : i32
    %c0_i32_1 = arith.constant 0 : i32
    %c0_i32_2 = arith.constant 0 : i32
    return %c0_i32, %c0_i32_0, %c0_i32_1 : i32, i32, i32
  }
  func.func @transform_6(%arg0: i32) -> (i32, i32) {
    %c0_i32 = arith.constant 0 : i32
    %c0_i32_0 = arith.constant 0 : i32
    %c0_i32_1 = arith.constant 0 : i32
    return %c0_i32, %c0_i32_0 : i32, i32
  }
  func.func @transform_7(%arg0: i32) -> (i32, i32) {
    %c0_i32 = arith.constant 0 : i32
    %c0_i32_0 = arith.constant 0 : i32
    %c0_i32_1 = arith.constant 0 : i32
    return %c0_i32, %c0_i32_0 : i32, i32
  }
  func.func @transform_8(%arg0: i32) -> (i32, i32) {
    %c0_i32 = arith.constant 0 : i32
    %c0_i32_0 = arith.constant 0 : i32
    %c0_i32_1 = arith.constant 0 : i32
    return %c0_i32, %c0_i32_0 : i32, i32
  }
  func.func @transform_9(%arg0: i32) -> (i32, i32) {
    %c0_i32 = arith.constant 0 : i32
    %c0_i32_0 = arith.constant 0 : i32
    %c0_i32_1 = arith.constant 0 : i32
    return %c0_i32, %c0_i32_0 : i32, i32
  }
  func.func @transform_10(%arg0: i32) -> (i32, i32) {
    %c0_i32 = arith.constant 0 : i32
    %c0_i32_0 = arith.constant 0 : i32
    %c0_i32_1 = arith.constant 0 : i32
    return %c0_i32, %c0_i32_0 : i32, i32
  }
  func.func @transform_11(%arg0: i32) -> (i32, i32) {
    %c0_i32 = arith.constant 0 : i32
    %c0_i32_0 = arith.constant 0 : i32
    return %arg0, %c0_i32 : i32, i32
  }
}

</mosaic_0001>

<bundles_post_ra>
// kernel: _forward.1
= control target key start
LH: loop header
LB: loop body
LE: loop exit
PB: predicated region body
PF: predicated region fallthrough
CT: control target
= control target key end

     0   :  { %v9773_v1 = vmov 0   ;;  %vm189_vm0 = vcmask 785408   ;;  %vm7601_vm1 = vmmov 0   ;;  %vm5642_vm2 = vcmask 1043456   ;;  %s9759_s1 = inlined_call_operand.vmem [shape: bf16[5,96,256], index: 1, kind: input, shape index: {}]   ;;  %s9760_s0 = inlined_call_operand.vmem [shape: bf16[4,8,16,96], index: 0, kind: input, shape index: {}]   ;;  %s9761_s3 = inlined_call_operand.vmem [shape: bf16[5,128,256], index: 3, kind: input, shape index: {}]   ;;  %s9762_s2 = inlined_call_operand.vmem [shape: f32[1,128], index: 2, kind: input, shape index: {}]   ;;  %s9763_s5 = inlined_call_operand.vmem [shape: bf16[5,128,120], index: 5, kind: input, shape index: {}]   ;;  %s9764_s4 = inlined_call_operand.vmem [shape: f32[1,128], index: 4, kind: input, shape index: {}]   ;;  %s9765_s7 = inlined_call_operand.vmem [shape: bf16[120,84], index: 7, kind: input, shape index: {}]   ;;  %s9766_s9 = inlined_call_operand.vmem [shape: bf16[84,10], index: 9, kind: input, shape index: {}]   ;;  %s9767_s6 = inlined_call_operand.vmem [shape: f32[1,120], index: 6, kind: input, shape index: {}]   ;;  %s9768_s8 = inlined_call_operand.vmem [shape: f32[1,84], index: 8, kind: input, shape index: {}]   ;;  %s9769_s10 = inlined_call_operand.vmem [shape: f32[1,10], index: 10, kind: input, shape index: {}]   ;;  %s9770_s11 = inlined_call_operand.vmem [shape: f32[16,10], index: 11, kind: output, shape index: {}]  }
   0x1   :  { %v7665_v0 = vld [vmem:[%s9759_s1 + $0x64] ss:$8 sps:$4 sm:$0xff]   ;;  %243 = vmatprep.mubr.bf16.mxu0 %v9773_v1  ;;  %1390 = vmatprep.mubr.bf16.mxu1 %v9773_v1  ;;  %v7672_v2 = vld [vmem:[%s9759_s1 + $0x60] ss:$8 sps:$4 sm:$0xff]   ;;  %v7679_v3 = vld [vmem:[%s9759_s1 + $0x74] ss:$8 sps:$4 sm:$0xff]  }
   0x2   :  { %211 = vmatprep.subr.bf16.mxu0 %v7665_v0  ;;  %1358 = vmatprep.subr.bf16.mxu1 %v7665_v0  ;;  %v7686_v4 = vld [vmem:[%s9759_s1 + $0x70] ss:$8 sps:$4 sm:$0xff]   ;;  %v7693_v5 = vld [vmem:[%s9759_s1 + $0x84] ss:$8 sps:$4 sm:$0xff]   ;;  %v7700_v6 = vld [vmem:[%s9759_s1 + $0x80] ss:$8 sps:$4 sm:$0xff]  }
   0x3   :  { %212 = vmatpush1.bf16.msra.mxu0 %v7672_v2  ;;  %1359 = vmatpush1.bf16.msra.mxu1 %v7672_v2  ;;  %v7707_v7 = vld [vmem:[%s9759_s1 + $0x94] ss:$8 sps:$4 sm:$0xff]   ;;  %v7714_v8 = vld [vmem:[%s9759_s1 + $0x90] ss:$8 sps:$4 sm:$0xff]   ;;  %v7721_v9 = vld [vmem:[%s9759_s1 + $0xa4] ss:$8 sps:$4 sm:$0xff]  }
   0x4   :  { %213 = vmatprep.subr.bf16.mxu0 %v7679_v3  ;;  %1360 = vmatprep.subr.bf16.mxu1 %v7679_v3  ;;  %v7728_v10 = vld [vmem:[%s9759_s1 + $0xa0] ss:$8 sps:$4 sm:$0xff]   ;;  %v7735_v11 = vld [vmem:[%s9759_s1 + $0xb4] ss:$8 sps:$4 sm:$0xff]   ;;  %v7742_v12 = vld [vmem:[%s9759_s1 + $0xb0] ss:$8 sps:$4 sm:$0xff]  }
   0x5   :  { %v7749_v13 = vld [vmem:[%s9759_s1 + $0x4] ss:$8 sps:$4 sm:$0xff]   ;;  %v7766_v16 = vld [vmem:[%s9759_s1] ss:$8 sps:$4 sm:$0xff]   ;;  %v7773_v17 = vld [vmem:[%s9759_s1 + $0x14] ss:$8 sps:$4 sm:$0xff]  }
   0x6   :  { %v7754_v14 = vld [vmem:[%s9760_s0 + $0x40] sm:$0xff]   ;;  %v7784_v18 = vld [vmem:[%s9759_s1 + $0x10] ss:$8 sps:$4 sm:$0xff]   ;;  %v7796_v20 = vld [vmem:[%s9760_s0 + $0x48] sm:$0xff]   ;;  %vm5638_vm3 = vcmask 982016   ;;  %vm5745_vm4 = vcmask 1041408  }
   0x7   :  { %214 = vmatpush1.bf16.msra.mxu0 %v7686_v4  ;;  %1361 = vmatpush1.bf16.msra.mxu1 %v7686_v4  ;;  %v7759_v15 = vld [vmem:[%s9760_s0 + $0x80] sm:$0xff]   ;;  %v7803_v21 = vld [vmem:[%s9760_s0 + $0x88] sm:$0xff]   ;;  %v7817_v23 = vld [vmem:[%s9759_s1 + $0x34] ss:$8 sps:$4 sm:$0xff]   ;;  %vm5741_vm5 = vcmask 687104   ;;  %vm5790_vm6 = vcmask 80896  }
   0x8   :  { %215 = vmatprep.subr.bf16.mxu0 %v7693_v5  ;;  %1362 = vmatprep.subr.bf16.mxu1 %v7693_v5  ;;  %v7791_v19 = vld [vmem:[%s9759_s1 + $0x24] ss:$8 sps:$4 sm:$0xff]   ;;  %v7812_v22 = vld [vmem:[%s9759_s1 + $0x20] ss:$8 sps:$4 sm:$0xff]   ;;  %v7828_v24 = vld [vmem:[%s9760_s0 + $0x50] sm:$0xff]  }
   0x9   :  { %v7835_v25 = vld [vmem:[%s9759_s1 + $0x30] ss:$8 sps:$4 sm:$0xff]   ;;  %v7842_v26 = vld [vmem:[%s9759_s1 + $0x44] ss:$8 sps:$4 sm:$0xff]   ;;  %v7854_v28 = vld [vmem:[%s9759_s1 + $0x40] ss:$8 sps:$4 sm:$0xff]  }
   0xa   :  { %v7847_v27 = vld [vmem:[%s9760_s0 + $0x90] sm:$0xff]   ;;  %v7872_v30 = vld [vmem:[%s9760_s0 + $0x58] sm:$0xff]   ;;  %v7886_v32 = vld [vmem:[%s9759_s1 + $0xc4] ss:$8 sps:$4 sm:$0xff]  }
   0xb   :  { %216 = vmatpush1.bf16.msra.mxu0 %v7700_v6  ;;  %1363 = vmatpush1.bf16.msra.mxu1 %v7700_v6  ;;  %v7861_v29 = vld [vmem:[%s9759_s1 + $0x54] ss:$8 sps:$4 sm:$0xff]   ;;  %v7879_v31 = vld [vmem:[%s9759_s1 + $0x50] ss:$8 sps:$4 sm:$0xff]   ;;  %v7906_v34 = vld [vmem:[%s9760_s0 + $0x60] sm:$0xff]  }
   0xc   :  { %217 = vmatprep.subr.bf16.mxu0 %v7707_v7  ;;  %1364 = vmatprep.subr.bf16.mxu1 %v7707_v7  ;;  %v7891_v33 = vld [vmem:[%s9760_s0 + $0x98] sm:$0xff]   ;;  %v7911_v35 = vld [vmem:[%s9760_s0 + $0xa0] sm:$0xff]   ;;  %v7922_v36 = vld [vmem:[%s9760_s0 + $0x68] sm:$0xff]  }
   0xd   :  { %v7927_v37 = vld [vmem:[%s9760_s0 + $0xa8] sm:$0xff]   ;;  %v7938_v38 = vld [vmem:[%s9760_s0 + $0x70] sm:$0xff]   ;;  %v7326_v40 = vld [vmem:[%s9760_s0] sm:$0xff]  }
   0xe   :  { %v7943_v39 = vld [vmem:[%s9760_s0 + $0xb0] sm:$0xff]   ;;  %v7957_v41 = vld [vmem:[%s9759_s1 + $0xc0] ss:$8 sps:$4 sm:$0xff]   ;;  %v7975_v44 = vld [vmem:[%s9759_s1 + $0xe4] ss:$8 sps:$4 sm:$0xff]  }
   0xf   :  { %218 = vmatpush1.bf16.msra.mxu0 %v7714_v8  ;;  %1365 = vmatpush1.bf16.msra.mxu1 %v7714_v8  ;;  %v7962_v42 = vld [vmem:[%s9759_s1 + $0xd4] ss:$8 sps:$4 sm:$0xff]   ;;  %v7970_v43 = vld [vmem:[%s9759_s1 + $0xd0] ss:$8 sps:$4 sm:$0xff]   ;;  %v7330_v45 = vld [vmem:[%s9760_s0 + $0x8] sm:$0xff]  }
  0x10   :  { %219 = vmatprep.subr.bf16.mxu0 %v7721_v9  ;;  %1366 = vmatprep.subr.bf16.mxu1 %v7721_v9  ;;  %v7993_v46 = vld [vmem:[%s9759_s1 + $0xe0] ss:$8 sps:$4 sm:$0xff]   ;;  %v7998_v47 = vld [vmem:[%s9759_s1 + $0xf4] ss:$8 sps:$4 sm:$0xff]   ;;  %v8010_v48 = vld [vmem:[%s9759_s1 + $0xf0] ss:$8 sps:$4 sm:$0xff]  }
  0x11   :  { %v8017_v49 = vld [vmem:[%s9759_s1 + $0x104] ss:$8 sps:$4 sm:$0xff]   ;;  %v7334_v50 = vld [vmem:[%s9760_s0 + $0x10] sm:$0xff]   ;;  %v8027_v51 = vld [vmem:[%s9759_s1 + $0x100] ss:$8 sps:$4 sm:$0xff]  }
  0x12   :  { %v8034_v52 = vld [vmem:[%s9759_s1 + $0x114] ss:$8 sps:$4 sm:$0xff]   ;;  %v8046_v53 = vld [vmem:[%s9759_s1 + $0x110] ss:$8 sps:$4 sm:$0xff]   ;;  %v8053_v54 = vld [vmem:[%s9759_s1 + $0x124] ss:$8 sps:$4 sm:$0xff]  }
  0x13   :  { %220 = vmatpush1.bf16.msra.mxu0 %v7728_v10  ;;  %1367 = vmatpush1.bf16.msra.mxu1 %v7728_v10  ;;  %v7338_v55 = vld [vmem:[%s9760_s0 + $0x18] sm:$0xff]   ;;  %v7342_v56 = vld [vmem:[%s9760_s0 + $0x20] sm:$0xff]   ;;  %v7346_v57 = vld [vmem:[%s9760_s0 + $0x28] sm:$0xff]  }
  0x14   :  { %221 = vmatprep.subr.bf16.mxu0 %v7735_v11  ;;  %1368 = vmatprep.subr.bf16.mxu1 %v7735_v11  ;;  %v7349_v58 = vld [vmem:[%s9760_s0 + $0x30] sm:$0xff]   ;;  %v8094_v59 = vld [vmem:[%s9760_s0 + $0xc0] sm:$0xff]  }
  0x15   :  { %v8099_v60 = vld [vmem:[%s9759_s1 + $0x120] ss:$8 sps:$4 sm:$0xff]   ;;  %v8104_v61 = vld [vmem:[%s9759_s1 + $0x134] ss:$8 sps:$4 sm:$0xff]   ;;  %v8115_v62 = vld [vmem:[%s9759_s1 + $0x130] ss:$8 sps:$4 sm:$0xff]  }
  0x16   :  { %v8122_v63 = vld [vmem:[%s9759_s1 + $0x144] ss:$8 sps:$4 sm:$0xff]  }
  0x17   :  { %222 = vmatpush1.bf16.msra.mxu0 %v7742_v12  ;;  %1369 = vmatpush1.bf16.msra.mxu1 %v7742_v12 }
  0x18   :  { %430 = vmatprep.subr.bf16.mxu0 %v7749_v13  ;;  %1461 = vmatprep.subr.bf16.mxu1 %v7749_v13 }
  0x1a   :  { %5842 = vmatmul.mubr.msk.bf16.vlgmr.msra.gmra.mrb[0].mxu0 %vm189_vm0, %v7754_v14  ;;  %6031 = vmatmul.mubr.msk.bf16.vlgmr.msra.gmra.mrb[0].mxu1 %vm189_vm0, %v7759_v15 }
  0x1b   :  { %431 = vmatpush1.bf16.msra.mxu0 %v7766_v16  ;;  %1462 = vmatpush1.bf16.msra.mxu1 %v7766_v16 }
  0x1c   :  { %253 = vmatprep.mubr.bf16.mxu0 %v9773_v1  ;;  %1400 = vmatprep.mubr.bf16.mxu1 %v9773_v1 }
  0x1d   :  { %432 = vmatprep.subr.bf16.mxu0 %v7773_v17  ;;  %1463 = vmatprep.subr.bf16.mxu1 %v7773_v17 }
  0x1f   :  { %433 = vmatpush1.bf16.msra.mxu0 %v7784_v18  ;;  %1464 = vmatpush1.bf16.msra.mxu1 %v7784_v18 }
  0x20   :  { %434 = vmatprep.subr.bf16.mxu0 %v7791_v19  ;;  %1465 = vmatprep.subr.bf16.mxu1 %v7791_v19 }
  0x22   :  { %5843 = vmatmul.mubr.msk.bf16.gmra.mrb[4].mxu0 %vm189_vm0, %v7796_v20  ;;  %6032 = vmatmul.mubr.msk.bf16.gmra.mrb[4].mxu1 %vm189_vm0, %v7803_v21 }
  0x23   :  { %263 = vmatprep.mubr.bf16.mxu0 %v9773_v1  ;;  %1410 = vmatprep.mubr.bf16.mxu1 %v9773_v1 }
  0x24   :  { %435 = vmatpush1.bf16.msra.mxu0 %v7812_v22  ;;  %1466 = vmatpush1.bf16.msra.mxu1 %v7812_v22 }
  0x25   :  { %436 = vmatprep.subr.bf16.mxu0 %v7817_v23  ;;  %1467 = vmatprep.subr.bf16.mxu1 %v7817_v23 }
  0x28   :  { %437 = vmatpush1.bf16.msra.mxu0 %v7835_v25  ;;  %1468 = vmatpush1.bf16.msra.mxu1 %v7835_v25 }
  0x29   :  { %438 = vmatprep.subr.bf16.mxu0 %v7842_v26  ;;  %1469 = vmatprep.subr.bf16.mxu1 %v7842_v26 }
  0x2a   :  { %5844 = vmatmul.mubr.msk.bf16.gmra.mrb[8].mxu0 %vm189_vm0, %v7828_v24  ;;  %6033 = vmatmul.mubr.msk.bf16.gmra.mrb[8].mxu1 %vm189_vm0, %v7847_v27 }
  0x2b   :  { %273 = vmatprep.mubr.bf16.mxu0 %v9773_v1  ;;  %1420 = vmatprep.mubr.bf16.mxu1 %v9773_v1 }
  0x2c   :  { %439 = vmatpush1.bf16.msra.mxu0 %v7854_v28  ;;  %1470 = vmatpush1.bf16.msra.mxu1 %v7854_v28 }
  0x2d   :  { %440 = vmatprep.subr.bf16.mxu0 %v7861_v29  ;;  %1471 = vmatprep.subr.bf16.mxu1 %v7861_v29 }
  0x30   :  { %441 = vmatpush1.bf16.msra.mxu0 %v7879_v31  ;;  %1472 = vmatpush1.bf16.msra.mxu1 %v7879_v31 }
  0x31   :  { %677 = vmatprep.subr.bf16.mxu0 %v7886_v32  ;;  %1564 = vmatprep.subr.bf16.mxu1 %v7886_v32 }
  0x32   :  { %5845 = vmatmul.mubr.msk.bf16.gmra.mrb[12].mxu0 %vm189_vm0, %v7872_v30  ;;  %6034 = vmatmul.mubr.msk.bf16.gmra.mrb[12].mxu1 %vm189_vm0, %v7891_v33 }
  0x33   :  { %283 = vmatprep.mubr.bf16.mxu0 %v9773_v1  ;;  %1430 = vmatprep.mubr.bf16.mxu1 %v9773_v1 }
  0x3a   :  { %5846 = vmatmul.mubr.msk.bf16.gmra.mrb[16].mxu0 %vm189_vm0, %v7906_v34  ;;  %6035 = vmatmul.mubr.msk.bf16.gmra.mrb[16].mxu1 %vm189_vm0, %v7911_v35 }
  0x3b   :  { %293 = vmatprep.mubr.bf16.mxu0 %v9773_v1  ;;  %1440 = vmatprep.mubr.bf16.mxu1 %v9773_v1 }
  0x42   :  { %5847 = vmatmul.mubr.msk.bf16.gmra.mrb[20].mxu0 %vm189_vm0, %v7922_v36  ;;  %6036 = vmatmul.mubr.msk.bf16.gmra.mrb[20].mxu1 %vm189_vm0, %v7927_v37 }
  0x43   :  { %303 = vmatprep.mubr.bf16.mxu0 %v9773_v1  ;;  %1450 = vmatprep.mubr.bf16.mxu1 %v9773_v1 }
  0x4a   :  { %5848 = vmatmul.mubr.msk.bf16.gmra.mrb[24].mxu0 %vm189_vm0, %v7938_v38  ;;  %6037 = vmatmul.mubr.msk.bf16.gmra.mrb[24].mxu1 %vm189_vm0, %v7943_v39 }
  0x4b   :  { %462 = vmatprep.mubr.bf16.mxu0 %v9773_v1  ;;  %1493 = vmatprep.mubr.bf16.mxu1 %v9773_v1 }
  0x52   :  { %5868 = vmatmul.mubr.msk.bf16.vlgmr.msra.gmra.mrb[0].mxu0 %vm189_vm0, %v7326_v40  ;;  %6038 = vmatmul.mubr.msk.bf16.vlgmr.msra.gmra.mrb[0].mxu1 %vm189_vm0, %v7754_v14  ;;  %v8129_v14 = vld [vmem:[%s9760_s0 + $0xc8] sm:$0xff]  }
  0x53   :  { %678 = vmatpush1.bf16.msra.mxu0 %v7957_v41  ;;  %1565 = vmatpush1.bf16.msra.mxu1 %v7957_v41  ;;  %v8202_v40 = vld [vmem:[%s9759_s1 + $0x184] ss:$8 sps:$4 sm:$0xff]  }
  0x54   :  { %472 = vmatprep.mubr.bf16.mxu0 %v9773_v1  ;;  %1503 = vmatprep.mubr.bf16.mxu1 %v9773_v1  ;;  %9812 = vst [vmem:[#allocation7_spill] sm:$0xff] %v8202_v40 }
  0x55   :  { %679 = vmatprep.subr.bf16.mxu0 %v7962_v42  ;;  %1566 = vmatprep.subr.bf16.mxu1 %v7962_v42 }
  0x57   :  { %680 = vmatpush1.bf16.msra.mxu0 %v7970_v43  ;;  %1567 = vmatpush1.bf16.msra.mxu1 %v7970_v43 }
  0x58   :  { %681 = vmatprep.subr.bf16.mxu0 %v7975_v44  ;;  %1568 = vmatprep.subr.bf16.mxu1 %v7975_v44 }
  0x5a   :  { %5869 = vmatmul.mubr.msk.bf16.gmra.mrb[4].mxu0 %vm189_vm0, %v7330_v45  ;;  %6039 = vmatmul.mubr.msk.bf16.gmra.mrb[4].mxu1 %vm189_vm0, %v7796_v20  ;;  %v8143_v20 = vld [vmem:[%s9759_s1 + $0x154] ss:$8 sps:$4 sm:$0xff]  }
  0x5b   :  { %482 = vmatprep.mubr.bf16.mxu0 %v9773_v1  ;;  %1513 = vmatprep.mubr.bf16.mxu1 %v9773_v1  ;;  %v8207_v45 = vld [vmem:[%s9760_s0 + $0xd8] sm:$0xff]  }
  0x5c   :  { %682 = vmatpush1.bf16.msra.mxu0 %v7993_v46  ;;  %1569 = vmatpush1.bf16.msra.mxu1 %v7993_v46 }
  0x5d   :  { %683 = vmatprep.subr.bf16.mxu0 %v7998_v47  ;;  %1570 = vmatprep.subr.bf16.mxu1 %v7998_v47 }
  0x60   :  { %684 = vmatpush1.bf16.msra.mxu0 %v8010_v48  ;;  %1571 = vmatpush1.bf16.msra.mxu1 %v8010_v48 }
  0x61   :  { %685 = vmatprep.subr.bf16.mxu0 %v8017_v49  ;;  %1572 = vmatprep.subr.bf16.mxu1 %v8017_v49 }
  0x62   :  { %5870 = vmatmul.mubr.msk.bf16.gmra.mrb[8].mxu0 %vm189_vm0, %v7334_v50  ;;  %6040 = vmatmul.mubr.msk.bf16.gmra.mrb[8].mxu1 %vm189_vm0, %v7828_v24  ;;  %v8156_v24 = vld [vmem:[%s9759_s1 + $0x150] ss:$8 sps:$4 sm:$0xff]   ;;  %v8222_v50 = vld [vmem:[%s9760_s0 + $0xe0] sm:$0xff]  }
  0x63   :  { %492 = vmatprep.mubr.bf16.mxu0 %v9773_v1  ;;  %1523 = vmatprep.mubr.bf16.mxu1 %v9773_v1  ;;  %9807 = vst [vmem:[#allocation2_spill] sm:$0xff] %v8156_v24 }
  0x64   :  { %686 = vmatpush1.bf16.msra.mxu0 %v8027_v51  ;;  %1573 = vmatpush1.bf16.msra.mxu1 %v8027_v51 }
  0x65   :  { %687 = vmatprep.subr.bf16.mxu0 %v8034_v52  ;;  %1574 = vmatprep.subr.bf16.mxu1 %v8034_v52 }
  0x68   :  { %688 = vmatpush1.bf16.msra.mxu0 %v8046_v53  ;;  %1575 = vmatpush1.bf16.msra.mxu1 %v8046_v53 }
  0x69   :  { %952 = vmatprep.subr.bf16.mxu0 %v8053_v54  ;;  %1695 = vmatprep.subr.bf16.mxu1 %v8053_v54 }
  0x6a   :  { %5871 = vmatmul.mubr.msk.bf16.gmra.mrb[12].mxu0 %vm189_vm0, %v7338_v55  ;;  %6041 = vmatmul.mubr.msk.bf16.gmra.mrb[12].mxu1 %vm189_vm0, %v7872_v30  ;;  %v8168_v30 = vld [vmem:[%s9760_s0 + $0xd0] sm:$0xff]   ;;  %v8233_v55 = vld [vmem:[%s9760_s0 + $0xe8] sm:$0xff]  }
  0x6b   :  { %502 = vmatprep.mubr.bf16.mxu0 %v9773_v1  ;;  %1533 = vmatprep.mubr.bf16.mxu1 %v9773_v1 }
  0x72   :  { %5872 = vmatmul.mubr.msk.bf16.gmra.mrb[16].mxu0 %vm189_vm0, %v7342_v56  ;;  %6042 = vmatmul.mubr.msk.bf16.gmra.mrb[16].mxu1 %vm189_vm0, %v7906_v34  ;;  %v8175_v34 = vld [vmem:[%s9759_s1 + $0x160] ss:$8 sps:$4 sm:$0xff]   ;;  %v8244_v56 = vld [vmem:[%s9760_s0 + $0xf0] sm:$0xff]  }
  0x73   :  { %512 = vmatprep.mubr.bf16.mxu0 %v9773_v1  ;;  %1543 = vmatprep.mubr.bf16.mxu1 %v9773_v1  ;;  %9809 = vst [vmem:[#allocation4_spill] sm:$0xff] %v8175_v34 }
  0x7a   :  { %5873 = vmatmul.mubr.msk.bf16.gmra.mrb[20].mxu0 %vm189_vm0, %v7346_v57  ;;  %6043 = vmatmul.mubr.msk.bf16.gmra.mrb[20].mxu1 %vm189_vm0, %v7922_v36  ;;  %v8182_v36 = vld [vmem:[%s9759_s1 + $0x174] ss:$8 sps:$4 sm:$0xff]   ;;  %v8255_v57 = vld [vmem:[%s9760_s0 + $0x8] sm:$0xff]  }
  0x7b   :  { %522 = vmatprep.mubr.bf16.mxu0 %v9773_v1  ;;  %1553 = vmatprep.mubr.bf16.mxu1 %v9773_v1  ;;  %9810 = vst [vmem:[#allocation5_spill] sm:$0xff] %v8182_v36 }
  0x82   :  { %5874 = vmatmul.mubr.msk.bf16.gmra.mrb[24].mxu0 %vm189_vm0, %v7349_v58  ;;  %6044 = vmatmul.mubr.msk.bf16.gmra.mrb[24].mxu1 %vm189_vm0, %v7938_v38  ;;  %v8195_v38 = vld [vmem:[%s9759_s1 + $0x170] ss:$8 sps:$4 sm:$0xff]   ;;  %v8260_v58 = vld [vmem:[%s9759_s1 + $0x180] ss:$8 sps:$4 sm:$0xff]  }
  0x83   :  { %709 = vmatprep.mubr.bf16.mxu0 %v9773_v1  ;;  %1596 = vmatprep.mubr.bf16.mxu1 %v9773_v1  ;;  %9811 = vst [vmem:[#allocation6_spill] sm:$0xff] %v8195_v38  ;;  %9813 = vst [vmem:[#allocation8_spill] sm:$0xff] %v8260_v58 }
  0x8a   :  { %5920 = vmatmul.mubr.msk.bf16.vlgmr.msra.gmra.mrb[0].mxu0 %vm189_vm0, %v7759_v15  ;;  %6045 = vmatmul.mubr.msk.bf16.vlgmr.msra.gmra.mrb[0].mxu1 %vm189_vm0, %v8094_v59  ;;  %v8138_v15 = vld [vmem:[%s9759_s1 + $0x140] ss:$8 sps:$4 sm:$0xff]  }
  0x8b   :  { %953 = vmatpush1.bf16.msra.mxu0 %v8099_v60  ;;  %1696 = vmatpush1.bf16.msra.mxu1 %v8099_v60 }
  0x8c   :  { %719 = vmatprep.mubr.bf16.mxu0 %v9773_v1  ;;  %1606 = vmatprep.mubr.bf16.mxu1 %v9773_v1 }
  0x8d   :  { %954 = vmatprep.subr.bf16.mxu0 %v8104_v61  ;;  %1697 = vmatprep.subr.bf16.mxu1 %v8104_v61 }
  0x8f   :  { %955 = vmatpush1.bf16.msra.mxu0 %v8115_v62  ;;  %1698 = vmatpush1.bf16.msra.mxu1 %v8115_v62 }
  0x90   :  { %956 = vmatprep.subr.bf16.mxu0 %v8122_v63  ;;  %1699 = vmatprep.subr.bf16.mxu1 %v8122_v63 }
  0x92   :  { %5921 = vmatmul.mubr.msk.bf16.gmra.mrb[4].mxu0 %vm189_vm0, %v7803_v21  ;;  %6046 = vmatmul.mubr.msk.bf16.gmra.mrb[4].mxu1 %vm189_vm0, %v8129_v14  ;;  %v8163_v21 = vld [vmem:[%s9759_s1 + $0x164] ss:$8 sps:$4 sm:$0xff]  }
  0x93   :  { %729 = vmatprep.mubr.bf16.mxu0 %v9773_v1  ;;  %1616 = vmatprep.mubr.bf16.mxu1 %v9773_v1  ;;  %9808 = vst [vmem:[#allocation3_spill] sm:$0xff] %v8163_v21 }
  0x94   :  { %957 = vmatpush1.bf16.msra.mxu0 %v8138_v15  ;;  %1700 = vmatpush1.bf16.msra.mxu1 %v8138_v15 }
  0x95   :  { %958 = vmatprep.subr.bf16.mxu0 %v8143_v20  ;;  %1701 = vmatprep.subr.bf16.mxu1 %v8143_v20 }
  0x98   :  { %959 = vmatpush1.bf16.msra.mxu0 %v8156_v24  ;;  %1702 = vmatpush1.bf16.msra.mxu1 %v8156_v24  ;;  %v8426_v24 = vld [vmem:[%s9760_s0 + $0x50] sm:$0xff]  }
  0x99   :  { %960 = vmatprep.subr.bf16.mxu0 %v8163_v21  ;;  %1703 = vmatprep.subr.bf16.mxu1 %v8163_v21  ;;  %v8329_v21 = vld [vmem:[%s9760_s0 + $0x18] sm:$0xff]  }
  0x9a   :  { %5922 = vmatmul.mubr.msk.bf16.gmra.mrb[8].mxu0 %vm189_vm0, %v7847_v27  ;;  %6047 = vmatmul.mubr.msk.bf16.gmra.mrb[8].mxu1 %vm189_vm0, %v8168_v30 }
  0x9b   :  { %739 = vmatprep.mubr.bf16.mxu0 %v9773_v1  ;;  %1626 = vmatprep.mubr.bf16.mxu1 %v9773_v1 }
  0x9c   :  { %961 = vmatpush1.bf16.msra.mxu0 %v8175_v34  ;;  %1704 = vmatpush1.bf16.msra.mxu1 %v8175_v34  ;;  %v8299_v34 = vld [vmem:[%s9759_s1 + $0x1a0] ss:$8 sps:$4 sm:$0xff]  }
  0x9d   :  { %962 = vmatprep.subr.bf16.mxu0 %v8182_v36  ;;  %1705 = vmatprep.subr.bf16.mxu1 %v8182_v36  ;;  %v8283_v36 = vld [vmem:[%s9759_s1 + $0x1a4] ss:$8 sps:$4 sm:$0xff]   ;;  %9818 = vst [vmem:[#allocation12_spill] sm:$0xff] %v8299_v34 }
  0x9e   :  { %9817 = vst [vmem:[#allocation11_spill] sm:$0xff] %v8283_v36 }
  0xa0   :  { %963 = vmatpush1.bf16.msra.mxu0 %v8195_v38  ;;  %1706 = vmatpush1.bf16.msra.mxu1 %v8195_v38  ;;  %v9816_v38 = vmov 0  }
  0xa1   :  { %1227 = vmatprep.subr.bf16.mxu0 %v8202_v40  ;;  %1897 = vmatprep.subr.bf16.mxu1 %v8202_v40  ;;  %v8265_v40 = vld [vmem:[%s9759_s1 + $0x194] ss:$8 sps:$4 sm:$0xff]  }
  0xa2   :  { %5923 = vmatmul.mubr.msk.bf16.gmra.mrb[12].mxu0 %vm189_vm0, %v7891_v33  ;;  %6048 = vmatmul.mubr.msk.bf16.gmra.mrb[12].mxu1 %vm189_vm0, %v8207_v45  ;;  %9814 = vst [vmem:[#allocation9_spill] sm:$0xff] %v8265_v40 }
  0xa3   :  { %749 = vmatprep.mubr.bf16.mxu0 %v9773_v1  ;;  %1636 = vmatprep.mubr.bf16.mxu1 %v9773_v1 }
  0xaa   :  { %5924 = vmatmul.mubr.msk.bf16.gmra.mrb[16].mxu0 %vm189_vm0, %v7911_v35  ;;  %6049 = vmatmul.mubr.msk.bf16.gmra.mrb[16].mxu1 %vm189_vm0, %v8222_v50 }
  0xab   :  { %759 = vmatprep.mubr.bf16.mxu0 %v9773_v1  ;;  %1646 = vmatprep.mubr.bf16.mxu1 %v9773_v1 }
  0xb2   :  { %5925 = vmatmul.mubr.msk.bf16.gmra.mrb[20].mxu0 %vm189_vm0, %v7927_v37  ;;  %6050 = vmatmul.mubr.msk.bf16.gmra.mrb[20].mxu1 %vm189_vm0, %v8233_v55 }
  0xb3   :  { %769 = vmatprep.mubr.bf16.mxu0 %v9773_v1  ;;  %1656 = vmatprep.mubr.bf16.mxu1 %v9773_v1 }
  0xba   :  { %5926 = vmatmul.mubr.msk.bf16.gmra.mrb[24].mxu0 %vm189_vm0, %v7943_v39  ;;  %6051 = vmatmul.mubr.msk.bf16.gmra.mrb[24].mxu1 %vm189_vm0, %v8244_v56 }
  0xbb   :  { %984 = vmatprep.mubr.bf16.mxu0 %v9773_v1  ;;  %1727 = vmatprep.mubr.bf16.mxu1 %v9773_v1  ;;  %v8276_v1 = vld [vmem:[%s9759_s1 + $0x190] ss:$8 sps:$4 sm:$0xff]  }
  0xbc   :  { %9815 = vst [vmem:[#allocation10_spill] sm:$0xff] %v8276_v1 }
  0xc2   :  { %5972 = vmatmul.mubr.msk.bf16.vlgmr.msra.gmra.mrb[0].mxu0 %vm189_vm0, %v8094_v59  ;;  %6052 = vmatmul.mubr.msk.bf16.vlgmr.msra.gmra.mrb[0].mxu1 %vm189_vm0, %v8255_v57 }
  0xc3   :  { %1228 = vmatpush1.bf16.msra.mxu0 %v8260_v58  ;;  %1898 = vmatpush1.bf16.msra.mxu1 %v8260_v58  ;;  %v8290_v58 = vld [vmem:[%s9760_s0 + $0x10] sm:$0xff]  }
  0xc4   :  { %994 = vmatprep.mubr.bf16.mxu0 %v9816_v38  ;;  %1737 = vmatprep.mubr.bf16.mxu1 %v9816_v38 }
  0xc5   :  { %1229 = vmatprep.subr.bf16.mxu0 %v8265_v40  ;;  %1899 = vmatprep.subr.bf16.mxu1 %v8265_v40  ;;  %v8304_v40 = vld [vmem:[%s9759_s1 + $0x1b4] ss:$8 sps:$4 sm:$0xff]  }
  0xc6   :  { %9819 = vst [vmem:[#allocation13_spill] sm:$0xff] %v8304_v40 }
  0xc7   :  { %1230 = vmatpush1.bf16.msra.mxu0 %v8276_v1  ;;  %1900 = vmatpush1.bf16.msra.mxu1 %v8276_v1  ;;  %v8324_v1 = vld [vmem:[%s9759_s1 + $0x1c4] ss:$8 sps:$4 sm:$0xff]  }
  0xc8   :  { %1231 = vmatprep.subr.bf16.mxu0 %v8283_v36  ;;  %1901 = vmatprep.subr.bf16.mxu1 %v8283_v36  ;;  %v8317_v36 = vld [vmem:[%s9759_s1 + $0x1b0] ss:$8 sps:$4 sm:$0xff]   ;;  %9821 = vst [vmem:[#allocation15_spill] sm:$0xff] %v8324_v1 }
  0xc9   :  { %9820 = vst [vmem:[#allocation14_spill] sm:$0xff] %v8317_v36 }
  0xca   :  { %5973 = vmatmul.mubr.msk.bf16.gmra.mrb[4].mxu0 %vm189_vm0, %v8129_v14  ;;  %6053 = vmatmul.mubr.msk.bf16.gmra.mrb[4].mxu1 %vm189_vm0, %v8290_v58 }
  0xcb   :  { %1004 = vmatprep.mubr.bf16.mxu0 %v9816_v38  ;;  %1747 = vmatprep.mubr.bf16.mxu1 %v9816_v38 }
  0xcc   :  { %1232 = vmatpush1.bf16.msra.mxu0 %v8299_v34  ;;  %1902 = vmatpush1.bf16.msra.mxu1 %v8299_v34  ;;  %v8336_v34 = vld [vmem:[%s9759_s1 + $0x1c0] ss:$8 sps:$4 sm:$0xff]  }
  0xcd   :  { %1233 = vmatprep.subr.bf16.mxu0 %v8304_v40  ;;  %1903 = vmatprep.subr.bf16.mxu1 %v8304_v40  ;;  %9822 = vst [vmem:[#allocation16_spill] sm:$0xff] %v8336_v34  ;;  %v8343_v40 = vld [vmem:[%s9759_s1 + $0x1d4] ss:$8 sps:$4 sm:$0xff]  }
  0xce   :  { %9823 = vst [vmem:[#allocation17_spill] sm:$0xff] %v8343_v40 }
  0xd0   :  { %1234 = vmatpush1.bf16.msra.mxu0 %v8317_v36  ;;  %1904 = vmatpush1.bf16.msra.mxu1 %v8317_v36  ;;  %v8363_v36 = vld [vmem:[%s9760_s0 + $0x20] sm:$0xff]  }
  0xd1   :  { %1235 = vmatprep.subr.bf16.mxu0 %v8324_v1  ;;  %1905 = vmatprep.subr.bf16.mxu1 %v8324_v1  ;;  %v8356_v1 = vld [vmem:[%s9759_s1 + $0x1d0] ss:$8 sps:$4 sm:$0xff]  }
  0xd2   :  { %5974 = vmatmul.mubr.msk.bf16.gmra.mrb[8].mxu0 %vm189_vm0, %v8168_v30  ;;  %6054 = vmatmul.mubr.msk.bf16.gmra.mrb[8].mxu1 %vm189_vm0, %v8329_v21  ;;  %9824 = vst [vmem:[#allocation18_spill] sm:$0xff] %v8356_v1 }
  0xd3   :  { %1014 = vmatprep.mubr.bf16.mxu0 %v9816_v38  ;;  %1757 = vmatprep.mubr.bf16.mxu1 %v9816_v38 }
  0xd4   :  { %1236 = vmatpush1.bf16.msra.mxu0 %v8336_v34  ;;  %1906 = vmatpush1.bf16.msra.mxu1 %v8336_v34  ;;  %v8411_v34 = vld [vmem:[%s9760_s0 + $0x48] sm:$0xff]  }
  0xd5   :  { %1237 = vmatprep.subr.bf16.mxu0 %v8343_v40  ;;  %1907 = vmatprep.subr.bf16.mxu1 %v8343_v40  ;;  %v8378_v40 = vld [vmem:[%s9760_s0 + $0x28] sm:$0xff]  }
  0xd8   :  { %1238 = vmatpush1.bf16.msra.mxu0 %v8356_v1  ;;  %1908 = vmatpush1.bf16.msra.mxu1 %v8356_v1  ;;  %v8400_v1 = vld [vmem:[%s9760_s0 + $0x38] sm:$0xff]  }
  0xd9   :  { %2111 = vmatprep.subr.bf16.mxu0 %v7665_v0  ;;  %2781 = vmatprep.subr.bf16.mxu1 %v7665_v0  ;;  %v8389_v0 = vld [vmem:[%s9760_s0 + $0x30] sm:$0xff]  }
  0xda   :  { %5975 = vmatmul.mubr.msk.bf16.gmra.mrb[12].mxu0 %vm189_vm0, %v8207_v45  ;;  %6055 = vmatmul.mubr.msk.bf16.gmra.mrb[12].mxu1 %vm189_vm0, %v8363_v36 }
  0xdb   :  { %1024 = vmatprep.mubr.bf16.mxu0 %v9816_v38  ;;  %1767 = vmatprep.mubr.bf16.mxu1 %v9816_v38 }
  0xe2   :  { %5976 = vmatmul.mubr.msk.bf16.gmra.mrb[16].mxu0 %vm189_vm0, %v8222_v50  ;;  %6056 = vmatmul.mubr.msk.bf16.gmra.mrb[16].mxu1 %vm189_vm0, %v8378_v40 }
  0xe3   :  { %1034 = vmatprep.mubr.bf16.mxu0 %v9816_v38  ;;  %1777 = vmatprep.mubr.bf16.mxu1 %v9816_v38 }
  0xea   :  { %5977 = vmatmul.mubr.msk.bf16.gmra.mrb[20].mxu0 %vm189_vm0, %v8233_v55  ;;  %6057 = vmatmul.mubr.msk.bf16.gmra.mrb[20].mxu1 %vm189_vm0, %v8389_v0 }
  0xeb   :  { %1044 = vmatprep.mubr.bf16.mxu0 %v9816_v38  ;;  %1787 = vmatprep.mubr.bf16.mxu1 %v9816_v38 }
  0xf2   :  { %5978 = vmatmul.mubr.msk.bf16.gmra.mrb[24].mxu0 %vm189_vm0, %v8244_v56  ;;  %6058 = vmatmul.mubr.msk.bf16.gmra.mrb[24].mxu1 %vm189_vm0, %v8400_v1 }
  0xf3   :  { %1259 = vmatprep.mubr.bf16.mxu0 %v9816_v38  ;;  %1929 = vmatprep.mubr.bf16.mxu1 %v9816_v38 }
  0xfa   :  { %6024 = vmatmul.mubr.msk.bf16.vlgmr.msra.gmra.mrb[0].mxu0 %vm189_vm0, %v8255_v57  ;;  %6080 = vmatmul.mubr.msk.bf16.vlgmr.msra.gmra.mrb[0].mxu1 %vm189_vm0, %v8411_v34 }
  0xfb   :  { %2112 = vmatpush1.bf16.msra.mxu0 %v7672_v2  ;;  %2782 = vmatpush1.bf16.msra.mxu1 %v7672_v2  ;;  %v8445_v2 = vld [vmem:[%s9760_s0 + $0x58] sm:$0xff]  }
  0xfc   :  { %1269 = vmatprep.mubr.bf16.mxu0 %v9816_v38  ;;  %1939 = vmatprep.mubr.bf16.mxu1 %v9816_v38 }
  0xfd   :  { %2113 = vmatprep.subr.bf16.mxu0 %v7679_v3  ;;  %2783 = vmatprep.subr.bf16.mxu1 %v7679_v3  ;;  %v8464_v3 = vld [vmem:[%s9760_s0 + $0x60] sm:$0xff]  }
  0xff   :  { %2114 = vmatpush1.bf16.msra.mxu0 %v7686_v4  ;;  %2784 = vmatpush1.bf16.msra.mxu1 %v7686_v4  ;;  %v8479_v4 = vld [vmem:[%s9760_s0 + $0x68] sm:$0xff]  }
 0x100   :  { %2115 = vmatprep.subr.bf16.mxu0 %v7693_v5  ;;  %2785 = vmatprep.subr.bf16.mxu1 %v7693_v5  ;;  %v8490_v5 = vld [vmem:[%s9760_s0 + $0x70] sm:$0xff]  }
 0x102   :  { %6025 = vmatmul.mubr.msk.bf16.gmra.mrb[4].mxu0 %vm189_vm0, %v8290_v58  ;;  %6081 = vmatmul.mubr.msk.bf16.gmra.mrb[4].mxu1 %vm189_vm0, %v8426_v24 }
 0x103   :  { %1279 = vmatprep.mubr.bf16.mxu0 %v9816_v38  ;;  %1949 = vmatprep.mubr.bf16.mxu1 %v9816_v38 }
 0x104   :  { %2116 = vmatpush1.bf16.msra.mxu0 %v7700_v6  ;;  %2786 = vmatpush1.bf16.msra.mxu1 %v7700_v6  ;;  %v8501_v6 = vld [vmem:[%s9760_s0 + $0x78] sm:$0xff]  }
 0x105   :  { %2117 = vmatprep.subr.bf16.mxu0 %v7707_v7  ;;  %2787 = vmatprep.subr.bf16.mxu1 %v7707_v7  ;;  %v7596_v7 = vld [vmem:[%s9760_s0 + $0x80] sm:$0xff]  }
 0x108   :  { %2118 = vmatpush1.bf16.msra.mxu0 %v7714_v8  ;;  %2788 = vmatpush1.bf16.msra.mxu1 %v7714_v8  ;;  %v7597_v8 = vld [vmem:[%s9760_s0 + $0x88] sm:$0xff]  }
 0x109   :  { %2119 = vmatprep.subr.bf16.mxu0 %v7721_v9  ;;  %2789 = vmatprep.subr.bf16.mxu1 %v7721_v9  ;;  %v9825_v9 = vld [vmem:[#allocation2_spill] sm:$0xff] }
 0x10a   :  { %6026 = vmatmul.mubr.msk.bf16.gmra.mrb[8].mxu0 %vm189_vm0, %v8329_v21  ;;  %6082 = vmatmul.mubr.msk.bf16.gmra.mrb[8].mxu1 %vm189_vm0, %v8445_v2 }
 0x10b   :  { %1289 = vmatprep.mubr.bf16.mxu0 %v9816_v38  ;;  %1959 = vmatprep.mubr.bf16.mxu1 %v9816_v38 }
 0x10c   :  { %2120 = vmatpush1.bf16.msra.mxu0 %v7728_v10  ;;  %2790 = vmatpush1.bf16.msra.mxu1 %v7728_v10  ;;  %v9826_v10 = vld [vmem:[#allocation3_spill] sm:$0xff] }
 0x10d   :  { %2121 = vmatprep.subr.bf16.mxu0 %v7735_v11  ;;  %2791 = vmatprep.subr.bf16.mxu1 %v7735_v11  ;;  %v9827_v11 = vld [vmem:[#allocation4_spill] sm:$0xff] }
 0x110   :  { %2122 = vmatpush1.bf16.msra.mxu0 %v7742_v12  ;;  %2792 = vmatpush1.bf16.msra.mxu1 %v7742_v12  ;;  %v9828_v12 = vld [vmem:[#allocation5_spill] sm:$0xff] }
 0x111   :  { %2214 = vmatprep.subr.bf16.mxu0 %v7749_v13  ;;  %2884 = vmatprep.subr.bf16.mxu1 %v7749_v13  ;;  %v9829_v13 = vld [vmem:[#allocation6_spill] sm:$0xff] }
 0x112   :  { %6027 = vmatmul.mubr.msk.bf16.gmra.mrb[12].mxu0 %vm189_vm0, %v8363_v36  ;;  %6083 = vmatmul.mubr.msk.bf16.gmra.mrb[12].mxu1 %vm189_vm0, %v8464_v3 }
 0x113   :  { %1299 = vmatprep.mubr.bf16.mxu0 %v9816_v38  ;;  %1969 = vmatprep.mubr.bf16.mxu1 %v9816_v38 }
 0x11a   :  { %6028 = vmatmul.mubr.msk.bf16.gmra.mrb[16].mxu0 %vm189_vm0, %v8378_v40  ;;  %6084 = vmatmul.mubr.msk.bf16.gmra.mrb[16].mxu1 %vm189_vm0, %v8479_v4 }
 0x11b   :  { %1309 = vmatprep.mubr.bf16.mxu0 %v9816_v38  ;;  %1979 = vmatprep.mubr.bf16.mxu1 %v9816_v38 }
 0x122   :  { %6029 = vmatmul.mubr.msk.bf16.gmra.mrb[20].mxu0 %vm189_vm0, %v8389_v0  ;;  %6085 = vmatmul.mubr.msk.bf16.gmra.mrb[20].mxu1 %vm189_vm0, %v8490_v5 }
 0x123   :  { %1319 = vmatprep.mubr.bf16.mxu0 %v9816_v38  ;;  %1989 = vmatprep.mubr.bf16.mxu1 %v9816_v38 }
 0x12a   :  { %6030 = vmatmul.mubr.msk.bf16.gmra.mrb[24].mxu0 %vm189_vm0, %v8400_v1  ;;  %6086 = vmatmul.mubr.msk.bf16.gmra.mrb[24].mxu1 %vm189_vm0, %v8501_v6 }
 0x12b   :  { %2143 = vmatprep.mubr.bf16.mxu0 %v9816_v38  ;;  %2813 = vmatprep.mubr.bf16.mxu1 %v9816_v38 }
 0x132   :  { %6088 = vmatmul.mubr.msk.bf16.vlgmr.msra.gmra.mrb[28].mxu0 %vm189_vm0, %v8094_v59  ;;  %6144 = vmatmul.mubr.msk.bf16.vlgmr.msra.gmra.mrb[28].mxu1 %vm189_vm0, %v8255_v57 }
 0x133   :  { %2215 = vmatpush1.bf16.msra.mxu0 %v7766_v16  ;;  %2885 = vmatpush1.bf16.msra.mxu1 %v7766_v16  ;;  %v9830_v16 = vld [vmem:[#allocation7_spill] sm:$0xff] }
 0x134   :  { %2153 = vmatprep.mubr.bf16.mxu0 %v9816_v38  ;;  %2823 = vmatprep.mubr.bf16.mxu1 %v9816_v38 }
 0x135   :  { %2216 = vmatprep.subr.bf16.mxu0 %v7773_v17  ;;  %2886 = vmatprep.subr.bf16.mxu1 %v7773_v17 }
 0x137   :  { %2217 = vmatpush1.bf16.msra.mxu0 %v7784_v18  ;;  %2887 = vmatpush1.bf16.msra.mxu1 %v7784_v18 }
 0x138   :  { %2218 = vmatprep.subr.bf16.mxu0 %v7791_v19  ;;  %2888 = vmatprep.subr.bf16.mxu1 %v7791_v19 }
 0x13a   :  { %6089 = vmatmul.mubr.msk.bf16.gmra.mrb[32].mxu0 %vm189_vm0, %v8129_v14  ;;  %6145 = vmatmul.mubr.msk.bf16.gmra.mrb[32].mxu1 %vm189_vm0, %v8290_v58 }
 0x13b   :  { %2163 = vmatprep.mubr.bf16.mxu0 %v9816_v38  ;;  %2833 = vmatprep.mubr.bf16.mxu1 %v9816_v38 }
 0x13c   :  { %2219 = vmatpush1.bf16.msra.mxu0 %v7812_v22  ;;  %2889 = vmatpush1.bf16.msra.mxu1 %v7812_v22 }
 0x13d   :  { %2220 = vmatprep.subr.bf16.mxu0 %v7817_v23  ;;  %2890 = vmatprep.subr.bf16.mxu1 %v7817_v23 }
 0x140   :  { %2221 = vmatpush1.bf16.msra.mxu0 %v7835_v25  ;;  %2891 = vmatpush1.bf16.msra.mxu1 %v7835_v25 }
 0x141   :  { %2222 = vmatprep.subr.bf16.mxu0 %v7842_v26  ;;  %2892 = vmatprep.subr.bf16.mxu1 %v7842_v26 }
 0x142   :  { %6090 = vmatmul.mubr.msk.bf16.gmra.mrb[36].mxu0 %vm189_vm0, %v8168_v30  ;;  %6146 = vmatmul.mubr.msk.bf16.gmra.mrb[36].mxu1 %vm189_vm0, %v8329_v21 }
 0x143   :  { %2173 = vmatprep.mubr.bf16.mxu0 %v9816_v38  ;;  %2843 = vmatprep.mubr.bf16.mxu1 %v9816_v38 }
 0x144   :  { %2223 = vmatpush1.bf16.msra.mxu0 %v7854_v28  ;;  %2893 = vmatpush1.bf16.msra.mxu1 %v7854_v28  ;;  %v8708_v28 = vld [vmem:[%s9762_s2] ss:$0 sm:$0xff] }
 0x145   :  { %2224 = vmatprep.subr.bf16.mxu0 %v7861_v29  ;;  %2894 = vmatprep.subr.bf16.mxu1 %v7861_v29 }
 0x148   :  { %2225 = vmatpush1.bf16.msra.mxu0 %v7879_v31  ;;  %2895 = vmatpush1.bf16.msra.mxu1 %v7879_v31 }
 0x149   :  { %2317 = vmatprep.subr.bf16.mxu0 %v7886_v32  ;;  %2987 = vmatprep.subr.bf16.mxu1 %v7886_v32 }
 0x14a   :  { %6091 = vmatmul.mubr.msk.bf16.gmra.mrb[40].mxu0 %vm189_vm0, %v8207_v45  ;;  %6147 = vmatmul.mubr.msk.bf16.gmra.mrb[40].mxu1 %vm189_vm0, %v8363_v36 }
 0x14b   :  { %2183 = vmatprep.mubr.bf16.mxu0 %v9816_v38  ;;  %2853 = vmatprep.mubr.bf16.mxu1 %v9816_v38 }
 0x152   :  { %6092 = vmatmul.mubr.msk.bf16.gmra.mrb[44].mxu0 %vm189_vm0, %v8222_v50  ;;  %6148 = vmatmul.mubr.msk.bf16.gmra.mrb[44].mxu1 %vm189_vm0, %v8378_v40 }
 0x153   :  { %2193 = vmatprep.mubr.bf16.mxu0 %v9816_v38  ;;  %2863 = vmatprep.mubr.bf16.mxu1 %v9816_v38 }
 0x15a   :  { %6093 = vmatmul.mubr.msk.bf16.gmra.mrb[48].mxu0 %vm189_vm0, %v8233_v55  ;;  %6149 = vmatmul.mubr.msk.bf16.gmra.mrb[48].mxu1 %vm189_vm0, %v8389_v0 }
 0x15b   :  { %2203 = vmatprep.mubr.bf16.mxu0 %v9816_v38  ;;  %2873 = vmatprep.mubr.bf16.mxu1 %v9816_v38 }
 0x162   :  { %6094 = vmatmul.mubr.msk.bf16.gmra.mrb[52].mxu0 %vm189_vm0, %v8244_v56  ;;  %6150 = vmatmul.mubr.msk.bf16.gmra.mrb[52].mxu1 %vm189_vm0, %v8400_v1 }
 0x163   :  { %2246 = vmatprep.mubr.bf16.mxu0 %v9816_v38  ;;  %2916 = vmatprep.mubr.bf16.mxu1 %v9816_v38 }
 0x16a   :  { %6095 = vmatmul.mubr.msk.bf16.vlgmr.msra.gmra.mrb[28].mxu0 %vm189_vm0, %v7596_v7  ;;  %6151 = vmatmul.mubr.msk.bf16.vlgmr.msra.gmra.mrb[28].mxu1 %vm189_vm0, %v8094_v59 }
 0x16b   :  { %2318 = vmatpush1.bf16.msra.mxu0 %v7957_v41  ;;  %2988 = vmatpush1.bf16.msra.mxu1 %v7957_v41 }
 0x16c   :  { %2256 = vmatprep.mubr.bf16.mxu0 %v9816_v38  ;;  %2926 = vmatprep.mubr.bf16.mxu1 %v9816_v38 }
 0x16d   :  { %2319 = vmatprep.subr.bf16.mxu0 %v7962_v42  ;;  %2989 = vmatprep.subr.bf16.mxu1 %v7962_v42 }
 0x16f   :  { %2320 = vmatpush1.bf16.msra.mxu0 %v7970_v43  ;;  %2990 = vmatpush1.bf16.msra.mxu1 %v7970_v43 }
 0x170   :  { %2321 = vmatprep.subr.bf16.mxu0 %v7975_v44  ;;  %2991 = vmatprep.subr.bf16.mxu1 %v7975_v44 }
 0x172   :  { %6096 = vmatmul.mubr.msk.bf16.gmra.mrb[32].mxu0 %vm189_vm0, %v7597_v8  ;;  %6152 = vmatmul.mubr.msk.bf16.gmra.mrb[32].mxu1 %vm189_vm0, %v8129_v14  ;;  %v9833_v8 = vld [vmem:[#allocation10_spill] sm:$0xff] }
 0x173   :  { %2266 = vmatprep.mubr.bf16.mxu0 %v9816_v38  ;;  %2936 = vmatprep.mubr.bf16.mxu1 %v9816_v38 }
 0x174   :  { %2322 = vmatpush1.bf16.msra.mxu0 %v7993_v46  ;;  %2992 = vmatpush1.bf16.msra.mxu1 %v7993_v46 }
 0x175   :  { %2323 = vmatprep.subr.bf16.mxu0 %v7998_v47  ;;  %2993 = vmatprep.subr.bf16.mxu1 %v7998_v47 }
 0x178   :  { %2324 = vmatpush1.bf16.msra.mxu0 %v8010_v48  ;;  %2994 = vmatpush1.bf16.msra.mxu1 %v8010_v48 }
 0x179   :  { %2325 = vmatprep.subr.bf16.mxu0 %v8017_v49  ;;  %2995 = vmatprep.subr.bf16.mxu1 %v8017_v49 }
 0x17a   :  { %6097 = vmatmul.mubr.msk.bf16.gmra.mrb[36].mxu0 %vm189_vm0, %v7847_v27  ;;  %6153 = vmatmul.mubr.msk.bf16.gmra.mrb[36].mxu1 %vm189_vm0, %v8168_v30 }
 0x17b   :  { %2276 = vmatprep.mubr.bf16.mxu0 %v9816_v38  ;;  %2946 = vmatprep.mubr.bf16.mxu1 %v9816_v38 }
 0x17c   :  { %2326 = vmatpush1.bf16.msra.mxu0 %v8027_v51  ;;  %2996 = vmatpush1.bf16.msra.mxu1 %v8027_v51 }
 0x17d   :  { %2327 = vmatprep.subr.bf16.mxu0 %v8034_v52  ;;  %2997 = vmatprep.subr.bf16.mxu1 %v8034_v52 }
 0x180   :  { %2328 = vmatpush1.bf16.msra.mxu0 %v8046_v53  ;;  %2998 = vmatpush1.bf16.msra.mxu1 %v8046_v53 }
 0x181   :  { %2448 = vmatprep.subr.bf16.mxu0 %v8053_v54  ;;  %3118 = vmatprep.subr.bf16.mxu1 %v8053_v54 }
 0x182   :  { %6098 = vmatmul.mubr.msk.bf16.gmra.mrb[40].mxu0 %vm189_vm0, %v7891_v33  ;;  %6154 = vmatmul.mubr.msk.bf16.gmra.mrb[40].mxu1 %vm189_vm0, %v8207_v45 }
 0x183   :  { %2286 = vmatprep.mubr.bf16.mxu0 %v9816_v38  ;;  %2956 = vmatprep.mubr.bf16.mxu1 %v9816_v38 }
 0x18a   :  { %6099 = vmatmul.mubr.msk.bf16.gmra.mrb[44].mxu0 %vm189_vm0, %v7911_v35  ;;  %6155 = vmatmul.mubr.msk.bf16.gmra.mrb[44].mxu1 %vm189_vm0, %v8222_v50  ;;  %v8740_v50 = vld [vmem:[%s9760_s0 + $0x90] sm:$0xff]  }
 0x18b   :  { %2296 = vmatprep.mubr.bf16.mxu0 %v9816_v38  ;;  %2966 = vmatprep.mubr.bf16.mxu1 %v9816_v38 }
 0x192   :  { %6100 = vmatmul.mubr.msk.bf16.gmra.mrb[48].mxu0 %vm189_vm0, %v7927_v37  ;;  %6156 = vmatmul.mubr.msk.bf16.gmra.mrb[48].mxu1 %vm189_vm0, %v8233_v55 }
 0x193   :  { %2306 = vmatprep.mubr.bf16.mxu0 %v9816_v38  ;;  %2976 = vmatprep.mubr.bf16.mxu1 %v9816_v38 }
 0x19a   :  { %6101 = vmatmul.mubr.msk.bf16.gmra.mrb[52].mxu0 %vm189_vm0, %v7943_v39  ;;  %6157 = vmatmul.mubr.msk.bf16.gmra.mrb[52].mxu1 %vm189_vm0, %v8244_v56 }
 0x19b   :  { %2349 = vmatprep.mubr.bf16.mxu0 %v9816_v38  ;;  %3019 = vmatprep.mubr.bf16.mxu1 %v9816_v38 }
 0x1a2   :  { %6102 = vmatmul.mubr.msk.bf16.vlgmr.msra.gmra.mrb[28].mxu0 %vm189_vm0, %v8255_v57  ;;  %6158 = vmatmul.mubr.msk.bf16.vlgmr.msra.gmra.mrb[28].mxu1 %vm189_vm0, %v8411_v34 }
 0x1a3   :  { %2449 = vmatpush1.bf16.msra.mxu0 %v8099_v60  ;;  %3119 = vmatpush1.bf16.msra.mxu1 %v8099_v60 }
 0x1a4   :  { %2359 = vmatprep.mubr.bf16.mxu0 %v9816_v38  ;;  %3029 = vmatprep.mubr.bf16.mxu1 %v9816_v38 }
 0x1a5   :  { %2450 = vmatprep.subr.bf16.mxu0 %v8104_v61  ;;  %3120 = vmatprep.subr.bf16.mxu1 %v8104_v61 }
 0x1a7   :  { %2451 = vmatpush1.bf16.msra.mxu0 %v8115_v62  ;;  %3121 = vmatpush1.bf16.msra.mxu1 %v8115_v62 }
 0x1a8   :  { %2452 = vmatprep.subr.bf16.mxu0 %v8122_v63  ;;  %3122 = vmatprep.subr.bf16.mxu1 %v8122_v63 }
 0x1aa   :  { %6103 = vmatmul.mubr.msk.bf16.gmra.mrb[32].mxu0 %vm189_vm0, %v8290_v58  ;;  %6159 = vmatmul.mubr.msk.bf16.gmra.mrb[32].mxu1 %vm189_vm0, %v8426_v24 }
 0x1ab   :  { %2369 = vmatprep.mubr.bf16.mxu0 %v9816_v38  ;;  %3039 = vmatprep.mubr.bf16.mxu1 %v9816_v38 }
 0x1ac   :  { %2453 = vmatpush1.bf16.msra.mxu0 %v8138_v15  ;;  %3123 = vmatpush1.bf16.msra.mxu1 %v8138_v15 }
 0x1ad   :  { %2454 = vmatprep.subr.bf16.mxu0 %v8143_v20  ;;  %3124 = vmatprep.subr.bf16.mxu1 %v8143_v20  ;;  %v9831_v20 = vld [vmem:[#allocation8_spill] sm:$0xff] }
 0x1b0   :  { %2455 = vmatpush1.bf16.msra.mxu0 %v9825_v9  ;;  %3125 = vmatpush1.bf16.msra.mxu1 %v9825_v9 }
 0x1b1   :  { %2456 = vmatprep.subr.bf16.mxu0 %v9826_v10  ;;  %3126 = vmatprep.subr.bf16.mxu1 %v9826_v10 }
 0x1b2   :  { %6104 = vmatmul.mubr.msk.bf16.gmra.mrb[36].mxu0 %vm189_vm0, %v8329_v21  ;;  %6160 = vmatmul.mubr.msk.bf16.gmra.mrb[36].mxu1 %vm189_vm0, %v8445_v2 }
 0x1b3   :  { %2379 = vmatprep.mubr.bf16.mxu0 %v9816_v38  ;;  %3049 = vmatprep.mubr.bf16.mxu1 %v9816_v38 }
 0x1b4   :  { %2457 = vmatpush1.bf16.msra.mxu0 %v9827_v11  ;;  %3127 = vmatpush1.bf16.msra.mxu1 %v9827_v11  ;;  %v9834_v11 = vld [vmem:[#allocation11_spill] sm:$0xff] }
 0x1b5   :  { %2458 = vmatprep.subr.bf16.mxu0 %v9828_v12  ;;  %3128 = vmatprep.subr.bf16.mxu1 %v9828_v12 }
 0x1b8   :  { %2459 = vmatpush1.bf16.msra.mxu0 %v9829_v13  ;;  %3129 = vmatpush1.bf16.msra.mxu1 %v9829_v13 }
 0x1b9   :  { %2650 = vmatprep.subr.bf16.mxu0 %v9830_v16  ;;  %3320 = vmatprep.subr.bf16.mxu1 %v9830_v16 }
 0x1ba   :  { %6105 = vmatmul.mubr.msk.bf16.gmra.mrb[40].mxu0 %vm189_vm0, %v8363_v36  ;;  %6161 = vmatmul.mubr.msk.bf16.gmra.mrb[40].mxu1 %vm189_vm0, %v8464_v3 }
 0x1bb   :  { %2389 = vmatprep.mubr.bf16.mxu0 %v9816_v38  ;;  %3059 = vmatprep.mubr.bf16.mxu1 %v9816_v38 }
 0x1c2   :  { %6106 = vmatmul.mubr.msk.bf16.gmra.mrb[44].mxu0 %vm189_vm0, %v8378_v40  ;;  %6162 = vmatmul.mubr.msk.bf16.gmra.mrb[44].mxu1 %vm189_vm0, %v8479_v4  ;;  %v9832_v40 = vld [vmem:[#allocation9_spill] sm:$0xff] }
 0x1c3   :  { %2399 = vmatprep.mubr.bf16.mxu0 %v9816_v38  ;;  %3069 = vmatprep.mubr.bf16.mxu1 %v9816_v38 }
 0x1ca   :  { %6107 = vmatmul.mubr.msk.bf16.gmra.mrb[48].mxu0 %vm189_vm0, %v8389_v0  ;;  %6163 = vmatmul.mubr.msk.bf16.gmra.mrb[48].mxu1 %vm189_vm0, %v8490_v5 }
 0x1cb   :  { %2409 = vmatprep.mubr.bf16.mxu0 %v9816_v38  ;;  %3079 = vmatprep.mubr.bf16.mxu1 %v9816_v38 }
 0x1cd   :  { %v1261_v17 = vpop.f32.mrb[0].mxu0  ;;  %v1931_v18 = vpop.f32.mrb[0].mxu1 }
 0x1ce   :  { %v1263_v19 = vpop.f32.mrb[1].mxu0  ;;  %v1933_v22 = vpop.f32.mrb[1].mxu1 }
 0x1cf   :  { %v2028_v23 = vmax.f32 %v1261_v17, %v1263_v19  ;;  %v2042_v25 = vmax.f32 %v1931_v18, %v1933_v22  ;;  %v1265_v26 = vpop.f32.mrb[2].mxu0  ;;  %v1935_v27 = vpop.f32.mrb[2].mxu1  ;;  %v9835_v22 = vld [vmem:[#allocation12_spill] sm:$0xff] }
 0x1d0   :  { %v1267_v29 = vpop.f32.mrb[3].mxu0  ;;  %v1937_v31 = vpop.f32.mrb[3].mxu1 }
 0x1d1   :  { %v2056_v32 = vmax.f32 %v2028_v23, %v2042_v25  ;;  %v2029_v33 = vmax.f32 %v1265_v26, %v1267_v29  ;;  %v2043_v35 = vmax.f32 %v1935_v27, %v1937_v31  ;;  %v9836_v27 = vld [vmem:[#allocation13_spill] sm:$0xff] }
 0x1d2   :  { %6108 = vmatmul.mubr.msk.bf16.gmra.mrb[52].mxu0 %vm189_vm0, %v8400_v1  ;;  %6164 = vmatmul.mubr.msk.bf16.gmra.mrb[52].mxu1 %vm189_vm0, %v8501_v6  ;;  %v8721_v1 = vld [vmem:[%s9760_s0 + $0x88] sm:$0xff]   ;;  %v8763_v31 = vld [vmem:[%s9760_s0 + $0x98] sm:$0xff]  }
 0x1d3   :  { %v2076_v37 = vadd.f32 %v8708_v28, %v2056_v32  ;;  %v2057_v39 = vmax.f32 %v2029_v33, %v2043_v35  ;;  %2480 = vmatprep.mubr.bf16.mxu0 %v9816_v38  ;;  %3150 = vmatprep.mubr.bf16.mxu1 %v9816_v38 }
 0x1d5   :  { %v2077_v41 = vadd.f32 %v8708_v28, %v2057_v39  ;;  %v1271_v42 = vpop.f32.mrb[4].mxu0  ;;  %v1941_v43 = vpop.f32.mrb[4].mxu1  ;;  %v2090_v47 = vmax.f32 %v2076_v37, 0.0 }
 0x1d6   :  { %v1273_v44 = vpop.f32.mrb[5].mxu0  ;;  %v1943_v46 = vpop.f32.mrb[5].mxu1 }
 0x1d7   :  { %v2091_v48 = vmax.f32 %v2077_v41, 0.0  ;;  %v2030_v49 = vmax.f32 %v1271_v42, %v1273_v44  ;;  %v2044_v51 = vmax.f32 %v1941_v43, %v1943_v46  ;;  %v1275_v52 = vpop.f32.mrb[6].mxu0  ;;  %v1945_v53 = vpop.f32.mrb[6].mxu1  ;;  %v9837_v44 = vld [vmem:[#allocation14_spill] sm:$0xff] }
 0x1d8   :  { %v1277_v54 = vpop.f32.mrb[7].mxu0  ;;  %v1947_v59 = vpop.f32.mrb[7].mxu1 }
 0x1d9   :  { %v8723_v60 = vpack.c.bf16 %v2091_v48, %v2090_v47  ;;  %v2058_v61 = vmax.f32 %v2030_v49, %v2044_v51  ;;  %v2031_v62 = vmax.f32 %v1275_v52, %v1277_v54  ;;  %v2045_v63 = vmax.f32 %v1945_v53, %v1947_v59  ;;  %v9838_v51 = vld [vmem:[#allocation15_spill] sm:$0xff]  ;;  %v9839_v54 = vld [vmem:[#allocation16_spill] sm:$0xff] }
 0x1da   :  { %6109 = vmatmul.mubr.msk.bf16.vlgmr.msra.gmra.mrb[28].mxu0 %vm189_vm0, %v8411_v34  ;;  %6165 = vmatmul.mubr.msk.bf16.vlgmr.msra.gmra.mrb[28].mxu1 %vm189_vm0, %v8721_v1 }
 0x1db   :  { %v2078_v14 = vadd.f32 %v8708_v28, %v2058_v61  ;;  %v2059_v15 = vmax.f32 %v2031_v62, %v2045_v63  ;;  %2651 = vmatpush1.bf16.msra.mxu0 %v9831_v20  ;;  %3321 = vmatpush1.bf16.msra.mxu1 %v9831_v20 }
 0x1dc   :  { %2490 = vmatprep.mubr.bf16.mxu0 %v9816_v38  ;;  %3160 = vmatprep.mubr.bf16.mxu1 %v9816_v38 }
 0x1dd   :  { %v2079_v21 = vadd.f32 %v8708_v28, %v2059_v15  ;;  %v1281_v30 = vpop.f32.mrb[8].mxu0  ;;  %v1951_v36 = vpop.f32.mrb[8].mxu1  ;;  %2652 = vmatprep.subr.bf16.mxu0 %v9832_v40  ;;  %3322 = vmatprep.subr.bf16.mxu1 %v9832_v40  ;;  %v2092_v55 = vmax.f32 %v2078_v14, 0.0  ;;  %v8785_v15 = vld [vmem:[%s9760_s0 + $0xa0] sm:$0xff]  }
 0x1de   :  { %v1283_v34 = vpop.f32.mrb[9].mxu0  ;;  %v1953_v45 = vpop.f32.mrb[9].mxu1 }
 0x1df   :  { %v2093_v56 = vmax.f32 %v2079_v21, 0.0  ;;  %v2032_v57 = vmax.f32 %v1281_v30, %v1283_v34  ;;  %v2046_v58 = vmax.f32 %v1951_v36, %v1953_v45  ;;  %v1285_v0 = vpop.f32.mrb[10].mxu0  ;;  %v1955_v7 = vpop.f32.mrb[10].mxu1  ;;  %2653 = vmatpush1.bf16.msra.mxu0 %v9833_v8  ;;  %3323 = vmatpush1.bf16.msra.mxu1 %v9833_v8 }
 0x1e0   :  { %v1287_v9 = vpop.f32.mrb[11].mxu0  ;;  %v1957_v10 = vpop.f32.mrb[11].mxu1  ;;  %2654 = vmatprep.subr.bf16.mxu0 %v9834_v11  ;;  %3324 = vmatprep.subr.bf16.mxu1 %v9834_v11 }
 0x1e1   :  { %v8746_v12 = vpack.c.bf16 %v2093_v56, %v2092_v55  ;;  %v2060_v13 = vmax.f32 %v2032_v57, %v2046_v58  ;;  %v2033_v16 = vmax.f32 %v1285_v0, %v1287_v9  ;;  %v2047_v17 = vmax.f32 %v1955_v7, %v1957_v10  ;;  %v9841_v56 = vld [vmem:[#allocation18_spill] sm:$0xff] }
 0x1e2   :  { %6110 = vmatmul.mubr.msk.bf16.gmra.mrb[32].mxu0 %vm189_vm0, %v8426_v24  ;;  %6166 = vmatmul.mubr.msk.bf16.gmra.mrb[32].mxu1 %vm189_vm0, %v8740_v50  ;;  %v7421_v57 = vld [vmem:[%s9761_s3 + $0x84] ss:$8 sps:$4 sm:$0xff]  }
 0x1e3   :  { %v2080_v18 = vadd.f32 %v8708_v28, %v2060_v13  ;;  %v2061_v19 = vmax.f32 %v2033_v16, %v2047_v17  ;;  %2500 = vmatprep.mubr.bf16.mxu0 %v9816_v38  ;;  %3170 = vmatprep.mubr.bf16.mxu1 %v9816_v38 }
 0x1e4   :  { %2655 = vmatpush1.bf16.msra.mxu0 %v9835_v22  ;;  %3325 = vmatpush1.bf16.msra.mxu1 %v9835_v22 }
 0x1e5   :  { %v2081_v23 = vadd.f32 %v8708_v28, %v2061_v19  ;;  %v1291_v25 = vpop.f32.mrb[12].mxu0  ;;  %v1961_v26 = vpop.f32.mrb[12].mxu1  ;;  %2656 = vmatprep.subr.bf16.mxu0 %v9836_v27  ;;  %3326 = vmatprep.subr.bf16.mxu1 %v9836_v27  ;;  %v2094_v32 = vmax.f32 %v2080_v18, 0.0 }
 0x1e6   :  { %v1293_v24 = vpop.f32.mrb[13].mxu0  ;;  %v1963_v29 = vpop.f32.mrb[13].mxu1 }
 0x1e7   :  { %v2095_v33 = vmax.f32 %v2081_v23, 0.0  ;;  %v2034_v35 = vmax.f32 %v1291_v25, %v1293_v24  ;;  %v2048_v37 = vmax.f32 %v1961_v26, %v1963_v29  ;;  %v1295_v39 = vpop.f32.mrb[14].mxu0  ;;  %v1965_v41 = vpop.f32.mrb[14].mxu1 }
 0x1e8   :  { %v1297_v42 = vpop.f32.mrb[15].mxu0  ;;  %v1967_v43 = vpop.f32.mrb[15].mxu1  ;;  %2657 = vmatpush1.bf16.msra.mxu0 %v9837_v44  ;;  %3327 = vmatpush1.bf16.msra.mxu1 %v9837_v44 }
 0x1e9   :  { %v8767_v46 = vpack.c.bf16 %v2095_v33, %v2094_v32  ;;  %v2062_v47 = vmax.f32 %v2034_v35, %v2048_v37  ;;  %v2035_v48 = vmax.f32 %v1295_v39, %v1297_v42  ;;  %v2049_v49 = vmax.f32 %v1965_v41, %v1967_v43  ;;  %2658 = vmatprep.subr.bf16.mxu0 %v9838_v51 }
 0x1ea   :  { %6111 = vmatmul.mubr.msk.bf16.gmra.mrb[36].mxu0 %vm189_vm0, %v8445_v2  ;;  %6167 = vmatmul.mubr.msk.bf16.gmra.mrb[36].mxu1 %vm189_vm0, %v8763_v31  ;;  %v9840_v2 = vld [vmem:[#allocation17_spill] sm:$0xff] }
 0x1eb   :  { %v2082_v52 = vadd.f32 %v8708_v28, %v2062_v47  ;;  %v2063_v53 = vmax.f32 %v2035_v48, %v2049_v49  ;;  %2510 = vmatprep.mubr.bf16.mxu0 %v9816_v38  ;;  %3180 = vmatprep.mubr.bf16.mxu1 %v9816_v38 }
 0x1ec   :  { %3328 = vmatprep.subr.bf16.mxu1 %v9838_v51  ;;  %2659 = vmatpush1.bf16.msra.mxu0 %v9839_v54 }
 0x1ed   :  { %v2083_v59 = vadd.f32 %v8708_v28, %v2063_v53  ;;  %v1301_v61 = vpop.f32.mrb[16].mxu0  ;;  %v1971_v62 = vpop.f32.mrb[16].mxu1  ;;  %3329 = vmatpush1.bf16.msra.mxu1 %v9839_v54  ;;  %2660 = vmatprep.subr.bf16.mxu0 %v9840_v2  ;;  %v2096_v20 = vmax.f32 %v2082_v52, 0.0 }
 0x1ee   :  { %v1303_v63 = vpop.f32.mrb[17].mxu0  ;;  %v1973_v14 = vpop.f32.mrb[17].mxu1  ;;  %3330 = vmatprep.subr.bf16.mxu1 %v9840_v2 }
 0x1ef   :  { %v2097_v21 = vmax.f32 %v2083_v59, 0.0  ;;  %v2036_v30 = vmax.f32 %v1301_v61, %v1303_v63  ;;  %v2050_v36 = vmax.f32 %v1971_v62, %v1973_v14  ;;  %v1305_v40 = vpop.f32.mrb[18].mxu0  ;;  %v1975_v34 = vpop.f32.mrb[18].mxu1 }
 0x1f0   :  { %v1307_v45 = vpop.f32.mrb[19].mxu0  ;;  %v1977_v55 = vpop.f32.mrb[19].mxu1  ;;  %2661 = vmatpush1.bf16.msra.mxu0 %v9841_v56 }
 0x1f1   :  { %v8792_v58 = vpack.c.bf16 %v2097_v21, %v2096_v20  ;;  %v2064_v0 = vmax.f32 %v2036_v30, %v2050_v36  ;;  %v2037_v7 = vmax.f32 %v1305_v40, %v1307_v45  ;;  %v2051_v8 = vmax.f32 %v1975_v34, %v1977_v55  ;;  %3331 = vmatpush1.bf16.msra.mxu1 %v9841_v56  ;;  %v8836_v40 = vld [vmem:[%s9760_s0 + $0xb8] sm:$0xff]   ;;  %v7415_v55 = vld [vmem:[%s9760_s0 + $0xc8] sm:$0xff]  }
 0x1f2   :  { %6112 = vmatmul.mubr.msk.bf16.gmra.mrb[40].mxu0 %vm189_vm0, %v8464_v3  ;;  %6168 = vmatmul.mubr.msk.bf16.gmra.mrb[40].mxu1 %vm189_vm0, %v8785_v15  ;;  %v8806_v3 = vld [vmem:[%s9760_s0 + $0xa8] sm:$0xff]  }
 0x1f3   :  { %v2084_v9 = vadd.f32 %v8708_v28, %v2064_v0  ;;  %v2065_v10 = vmax.f32 %v2037_v7, %v2051_v8  ;;  %2520 = vmatprep.mubr.bf16.mxu0 %v9816_v38  ;;  %3190 = vmatprep.mubr.bf16.mxu1 %v9816_v38  ;;  %v7419_v56 = vld [vmem:[%s9761_s3 + $0x80] ss:$8 sps:$4 sm:$0xff]   ;;  %v7428_v0 = vld [vmem:[%s9761_s3 + $0xa4] ss:$8 sps:$4 sm:$0xff]   ;;  %v7431_v8 = vld [vmem:[%s9761_s3 + $0xb4] ss:$8 sps:$4 sm:$0xff]  }
 0x1f4   :  { %4488 = vmatprep.subr.bf16.mxu1 %v7421_v57  ;;  %3642 = vmatprep.subr.bf16.mxu0 %v7421_v57  ;;  %v7424_v57 = vld [vmem:[%s9761_s3 + $0x94] ss:$8 sps:$4 sm:$0xff]   ;;  %v7426_v7 = vld [vmem:[%s9761_s3 + $0xa0] ss:$8 sps:$4 sm:$0xff]  }
 0x1f5   :  { %v2085_v11 = vadd.f32 %v8708_v28, %v2065_v10  ;;  %v1311_v13 = vpop.f32.mrb[20].mxu0  ;;  %v1981_v16 = vpop.f32.mrb[20].mxu1  ;;  %v2098_v19 = vmax.f32 %v2084_v9, 0.0  ;;  %v7429_v9 = vld [vmem:[%s9761_s3 + $0xb0] ss:$8 sps:$4 sm:$0xff]  }
 0x1f6   :  { %v1313_v17 = vpop.f32.mrb[21].mxu0  ;;  %v1983_v18 = vpop.f32.mrb[21].mxu1  ;;  %v7435_v10 = vld [vmem:[%s9761_s3 + $0xc4] ss:$8 sps:$4 sm:$0xff]  }
 0x1f7   :  { %v2099_v22 = vmax.f32 %v2085_v11, 0.0  ;;  %v2038_v23 = vmax.f32 %v1311_v13, %v1313_v17  ;;  %v2052_v25 = vmax.f32 %v1981_v16, %v1983_v18  ;;  %v1315_v26 = vpop.f32.mrb[22].mxu0  ;;  %v1985_v27 = vpop.f32.mrb[22].mxu1  ;;  %v7433_v11 = vld [vmem:[%s9761_s3 + $0xc0] ss:$8 sps:$4 sm:$0xff]  }
 0x1f8   :  { %v1317_v24 = vpop.f32.mrb[23].mxu0  ;;  %v1987_v29 = vpop.f32.mrb[23].mxu1  ;;  %v7438_v13 = vld [vmem:[%s9761_s3 + $0xd4] ss:$8 sps:$4 sm:$0xff]   ;;  %v7436_v16 = vld [vmem:[%s9761_s3 + $0xd0] ss:$8 sps:$4 sm:$0xff]  }
 0x1f9   :  { %v8808_v32 = vpack.c.bf16 %v2099_v22, %v2098_v19  ;;  %v2066_v33 = vmax.f32 %v2038_v23, %v2052_v25  ;;  %v2039_v35 = vmax.f32 %v1315_v26, %v1317_v24  ;;  %v2053_v37 = vmax.f32 %v1985_v27, %v1987_v29  ;;  %v7442_v17 = vld [vmem:[%s9761_s3 + $0xe4] ss:$8 sps:$4 sm:$0xff]   ;;  %v7440_v18 = vld [vmem:[%s9761_s3 + $0xe0] ss:$8 sps:$4 sm:$0xff]   ;;  %v7445_v19 = vld [vmem:[%s9761_s3 + $0xf4] ss:$8 sps:$4 sm:$0xff]  }
 0x1fa   :  { %6113 = vmatmul.mubr.msk.bf16.gmra.mrb[44].mxu0 %vm189_vm0, %v8479_v4  ;;  %6169 = vmatmul.mubr.msk.bf16.gmra.mrb[44].mxu1 %vm189_vm0, %v8806_v3  ;;  %v8821_v4 = vld [vmem:[%s9760_s0 + $0xb0] sm:$0xff]   ;;  %v7448_v23 = vld [vmem:[%s9761_s3 + $0x4] ss:$8 sps:$4 sm:$0xff]   ;;  %v8953_v26 = vld [vmem:[%s9761_s3] ss:$8 sps:$4 sm:$0xff]  }
 0x1fb   :  { %v2086_v39 = vadd.f32 %v8708_v28, %v2066_v33  ;;  %v2067_v41 = vmax.f32 %v2039_v35, %v2053_v37  ;;  %2530 = vmatprep.mubr.bf16.mxu0 %v9816_v38  ;;  %3200 = vmatprep.mubr.bf16.mxu1 %v9816_v38  ;;  %v7443_v22 = vld [vmem:[%s9761_s3 + $0xf0] ss:$8 sps:$4 sm:$0xff]   ;;  %v8958_v27 = vld [vmem:[%s9761_s3 + $0x14] ss:$8 sps:$4 sm:$0xff]   ;;  %v8972_v29 = vld [vmem:[%s9761_s3 + $0x24] ss:$8 sps:$4 sm:$0xff]  }
 0x1fc   :  { %v7432_v25 = vld [vmem:[%s9760_s0 + $0xf0] sm:$0xff]   ;;  %v8978_v33 = vld [vmem:[%s9761_s3 + $0x20] ss:$8 sps:$4 sm:$0xff]  }
 0x1fd   :  { %v2087_v42 = vadd.f32 %v8708_v28, %v2067_v41  ;;  %v1321_v43 = vpop.f32.mrb[24].mxu0  ;;  %v1991_v44 = vpop.f32.mrb[24].mxu1  ;;  %v2100_v49 = vmax.f32 %v2086_v39, 0.0  ;;  %v8966_v24 = vld [vmem:[%s9761_s3 + $0x10] ss:$8 sps:$4 sm:$0xff]  }
 0x1fe   :  { %v1323_v47 = vpop.f32.mrb[25].mxu0  ;;  %v1993_v48 = vpop.f32.mrb[25].mxu1  ;;  %v8984_v35 = vld [vmem:[%s9761_s3 + $0x34] ss:$8 sps:$4 sm:$0xff]   ;;  %v8992_v37 = vld [vmem:[%s9761_s3 + $0x30] ss:$8 sps:$4 sm:$0xff]  }
 0x1ff   :  { %v2101_v51 = vmax.f32 %v2087_v42, 0.0  ;;  %v2040_v52 = vmax.f32 %v1321_v43, %v1323_v47  ;;  %v2054_v53 = vmax.f32 %v1991_v44, %v1993_v48  ;;  %v1325_v54 = vpop.f32.mrb[26].mxu0  ;;  %v1995_v59 = vpop.f32.mrb[26].mxu1  ;;  %v8998_v39 = vld [vmem:[%s9761_s3 + $0x44] ss:$8 sps:$4 sm:$0xff]  }
 0x200   :  { %v1327_v61 = vpop.f32.mrb[27].mxu0  ;;  %v1997_v62 = vpop.f32.mrb[27].mxu1  ;;  %v9004_v41 = vld [vmem:[%s9761_s3 + $0x40] ss:$8 sps:$4 sm:$0xff]   ;;  %v9015_v42 = vld [vmem:[%s9761_s3 + $0x54] ss:$8 sps:$4 sm:$0xff]  }
 0x201   :  { %v8823_v2 = vpack.c.bf16 %v2101_v51, %v2100_v49  ;;  %v2068_v63 = vmax.f32 %v2040_v52, %v2054_v53  ;;  %v2041_v14 = vmax.f32 %v1325_v54, %v1327_v61  ;;  %v2055_v20 = vmax.f32 %v1995_v59, %v1997_v62  ;;  %v9020_v43 = vld [vmem:[%s9761_s3 + $0x50] ss:$8 sps:$4 sm:$0xff]   ;;  %v9027_v44 = vld [vmem:[%s9761_s3 + $0x64] ss:$8 sps:$4 sm:$0xff]   ;;  %v9033_v47 = vld [vmem:[%s9761_s3 + $0x60] ss:$8 sps:$4 sm:$0xff]  }
 0x202   :  { %6114 = vmatmul.mubr.msk.bf16.gmra.mrb[48].mxu0 %vm189_vm0, %v8490_v5  ;;  %6170 = vmatmul.mubr.msk.bf16.gmra.mrb[48].mxu1 %vm189_vm0, %v8821_v4  ;;  %v9041_v48 = vld [vmem:[%s9761_s3 + $0x74] ss:$8 sps:$4 sm:$0xff]   ;;  %v9053_v49 = vld [vmem:[%s9761_s3 + $0x104] ss:$8 sps:$4 sm:$0xff]  }
 0x203   :  { %v2088_v21 = vadd.f32 %v8708_v28, %v2068_v63  ;;  %v2069_v30 = vmax.f32 %v2041_v14, %v2055_v20  ;;  %2540 = vmatprep.mubr.bf16.mxu0 %v9816_v38  ;;  %3210 = vmatprep.mubr.bf16.mxu1 %v9816_v38 }
 0x205   :  { %v2089_v36 = vadd.f32 %v8708_v28, %v2069_v30  ;;  %v2102_v34 = vmax.f32 %v2088_v21, 0.0 }
 0x207   :  { %v2103_v45 = vmax.f32 %v2089_v36, 0.0 }
 0x209   :  { %v8838_v5 = vpack.c.bf16 %v2103_v45, %v2102_v34 }
 0x20a   :  { %6115 = vmatmul.mubr.msk.bf16.gmra.mrb[52].mxu0 %vm189_vm0, %v8501_v6  ;;  %6171 = vmatmul.mubr.msk.bf16.gmra.mrb[52].mxu1 %vm189_vm0, %v8836_v40  ;;  %v7422_v6 = vld [vmem:[%s9761_s3 + $0x90] ss:$8 sps:$4 sm:$0xff]  }
 0x20b   :  { %2682 = vmatprep.mubr.bf16.mxu0 %v9816_v38  ;;  %3352 = vmatprep.mubr.bf16.mxu1 %v9816_v38 }
 0x212   :  { %6137 = vmatmul.mubr.msk.bf16.vlgmr.msra.gmra.mrb[28].mxu0 %vm189_vm0, %v8721_v1  ;;  %6193 = vmatmul.mubr.msk.bf16.vlgmr.msra.gmra.mrb[28].mxu1 %vm189_vm0, %v7415_v55  ;;  %v7416_v1 = vld [vmem:[%s9760_s0 + $0xd0] sm:$0xff]  }
 0x213   :  { %2692 = vmatprep.mubr.bf16.mxu0 %v9816_v38  ;;  %3362 = vmatprep.mubr.bf16.mxu1 %v9816_v38 }
 0x214   :  { %4489 = vmatpush1.bf16.msra.mxu1 %v7419_v56  ;;  %3643 = vmatpush1.bf16.msra.mxu0 %v7419_v56 }
 0x215   :  { %4490 = vmatprep.subr.bf16.mxu1 %v7424_v57  ;;  %3644 = vmatprep.subr.bf16.mxu0 %v7424_v57 }
 0x218   :  { %4491 = vmatpush1.bf16.msra.mxu1 %v7422_v6  ;;  %3645 = vmatpush1.bf16.msra.mxu0 %v7422_v6 }
 0x219   :  { %4492 = vmatprep.subr.bf16.mxu1 %v7428_v0  ;;  %3646 = vmatprep.subr.bf16.mxu0 %v7428_v0 }
 0x21a   :  { %6138 = vmatmul.mubr.msk.bf16.gmra.mrb[32].mxu0 %vm189_vm0, %v8740_v50  ;;  %6194 = vmatmul.mubr.msk.bf16.gmra.mrb[32].mxu1 %vm189_vm0, %v7416_v1  ;;  %v7417_v50 = vld [vmem:[%s9760_s0 + $0xd8] sm:$0xff]  }
 0x21b   :  { %2702 = vmatprep.mubr.bf16.mxu0 %v9816_v38  ;;  %3372 = vmatprep.mubr.bf16.mxu1 %v9816_v38 }
 0x21c   :  { %4493 = vmatpush1.bf16.msra.mxu1 %v7426_v7  ;;  %3647 = vmatpush1.bf16.msra.mxu0 %v7426_v7 }
 0x21d   :  { %4494 = vmatprep.subr.bf16.mxu1 %v7431_v8  ;;  %3648 = vmatprep.subr.bf16.mxu0 %v7431_v8 }
 0x220   :  { %4495 = vmatpush1.bf16.msra.mxu1 %v7429_v9  ;;  %3649 = vmatpush1.bf16.msra.mxu0 %v7429_v9 }
 0x221   :  { %4496 = vmatprep.subr.bf16.mxu1 %v7435_v10  ;;  %3650 = vmatprep.subr.bf16.mxu0 %v7435_v10 }
 0x222   :  { %6139 = vmatmul.mubr.msk.bf16.gmra.mrb[36].mxu0 %vm189_vm0, %v8763_v31  ;;  %6195 = vmatmul.mubr.msk.bf16.gmra.mrb[36].mxu1 %vm189_vm0, %v7417_v50  ;;  %v7418_v31 = vld [vmem:[%s9760_s0 + $0xe0] sm:$0xff]  }
 0x223   :  { %2712 = vmatprep.mubr.bf16.mxu0 %v9816_v38  ;;  %3382 = vmatprep.mubr.bf16.mxu1 %v9816_v38 }
 0x224   :  { %4497 = vmatpush1.bf16.msra.mxu1 %v7433_v11  ;;  %3651 = vmatpush1.bf16.msra.mxu0 %v7433_v11 }
 0x225   :  { %4498 = vmatprep.subr.bf16.mxu1 %v7438_v13  ;;  %3652 = vmatprep.subr.bf16.mxu0 %v7438_v13 }
 0x228   :  { %4499 = vmatpush1.bf16.msra.mxu1 %v7436_v16  ;;  %3653 = vmatpush1.bf16.msra.mxu0 %v7436_v16 }
 0x229   :  { %4500 = vmatprep.subr.bf16.mxu1 %v7442_v17  ;;  %3654 = vmatprep.subr.bf16.mxu0 %v7442_v17 }
 0x22a   :  { %6140 = vmatmul.mubr.msk.bf16.gmra.mrb[40].mxu0 %vm189_vm0, %v8785_v15  ;;  %6196 = vmatmul.mubr.msk.bf16.gmra.mrb[40].mxu1 %vm189_vm0, %v7418_v31  ;;  %v7425_v15 = vld [vmem:[%s9760_s0 + $0xe8] sm:$0xff]  }
 0x22b   :  { %2722 = vmatprep.mubr.bf16.mxu0 %v9816_v38  ;;  %3392 = vmatprep.mubr.bf16.mxu1 %v9816_v38 }
 0x22c   :  { %4501 = vmatpush1.bf16.msra.mxu1 %v7440_v18  ;;  %3655 = vmatpush1.bf16.msra.mxu0 %v7440_v18  ;;  %v9061_v18 = vld [vmem:[%s9761_s3 + $0x100] ss:$8 sps:$4 sm:$0xff]  }
 0x22d   :  { %4502 = vmatprep.subr.bf16.mxu1 %v7445_v19  ;;  %3656 = vmatprep.subr.bf16.mxu0 %v7445_v19 }
 0x230   :  { %4503 = vmatpush1.bf16.msra.mxu1 %v7443_v22  ;;  %3657 = vmatpush1.bf16.msra.mxu0 %v7443_v22 }
 0x231   :  { %4571 = vmatprep.subr.bf16.mxu1 %v7448_v23  ;;  %3805 = vmatprep.subr.bf16.mxu0 %v7448_v23  ;;  %v9067_v23 = vld [vmem:[%s9761_s3 + $0x114] ss:$8 sps:$4 sm:$0xff]  }
 0x232   :  { %6141 = vmatmul.mubr.msk.bf16.gmra.mrb[44].mxu0 %vm189_vm0, %v8806_v3  ;;  %6197 = vmatmul.mubr.msk.bf16.gmra.mrb[44].mxu1 %vm189_vm0, %v7425_v15  ;;  %v7439_v3 = vld [vmem:[%s9760_s0 + $0xf8] sm:$0xff]  }
 0x233   :  { %2732 = vmatprep.mubr.bf16.mxu0 %v9816_v38  ;;  %3402 = vmatprep.mubr.bf16.mxu1 %v9816_v38 }
 0x23a   :  { %6142 = vmatmul.mubr.msk.bf16.gmra.mrb[48].mxu0 %vm189_vm0, %v8821_v4  ;;  %6198 = vmatmul.mubr.msk.bf16.gmra.mrb[48].mxu1 %vm189_vm0, %v7432_v25  ;;  %v9046_v4 = vld [vmem:[%s9761_s3 + $0x70] ss:$8 sps:$4 sm:$0xff]  }
 0x23b   :  { %2742 = vmatprep.mubr.bf16.mxu0 %v9816_v38  ;;  %3412 = vmatprep.mubr.bf16.mxu1 %v9816_v38 }
 0x242   :  { %6143 = vmatmul.mubr.msk.bf16.gmra.mrb[52].mxu0 %vm189_vm0, %v8836_v40  ;;  %6199 = vmatmul.mubr.msk.bf16.gmra.mrb[52].mxu1 %vm189_vm0, %v7439_v3 }
 0x243   :  { %4520 = vmatprep.mubr.bf16.mxu1 %v9816_v38  ;;  %3674 = vmatprep.mubr.bf16.mxu0 %v9816_v38 }
 0x24a   :  { %4521 = vmatmul.mubr.bf16.vlgmr.msra.gmra.mrb[56].mxu1 %v8746_v12 }
 0x24b   :  { %4530 = vmatprep.mubr.bf16.mxu1 %v9816_v38  ;;  %4572 = vmatpush1.bf16.msra.mxu1 %v8953_v26 }
 0x24c   :  { %4573 = vmatprep.subr.bf16.mxu1 %v8958_v27 }
 0x24f   :  { %4574 = vmatpush1.bf16.msra.mxu1 %v8966_v24 }
 0x250   :  { %4575 = vmatprep.subr.bf16.mxu1 %v8972_v29 }
 0x252   :  { %4531 = vmatmul.mubr.bf16.gmra.mrb[60].mxu1 %v8767_v46 }
 0x253   :  { %4540 = vmatprep.mubr.bf16.mxu1 %v9816_v38  ;;  %4576 = vmatpush1.bf16.msra.mxu1 %v8978_v33 }
 0x254   :  { %4577 = vmatprep.subr.bf16.mxu1 %v8984_v35 }
 0x257   :  { %4578 = vmatpush1.bf16.msra.mxu1 %v8992_v37 }
 0x258   :  { %4579 = vmatprep.subr.bf16.mxu1 %v8998_v39 }
 0x25a   :  { %4541 = vmatmul.mubr.bf16.gmra.mrb[64].mxu1 %v8792_v58 }
 0x25b   :  { %4550 = vmatprep.mubr.bf16.mxu1 %v9816_v38  ;;  %4580 = vmatpush1.bf16.msra.mxu1 %v9004_v41 }
 0x25c   :  { %4581 = vmatprep.subr.bf16.mxu1 %v9015_v42 }
 0x25f   :  { %4582 = vmatpush1.bf16.msra.mxu1 %v9020_v43 }
 0x260   :  { %4583 = vmatprep.subr.bf16.mxu1 %v9027_v44 }
 0x262   :  { %4551 = vmatmul.mubr.bf16.gmra.mrb[68].mxu1 %v8808_v32 }
 0x263   :  { %4560 = vmatprep.mubr.bf16.mxu1 %v9816_v38  ;;  %4584 = vmatpush1.bf16.msra.mxu1 %v9033_v47 }
 0x264   :  { %4585 = vmatprep.subr.bf16.mxu1 %v9041_v48 }
 0x267   :  { %4586 = vmatpush1.bf16.msra.mxu1 %v9046_v4 }
 0x268   :  { %4654 = vmatprep.subr.bf16.mxu1 %v9053_v49 }
 0x26a   :  { %4561 = vmatmul.mubr.bf16.gmra.mrb[72].mxu1 %v8823_v2 }
 0x26b   :  { %4603 = vmatprep.mubr.bf16.mxu1 %v9816_v38 }
 0x2e5   :  { %v2684_v51 = vpop.f32.mrb[28].mxu0  ;;  %v3354_v52 = vpop.f32.mrb[28].mxu1 }
 0x2e6   :  { %v2686_v53 = vpop.f32.mrb[29].mxu0  ;;  %v3356_v54 = vpop.f32.mrb[29].mxu1 }
 0x2e7   :  { %v3451_v59 = vmax.f32 %v2684_v51, %v2686_v53  ;;  %v3465_v61 = vmax.f32 %v3354_v52, %v3356_v54  ;;  %v2688_v62 = vpop.f32.mrb[30].mxu0  ;;  %v3358_v63 = vpop.f32.mrb[30].mxu1  ;;  %v9078_v53 = vld [vmem:[%s9761_s3 + $0x110] ss:$8 sps:$4 sm:$0xff]  }
 0x2e8   :  { %v2690_v14 = vpop.f32.mrb[31].mxu0  ;;  %v3360_v20 = vpop.f32.mrb[31].mxu1 }
 0x2e9   :  { %v3479_v21 = vmax.f32 %v3451_v59, %v3465_v61  ;;  %v3452_v30 = vmax.f32 %v2688_v62, %v2690_v14  ;;  %v3466_v36 = vmax.f32 %v3358_v63, %v3360_v20 }
 0x2eb   :  { %v3493_v40 = vadd.f32 %v8708_v28, %v3479_v21  ;;  %v3480_v34 = vmax.f32 %v3452_v30, %v3466_v36 }
 0x2ed   :  { %v3494_v45 = vadd.f32 %v8708_v28, %v3480_v34  ;;  %v2694_v55 = vpop.f32.mrb[32].mxu0  ;;  %v3364_v56 = vpop.f32.mrb[32].mxu1  ;;  %v3507_v0 = vmax.f32 %v3493_v40, 0.0  ;;  %v9089_v40 = vld [vmem:[%s9761_s3 + $0x124] ss:$8 sps:$4 sm:$0xff]  }
 0x2ee   :  { %v2696_v57 = vpop.f32.mrb[33].mxu0  ;;  %v3366_v6 = vpop.f32.mrb[33].mxu1 }
 0x2ef   :  { %v3508_v1 = vmax.f32 %v3494_v45, 0.0  ;;  %v3453_v7 = vmax.f32 %v2694_v55, %v2696_v57  ;;  %v3467_v8 = vmax.f32 %v3364_v56, %v3366_v6  ;;  %v2698_v9 = vpop.f32.mrb[34].mxu0  ;;  %v3368_v10 = vpop.f32.mrb[34].mxu1 }
 0x2f0   :  { %v2700_v50 = vpop.f32.mrb[35].mxu0  ;;  %v3370_v11 = vpop.f32.mrb[35].mxu1 }
 0x2f1   :  { %v3521_v13 = vpack.c.bf16 %v3508_v1, %v3507_v0  ;;  %v3481_v16 = vmax.f32 %v3453_v7, %v3467_v8  ;;  %v3454_v17 = vmax.f32 %v2698_v9, %v2700_v50  ;;  %v3468_v31 = vmax.f32 %v3368_v10, %v3370_v11 }
 0x2f3   :  { %v3495_v19 = vadd.f32 %v8708_v28, %v3481_v16  ;;  %v3482_v22 = vmax.f32 %v3454_v17, %v3468_v31  ;;  %3675 = vmatmul.mubr.bf16.vlgmr.msra.gmra.mrb[56].mxu0 %v3521_v13  ;;  %4604 = vmatmul.mubr.bf16.vlgmr.msra.gmra.mrb[56].mxu1 %v3521_v13 }
 0x2f4   :  { %3806 = vmatpush1.bf16.msra.mxu0 %v8953_v26  ;;  %3684 = vmatprep.mubr.bf16.mxu0 %v9816_v38 }
 0x2f5   :  { %v3496_v15 = vadd.f32 %v8708_v28, %v3482_v22  ;;  %v2704_v25 = vpop.f32.mrb[36].mxu0  ;;  %v3374_v3 = vpop.f32.mrb[36].mxu1  ;;  %3807 = vmatprep.subr.bf16.mxu0 %v8958_v27  ;;  %4613 = vmatprep.mubr.bf16.mxu1 %v9816_v38  ;;  %v3509_v26 = vmax.f32 %v3495_v19, 0.0  ;;  %v9124_v19 = vld [vmem:[%s9761_s3 + $0x144] ss:$8 sps:$4 sm:$0xff]  }
 0x2f6   :  { %v2706_v51 = vpop.f32.mrb[37].mxu0  ;;  %v3376_v52 = vpop.f32.mrb[37].mxu1  ;;  %4655 = vmatpush1.bf16.msra.mxu1 %v9061_v18 }
 0x2f7   :  { %v3510_v54 = vmax.f32 %v3496_v15, 0.0  ;;  %v3455_v59 = vmax.f32 %v2704_v25, %v2706_v51  ;;  %v3469_v61 = vmax.f32 %v3374_v3, %v3376_v52  ;;  %v2708_v62 = vpop.f32.mrb[38].mxu0  ;;  %v3378_v63 = vpop.f32.mrb[38].mxu1  ;;  %4656 = vmatprep.subr.bf16.mxu1 %v9067_v23  ;;  %v9142_v51 = vld [vmem:[%s9761_s3 + $0x154] ss:$8 sps:$4 sm:$0xff]  }
 0x2f8   :  { %v2710_v27 = vpop.f32.mrb[39].mxu0  ;;  %v3380_v14 = vpop.f32.mrb[39].mxu1  ;;  %3808 = vmatpush1.bf16.msra.mxu0 %v8966_v24  ;;  %v9097_v24 = vld [vmem:[%s9761_s3 + $0x120] ss:$8 sps:$4 sm:$0xff]  }
 0x2f9   :  { %v9082_v20 = vpack.c.bf16 %v3510_v54, %v3509_v26  ;;  %v3483_v21 = vmax.f32 %v3455_v59, %v3469_v61  ;;  %v3456_v30 = vmax.f32 %v2708_v62, %v2710_v27  ;;  %v3470_v36 = vmax.f32 %v3378_v63, %v3380_v14  ;;  %3809 = vmatprep.subr.bf16.mxu0 %v8972_v29  ;;  %v9104_v29 = vld [vmem:[%s9761_s3 + $0x134] ss:$8 sps:$4 sm:$0xff]  }
 0x2fa   :  { %4657 = vmatpush1.bf16.msra.mxu1 %v9078_v53 }
 0x2fb   :  { %v3497_v34 = vadd.f32 %v8708_v28, %v3483_v21  ;;  %v3484_v45 = vmax.f32 %v3456_v30, %v3470_v36  ;;  %3685 = vmatmul.mubr.bf16.gmra.mrb[60].mxu0 %v9082_v20  ;;  %4614 = vmatmul.mubr.bf16.gmra.mrb[60].mxu1 %v9082_v20  ;;  %v9151_v21 = vld [vmem:[%s9761_s3 + $0x150] ss:$8 sps:$4 sm:$0xff]  }
 0x2fc   :  { %3810 = vmatpush1.bf16.msra.mxu0 %v8978_v33  ;;  %3694 = vmatprep.mubr.bf16.mxu0 %v9816_v38 }
 0x2fd   :  { %v3498_v55 = vadd.f32 %v8708_v28, %v3484_v45  ;;  %v2714_v56 = vpop.f32.mrb[40].mxu0  ;;  %v3384_v57 = vpop.f32.mrb[40].mxu1  ;;  %3811 = vmatprep.subr.bf16.mxu0 %v8984_v35  ;;  %4623 = vmatprep.mubr.bf16.mxu1 %v9816_v38  ;;  %v3511_v33 = vmax.f32 %v3497_v34, 0.0  ;;  %v9115_v35 = vld [vmem:[%s9761_s3 + $0x130] ss:$8 sps:$4 sm:$0xff]  }
 0x2fe   :  { %v2716_v6 = vpop.f32.mrb[41].mxu0  ;;  %v3386_v0 = vpop.f32.mrb[41].mxu1  ;;  %4658 = vmatprep.subr.bf16.mxu1 %v9089_v40  ;;  %v9160_v45 = vld [vmem:[%s9761_s3 + $0x164] ss:$8 sps:$4 sm:$0xff]  }
 0x2ff   :  { %v3512_v1 = vmax.f32 %v3498_v55, 0.0  ;;  %v3457_v7 = vmax.f32 %v2714_v56, %v2716_v6  ;;  %v3471_v8 = vmax.f32 %v3384_v57, %v3386_v0  ;;  %v2718_v9 = vpop.f32.mrb[42].mxu0  ;;  %v3388_v10 = vpop.f32.mrb[42].mxu1  ;;  %4659 = vmatpush1.bf16.msra.mxu1 %v9097_v24 }
 0x300   :  { %v2720_v50 = vpop.f32.mrb[43].mxu0  ;;  %v3390_v11 = vpop.f32.mrb[43].mxu1  ;;  %3812 = vmatpush1.bf16.msra.mxu0 %v8992_v37  ;;  %4660 = vmatprep.subr.bf16.mxu1 %v9104_v29 }
 0x301   :  { %v9118_v13 = vpack.c.bf16 %v3512_v1, %v3511_v33  ;;  %v3485_v16 = vmax.f32 %v3457_v7, %v3471_v8  ;;  %v3458_v17 = vmax.f32 %v2718_v9, %v2720_v50  ;;  %v3472_v31 = vmax.f32 %v3388_v10, %v3390_v11  ;;  %3813 = vmatprep.subr.bf16.mxu0 %v8998_v39  ;;  %v9134_v39 = vld [vmem:[%s9761_s3 + $0x140] ss:$8 sps:$4 sm:$0xff]   ;;  %v9180_v1 = vld [vmem:[%s9761_s3 + $0x174] ss:$8 sps:$4 sm:$0xff]  }
 0x303   :  { %v3499_v37 = vadd.f32 %v8708_v28, %v3485_v16  ;;  %v3486_v22 = vmax.f32 %v3458_v17, %v3472_v31  ;;  %3695 = vmatmul.mubr.bf16.gmra.mrb[64].mxu0 %v9118_v13  ;;  %4624 = vmatmul.mubr.bf16.gmra.mrb[64].mxu1 %v9118_v13  ;;  %v9186_v17 = vld [vmem:[%s9761_s3 + $0x170] ss:$8 sps:$4 sm:$0xff]  }
 0x304   :  { %3814 = vmatpush1.bf16.msra.mxu0 %v9004_v41  ;;  %4661 = vmatpush1.bf16.msra.mxu1 %v9115_v35 }
 0x305   :  { %v3500_v15 = vadd.f32 %v8708_v28, %v3486_v22  ;;  %v2724_v25 = vpop.f32.mrb[44].mxu0  ;;  %v3394_v3 = vpop.f32.mrb[44].mxu1  ;;  %3704 = vmatprep.mubr.bf16.mxu0 %v9816_v38  ;;  %4633 = vmatprep.mubr.bf16.mxu1 %v9816_v38  ;;  %v3513_v26 = vmax.f32 %v3499_v37, 0.0 }
 0x306   :  { %v2726_v41 = vpop.f32.mrb[45].mxu0  ;;  %v3396_v52 = vpop.f32.mrb[45].mxu1  ;;  %4662 = vmatprep.subr.bf16.mxu1 %v9124_v19  ;;  %3815 = vmatprep.subr.bf16.mxu0 %v9015_v42 }
 0x307   :  { %v3514_v54 = vmax.f32 %v3500_v15, 0.0  ;;  %v3459_v59 = vmax.f32 %v2724_v25, %v2726_v41  ;;  %v3473_v61 = vmax.f32 %v3394_v3, %v3396_v52  ;;  %v2728_v62 = vpop.f32.mrb[46].mxu0  ;;  %v3398_v63 = vpop.f32.mrb[46].mxu1  ;;  %v9194_v15 = vld [vmem:[%s9761_s3 + $0x184] ss:$8 sps:$4 sm:$0xff]  }
 0x308   :  { %v2730_v27 = vpop.f32.mrb[47].mxu0  ;;  %v3400_v14 = vpop.f32.mrb[47].mxu1  ;;  %4663 = vmatpush1.bf16.msra.mxu1 %v9134_v39  ;;  %3816 = vmatpush1.bf16.msra.mxu0 %v9020_v43 }
 0x309   :  { %v9153_v30 = vpack.c.bf16 %v3514_v54, %v3513_v26  ;;  %v3487_v42 = vmax.f32 %v3459_v59, %v3473_v61  ;;  %v3460_v36 = vmax.f32 %v2728_v62, %v2730_v27  ;;  %v3474_v34 = vmax.f32 %v3398_v63, %v3400_v14  ;;  %4664 = vmatprep.subr.bf16.mxu1 %v9142_v51 }
 0x30a   :  { %3817 = vmatprep.subr.bf16.mxu0 %v9027_v44  ;;  %v9170_v44 = vld [vmem:[%s9761_s3 + $0x160] ss:$8 sps:$4 sm:$0xff]  }
 0x30b   :  { %v3501_v43 = vadd.f32 %v8708_v28, %v3487_v42  ;;  %v3488_v55 = vmax.f32 %v3460_v36, %v3474_v34  ;;  %3705 = vmatmul.mubr.bf16.gmra.mrb[68].mxu0 %v9153_v30  ;;  %4634 = vmatmul.mubr.bf16.gmra.mrb[68].mxu1 %v9153_v30 }
 0x30c   :  { %4665 = vmatpush1.bf16.msra.mxu1 %v9151_v21  ;;  %3714 = vmatprep.mubr.bf16.mxu0 %v9816_v38 }
 0x30d   :  { %v3502_v56 = vadd.f32 %v8708_v28, %v3488_v55  ;;  %v2734_v57 = vpop.f32.mrb[48].mxu0  ;;  %v3404_v6 = vpop.f32.mrb[48].mxu1  ;;  %3818 = vmatpush1.bf16.msra.mxu0 %v9033_v47  ;;  %4643 = vmatprep.mubr.bf16.mxu1 %v9816_v38  ;;  %v3515_v7 = vmax.f32 %v3501_v43, 0.0 }
 0x30e   :  { %v2736_v0 = vpop.f32.mrb[49].mxu0  ;;  %v3406_v33 = vpop.f32.mrb[49].mxu1  ;;  %4666 = vmatprep.subr.bf16.mxu1 %v9160_v45  ;;  %3819 = vmatprep.subr.bf16.mxu0 %v9041_v48 }
 0x30f   :  { %v3516_v8 = vmax.f32 %v3502_v56, 0.0  ;;  %v3461_v9 = vmax.f32 %v2734_v57, %v2736_v0  ;;  %v3475_v10 = vmax.f32 %v3404_v6, %v3406_v33  ;;  %v2738_v50 = vpop.f32.mrb[50].mxu0  ;;  %v3408_v11 = vpop.f32.mrb[50].mxu1  ;;  %v9211_v56 = vld [vmem:[%s9761_s3 + $0x180] ss:$8 sps:$4 sm:$0xff]  }
 0x310   :  { %v2740_v47 = vpop.f32.mrb[51].mxu0  ;;  %v3410_v16 = vpop.f32.mrb[51].mxu1  ;;  %4667 = vmatpush1.bf16.msra.mxu1 %v9170_v44  ;;  %v9219_v0 = vld [vmem:[%s9761_s3 + $0x194] ss:$8 sps:$4 sm:$0xff]   ;;  %v7598_v33 = vld [vmem:[%s9762_s2] ss:$0 sm:$0xff] }
 0x311   :  { %v9188_v48 = vpack.c.bf16 %v3516_v8, %v3515_v7  ;;  %v3489_v31 = vmax.f32 %v3461_v9, %v3475_v10  ;;  %v3462_v37 = vmax.f32 %v2738_v50, %v2740_v47  ;;  %v3476_v22 = vmax.f32 %v3408_v11, %v3410_v16  ;;  %3820 = vmatpush1.bf16.msra.mxu0 %v9046_v4  ;;  %v9250_v9 = vld [vmem:[%s9761_s3 + $0x1a0] ss:$8 sps:$4 sm:$0xff]   ;;  %v9356_v10 = vld [vmem:[%s9761_s3 + $0x214] ss:$8 sps:$4 sm:$0xff]   ;;  %v7526_v50 = vld [vmem:[%s9761_s3 + $0x224] ss:$8 sps:$4 sm:$0xff]  }
 0x312   :  { %4668 = vmatprep.subr.bf16.mxu1 %v9180_v1  ;;  %3985 = vmatprep.subr.bf16.mxu0 %v9053_v49  ;;  %v7524_v11 = vld [vmem:[%s9761_s3 + $0x220] ss:$8 sps:$4 sm:$0xff]   ;;  %v7529_v47 = vld [vmem:[%s9761_s3 + $0x234] ss:$8 sps:$4 sm:$0xff]   ;;  %v7527_v16 = vld [vmem:[%s9761_s3 + $0x230] ss:$8 sps:$4 sm:$0xff]  }
 0x313   :  { %v3503_v25 = vadd.f32 %v8708_v28, %v3489_v31  ;;  %v3490_v3 = vmax.f32 %v3462_v37, %v3476_v22  ;;  %3715 = vmatmul.mubr.bf16.gmra.mrb[72].mxu0 %v9188_v48  ;;  %4644 = vmatmul.mubr.bf16.gmra.mrb[72].mxu1 %v9188_v48  ;;  %v7530_v31 = vld [vmem:[%s9761_s3 + $0x240] ss:$8 sps:$4 sm:$0xff]   ;;  %v7535_v37 = vld [vmem:[%s9761_s3 + $0x254] ss:$8 sps:$4 sm:$0xff]   ;;  %v7533_v22 = vld [vmem:[%s9761_s3 + $0x250] ss:$8 sps:$4 sm:$0xff]  }
 0x314   :  { %4669 = vmatpush1.bf16.msra.mxu1 %v9186_v17  ;;  %3837 = vmatprep.mubr.bf16.mxu0 %v9816_v38 }
 0x315   :  { %v3504_v4 = vadd.f32 %v8708_v28, %v3490_v3  ;;  %v2744_v41 = vpop.f32.mrb[52].mxu0  ;;  %v3414_v52 = vpop.f32.mrb[52].mxu1  ;;  %4686 = vmatprep.mubr.bf16.mxu1 %v9816_v38  ;;  %4757 = vmatprep.subr.bf16.mxu1 %v9194_v15  ;;  %v3517_v54 = vmax.f32 %v3503_v25, 0.0  ;;  %v7536_v25 = vld [vmem:[%s9761_s3 + $0x260] ss:$8 sps:$4 sm:$0xff]  }
 0x316   :  { %v2746_v49 = vpop.f32.mrb[53].mxu0  ;;  %v3416_v26 = vpop.f32.mrb[53].mxu1  ;;  %v7541_v3 = vld [vmem:[%s9761_s3 + $0x274] ss:$8 sps:$4 sm:$0xff]  }
 0x317   :  { %v3518_v59 = vmax.f32 %v3504_v4, 0.0  ;;  %v3463_v61 = vmax.f32 %v2744_v41, %v2746_v49  ;;  %v3477_v62 = vmax.f32 %v3414_v52, %v3416_v26  ;;  %v2748_v63 = vpop.f32.mrb[54].mxu0  ;;  %v3418_v27 = vpop.f32.mrb[54].mxu1  ;;  %v7539_v4 = vld [vmem:[%s9761_s3 + $0x270] ss:$8 sps:$4 sm:$0xff]   ;;  %v7551_v41 = vld [vmem:[%s9763_s5 + $0x28] sm:$0xff]  }
 0x318   :  { %v2750_v14 = vpop.f32.mrb[55].mxu0  ;;  %v3420_v42 = vpop.f32.mrb[55].mxu1  ;;  %v7552_v52 = vld [vmem:[%s9763_s5 + $0x60] sm:$0xff]   ;;  %v7553_v49 = vld [vmem:[%s9763_s5 + $0x30] sm:$0xff]   ;;  %v7554_v26 = vld [vmem:[%s9763_s5 + $0x68] sm:$0xff]  }
 0x319   :  { %v3491_v36 = vmax.f32 %v3463_v61, %v3477_v62  ;;  %v3464_v34 = vmax.f32 %v2748_v63, %v2750_v14  ;;  %v3478_v43 = vmax.f32 %v3418_v27, %v3420_v42  ;;  %v9206_v55 = vpack.c.bf16 %v3518_v59, %v3517_v54  ;;  %v7555_v54 = vld [vmem:[%s9763_s5 + $0x38] sm:$0xff]   ;;  %v7556_v59 = vld [vmem:[%s9763_s5 + $0x70] sm:$0xff]  }
 0x31a   :  { %v7558_v61 = vld [vmem:[%s9763_s5 + $0x78] sm:$0xff]  }
 0x31b   :  { %v3505_v57 = vadd.f32 %v8708_v28, %v3491_v36  ;;  %v3492_v6 = vmax.f32 %v3464_v34, %v3478_v43  ;;  %3838 = vmatmul.mubr.bf16.vlgmr.msra.gmra.mrb[56].mxu0 %v8723_v60  ;;  %4687 = vmatmul.mubr.bf16.vlgmr.msra.gmra.mrb[56].mxu1 %v9082_v20  ;;  %v9232_v28 = vld [vmem:[%s9761_s3 + $0x190] ss:$8 sps:$4 sm:$0xff]  }
 0x31c   :  { %3986 = vmatpush1.bf16.msra.mxu0 %v9061_v18  ;;  %3847 = vmatprep.mubr.bf16.mxu0 %v9816_v38 }
 0x31d   :  { %v3506_v7 = vadd.f32 %v7598_v33, %v3492_v6  ;;  %3987 = vmatprep.subr.bf16.mxu0 %v9067_v23  ;;  %4696 = vmatprep.mubr.bf16.mxu1 %v9816_v38  ;;  %v3519_v60 = vmax.f32 %v3505_v57, 0.0  ;;  %v9243_v23 = vld [vmem:[%s9761_s3 + $0x1a4] ss:$8 sps:$4 sm:$0xff]  }
 0x31e   :  { %4758 = vmatpush1.bf16.msra.mxu1 %v9211_v56 }
 0x31f   :  { %v3520_v18 = vmax.f32 %v3506_v7, 0.0  ;;  %4759 = vmatprep.subr.bf16.mxu1 %v9219_v0 }
 0x320   :  { %3988 = vmatpush1.bf16.msra.mxu0 %v9078_v53  ;;  %v9257_v53 = vld [vmem:[%s9761_s3 + $0x1b4] ss:$8 sps:$4 sm:$0xff]  }
 0x321   :  { %3989 = vmatprep.subr.bf16.mxu0 %v9089_v40  ;;  %v9237_v8 = vpack.c.bf16 %v3520_v18, %v3519_v60  ;;  %v9267_v40 = vld [vmem:[%s9761_s3 + $0x1b0] ss:$8 sps:$4 sm:$0xff]  }
 0x322   :  { %4760 = vmatpush1.bf16.msra.mxu1 %v9232_v28 }
 0x323   :  { %3848 = vmatmul.mubr.bf16.gmra.mrb[60].mxu0 %v8746_v12  ;;  %4697 = vmatmul.mubr.bf16.gmra.mrb[60].mxu1 %v9118_v13 }
 0x324   :  { %3990 = vmatpush1.bf16.msra.mxu0 %v9097_v24  ;;  %3857 = vmatprep.mubr.bf16.mxu0 %v9816_v38  ;;  %v9274_v24 = vld [vmem:[%s9761_s3 + $0x1c4] ss:$8 sps:$4 sm:$0xff]  }
 0x325   :  { %3991 = vmatprep.subr.bf16.mxu0 %v9104_v29  ;;  %4706 = vmatprep.mubr.bf16.mxu1 %v9816_v38  ;;  %v9283_v29 = vld [vmem:[%s9761_s3 + $0x1c0] ss:$8 sps:$4 sm:$0xff]  }
 0x326   :  { %4761 = vmatprep.subr.bf16.mxu1 %v9243_v23 }
 0x327   :  { %4762 = vmatpush1.bf16.msra.mxu1 %v9250_v9 }
 0x328   :  { %3992 = vmatpush1.bf16.msra.mxu0 %v9115_v35  ;;  %4763 = vmatprep.subr.bf16.mxu1 %v9257_v53  ;;  %v9290_v35 = vld [vmem:[%s9761_s3 + $0x1d4] ss:$8 sps:$4 sm:$0xff]  }
 0x329   :  { %3993 = vmatprep.subr.bf16.mxu0 %v9124_v19  ;;  %v9299_v19 = vld [vmem:[%s9761_s3 + $0x1d0] ss:$8 sps:$4 sm:$0xff]  }
 0x32b   :  { %3858 = vmatmul.mubr.bf16.gmra.mrb[64].mxu0 %v8767_v46  ;;  %4707 = vmatmul.mubr.bf16.gmra.mrb[64].mxu1 %v9153_v30 }
 0x32c   :  { %3994 = vmatpush1.bf16.msra.mxu0 %v9134_v39  ;;  %4764 = vmatpush1.bf16.msra.mxu1 %v9267_v40  ;;  %v9306_v39 = vld [vmem:[%s9761_s3 + $0x1e4] ss:$8 sps:$4 sm:$0xff]  }
 0x32d   :  { %3867 = vmatprep.mubr.bf16.mxu0 %v9816_v38  ;;  %4716 = vmatprep.mubr.bf16.mxu1 %v9816_v38 }
 0x32e   :  { %4765 = vmatprep.subr.bf16.mxu1 %v9274_v24  ;;  %3995 = vmatprep.subr.bf16.mxu0 %v9142_v51  ;;  %v9315_v51 = vld [vmem:[%s9761_s3 + $0x1e0] ss:$8 sps:$4 sm:$0xff]  }
 0x330   :  { %4766 = vmatpush1.bf16.msra.mxu1 %v9283_v29  ;;  %3996 = vmatpush1.bf16.msra.mxu0 %v9151_v21  ;;  %v9322_v21 = vld [vmem:[%s9761_s3 + $0x1f4] ss:$8 sps:$4 sm:$0xff]  }
 0x331   :  { %4767 = vmatprep.subr.bf16.mxu1 %v9290_v35  ;;  %3997 = vmatprep.subr.bf16.mxu0 %v9160_v45  ;;  %v9330_v45 = vld [vmem:[%s9761_s3 + $0x1f0] ss:$8 sps:$4 sm:$0xff]  }
 0x333   :  { %3868 = vmatmul.mubr.bf16.gmra.mrb[68].mxu0 %v8792_v58  ;;  %4717 = vmatmul.mubr.bf16.gmra.mrb[68].mxu1 %v9188_v48 }
 0x334   :  { %4768 = vmatpush1.bf16.msra.mxu1 %v9299_v19  ;;  %3877 = vmatprep.mubr.bf16.mxu0 %v9816_v38 }
 0x335   :  { %3998 = vmatpush1.bf16.msra.mxu0 %v9170_v44  ;;  %4726 = vmatprep.mubr.bf16.mxu1 %v9816_v38  ;;  %v9337_v44 = vld [vmem:[%s9761_s3 + $0x204] ss:$8 sps:$4 sm:$0xff]  }
 0x336   :  { %4769 = vmatprep.subr.bf16.mxu1 %v9306_v39  ;;  %3999 = vmatprep.subr.bf16.mxu0 %v9180_v1  ;;  %v9349_v1 = vld [vmem:[%s9761_s3 + $0x200] ss:$8 sps:$4 sm:$0xff]  }
 0x338   :  { %4770 = vmatpush1.bf16.msra.mxu1 %v9315_v51 }
 0x339   :  { %4000 = vmatpush1.bf16.msra.mxu0 %v9186_v17  ;;  %4771 = vmatprep.subr.bf16.mxu1 %v9322_v21  ;;  %v7532_v17 = vld [vmem:[%s9761_s3 + $0x244] ss:$8 sps:$4 sm:$0xff]  }
 0x33a   :  { %4185 = vmatprep.subr.bf16.mxu0 %v9194_v15  ;;  %v7538_v15 = vld [vmem:[%s9761_s3 + $0x264] ss:$8 sps:$4 sm:$0xff]  }
 0x33b   :  { %3878 = vmatmul.mubr.bf16.gmra.mrb[72].mxu0 %v8808_v32  ;;  %4727 = vmatmul.mubr.bf16.gmra.mrb[72].mxu1 %v9206_v55 }
 0x33c   :  { %4772 = vmatpush1.bf16.msra.mxu1 %v9330_v45  ;;  %4017 = vmatprep.mubr.bf16.mxu0 %v9816_v38 }
 0x33d   :  { %4789 = vmatprep.mubr.bf16.mxu1 %v9816_v38  ;;  %4860 = vmatprep.subr.bf16.mxu1 %v9337_v44 }
 0x343   :  { %4018 = vmatmul.mubr.bf16.vlgmr.msra.gmra.mrb[56].mxu0 %v8746_v12  ;;  %4790 = vmatmul.mubr.bf16.vlgmr.msra.gmra.mrb[56].mxu1 %v8767_v46  ;;  %v7521_v12 = vld [vmem:[%s9761_s3 + $0x210] ss:$8 sps:$4 sm:$0xff]  }
 0x344   :  { %4186 = vmatpush1.bf16.msra.mxu0 %v9211_v56  ;;  %4027 = vmatprep.mubr.bf16.mxu0 %v9816_v38 }
 0x345   :  { %4187 = vmatprep.subr.bf16.mxu0 %v9219_v0  ;;  %4799 = vmatprep.mubr.bf16.mxu1 %v9816_v38 }
 0x346   :  { %4861 = vmatpush1.bf16.msra.mxu1 %v9349_v1 }
 0x347   :  { %4862 = vmatprep.subr.bf16.mxu1 %v9356_v10 }
 0x348   :  { %4188 = vmatpush1.bf16.msra.mxu0 %v9232_v28 }
 0x349   :  { %4189 = vmatprep.subr.bf16.mxu0 %v9243_v23 }
 0x34a   :  { %4863 = vmatpush1.bf16.msra.mxu1 %v7521_v12 }
 0x34b   :  { %4028 = vmatmul.mubr.bf16.gmra.mrb[60].mxu0 %v8767_v46  ;;  %4800 = vmatmul.mubr.bf16.gmra.mrb[60].mxu1 %v8792_v58 }
 0x34c   :  { %4190 = vmatpush1.bf16.msra.mxu0 %v9250_v9  ;;  %4037 = vmatprep.mubr.bf16.mxu0 %v9816_v38 }
 0x34d   :  { %4191 = vmatprep.subr.bf16.mxu0 %v9257_v53  ;;  %4809 = vmatprep.mubr.bf16.mxu1 %v9816_v38 }
 0x34e   :  { %4864 = vmatprep.subr.bf16.mxu1 %v7526_v50 }
 0x34f   :  { %4865 = vmatpush1.bf16.msra.mxu1 %v7524_v11 }
 0x350   :  { %4192 = vmatpush1.bf16.msra.mxu0 %v9267_v40  ;;  %4866 = vmatprep.subr.bf16.mxu1 %v7529_v47 }
 0x351   :  { %4193 = vmatprep.subr.bf16.mxu0 %v9274_v24 }
 0x353   :  { %4038 = vmatmul.mubr.bf16.gmra.mrb[64].mxu0 %v8792_v58  ;;  %4810 = vmatmul.mubr.bf16.gmra.mrb[64].mxu1 %v8808_v32 }
 0x354   :  { %4194 = vmatpush1.bf16.msra.mxu0 %v9283_v29  ;;  %4867 = vmatpush1.bf16.msra.mxu1 %v7527_v16 }
 0x355   :  { %4047 = vmatprep.mubr.bf16.mxu0 %v9816_v38  ;;  %4819 = vmatprep.mubr.bf16.mxu1 %v9816_v38 }
 0x356   :  { %4868 = vmatprep.subr.bf16.mxu1 %v7532_v17  ;;  %4195 = vmatprep.subr.bf16.mxu0 %v9290_v35 }
 0x358   :  { %4869 = vmatpush1.bf16.msra.mxu1 %v7530_v31  ;;  %4196 = vmatpush1.bf16.msra.mxu0 %v9299_v19 }
 0x359   :  { %4870 = vmatprep.subr.bf16.mxu1 %v7535_v37  ;;  %4197 = vmatprep.subr.bf16.mxu0 %v9306_v39 }
 0x35b   :  { %4048 = vmatmul.mubr.bf16.gmra.mrb[68].mxu0 %v8808_v32  ;;  %4820 = vmatmul.mubr.bf16.gmra.mrb[68].mxu1 %v8823_v2 }
 0x35c   :  { %4871 = vmatpush1.bf16.msra.mxu1 %v7533_v22  ;;  %4057 = vmatprep.mubr.bf16.mxu0 %v9816_v38 }
 0x35d   :  { %4198 = vmatpush1.bf16.msra.mxu0 %v9315_v51  ;;  %4829 = vmatprep.mubr.bf16.mxu1 %v9816_v38 }
 0x35e   :  { %4872 = vmatprep.subr.bf16.mxu1 %v7538_v15  ;;  %4199 = vmatprep.subr.bf16.mxu0 %v9322_v21 }
 0x360   :  { %4873 = vmatpush1.bf16.msra.mxu1 %v7536_v25 }
 0x361   :  { %4200 = vmatpush1.bf16.msra.mxu0 %v9330_v45  ;;  %4874 = vmatprep.subr.bf16.mxu1 %v7541_v3 }
 0x362   :  { %4385 = vmatprep.subr.bf16.mxu0 %v9337_v44 }
 0x363   :  { %4058 = vmatmul.mubr.bf16.gmra.mrb[72].mxu0 %v8823_v2  ;;  %4830 = vmatmul.mubr.bf16.gmra.mrb[72].mxu1 %v8838_v5 }
 0x364   :  { %4875 = vmatpush1.bf16.msra.mxu1 %v7539_v4  ;;  %4217 = vmatprep.mubr.bf16.mxu0 %v9816_v38 }
 0x365   :  { %4892 = vmatprep.mubr.bf16.mxu1 %v9816_v38 }
 0x36b   :  { %4218 = vmatmul.mubr.bf16.vlgmr.msra.gmra.mrb[56].mxu0 %v9082_v20  ;;  %4893 = vmatmul.mubr.bf16.vlgmr.msra.gmra.mrb[56].mxu1 %v9118_v13  ;;  %v7600_v20 = vmov 0.0  }
 0x36c   :  { %4386 = vmatpush1.bf16.msra.mxu0 %v9349_v1  ;;  %4227 = vmatprep.mubr.bf16.mxu0 %v9816_v38 }
 0x36d   :  { %4387 = vmatprep.subr.bf16.mxu0 %v9356_v10  ;;  %4902 = vmatprep.mubr.bf16.mxu1 %v9816_v38 }
 0x36e   :  { %6549 = vmatprep.subr.bf16.mxu1 %v7600_v20 }
 0x370   :  { %4388 = vmatpush1.bf16.msra.mxu0 %v7521_v12  ;;  %v9560_v12 = vld [vmem:[%s9764_s4] ss:$0 sm:$0xff] }
 0x371   :  { %4389 = vmatprep.subr.bf16.mxu0 %v7526_v50 }
 0x373   :  { %4228 = vmatmul.mubr.bf16.gmra.mrb[60].mxu0 %v9118_v13  ;;  %4903 = vmatmul.mubr.bf16.gmra.mrb[60].mxu1 %v9153_v30  ;;  %v7547_v13 = vld [vmem:[%s9763_s5 + $0x50] sm:$0xff]  }
 0x374   :  { %4390 = vmatpush1.bf16.msra.mxu0 %v7524_v11  ;;  %4237 = vmatprep.mubr.bf16.mxu0 %v9816_v38 }
 0x375   :  { %4391 = vmatprep.subr.bf16.mxu0 %v7529_v47  ;;  %4912 = vmatprep.mubr.bf16.mxu1 %v9816_v38 }
 0x378   :  { %4392 = vmatpush1.bf16.msra.mxu0 %v7527_v16 }
 0x379   :  { %4393 = vmatprep.subr.bf16.mxu0 %v7532_v17 }
 0x37b   :  { %4238 = vmatmul.mubr.bf16.gmra.mrb[64].mxu0 %v9153_v30  ;;  %4913 = vmatmul.mubr.bf16.gmra.mrb[64].mxu1 %v9188_v48  ;;  %v7549_v30 = vld [vmem:[%s9763_s5 + $0x58] sm:$0xff]  }
 0x37c   :  { %4394 = vmatpush1.bf16.msra.mxu0 %v7530_v31  ;;  %4247 = vmatprep.mubr.bf16.mxu0 %v9816_v38 }
 0x37d   :  { %4922 = vmatprep.mubr.bf16.mxu1 %v9816_v38  ;;  %4395 = vmatprep.subr.bf16.mxu0 %v7535_v37 }
 0x380   :  { %4396 = vmatpush1.bf16.msra.mxu0 %v7533_v22 }
 0x381   :  { %4397 = vmatprep.subr.bf16.mxu0 %v7538_v15 }
 0x383   :  { %4248 = vmatmul.mubr.bf16.gmra.mrb[68].mxu0 %v9188_v48  ;;  %4923 = vmatmul.mubr.bf16.gmra.mrb[68].mxu1 %v9206_v55  ;;  %v7550_v48 = vld [vmem:[%s9763_s5 + $0x20] sm:$0xff]  }
 0x384   :  { %4257 = vmatprep.mubr.bf16.mxu0 %v9816_v38  ;;  %4398 = vmatpush1.bf16.msra.mxu0 %v7536_v25 }
 0x385   :  { %4932 = vmatprep.mubr.bf16.mxu1 %v9816_v38  ;;  %4399 = vmatprep.subr.bf16.mxu0 %v7541_v3 }
 0x388   :  { %4400 = vmatpush1.bf16.msra.mxu0 %v7539_v4 }
 0x389   :  { %6529 = vmatprep.subr.bf16.mxu0 %v7600_v20 }
 0x38b   :  { %4258 = vmatmul.mubr.bf16.gmra.mrb[72].mxu0 %v9206_v55  ;;  %4933 = vmatmul.mubr.bf16.gmra.mrb[72].mxu1 %v9237_v8 }
 0x38c   :  { %4417 = vmatprep.mubr.bf16.mxu0 %v9816_v38  ;;  %6565 = vmatprep.mubr.msk.bf16.mxu1 %vm7601_vm1, %v7600_v20 }
 0x393   :  { %4418 = vmatmul.mubr.bf16.vlgmr.msra.gmra.mrb[56].mxu0 %v8767_v46  ;;  %v7542_v46 = vld [vmem:[%s9763_s5] sm:$0xff]  }
 0x394   :  { %4427 = vmatprep.mubr.bf16.mxu0 %v9816_v38  ;;  %6550 = vmatpush3.bf16.msra.mxu1 %v7542_v46 }
 0x395   :  { %6551 = vmatprep.subr.bf16.mxu1 %v7600_v20 }
 0x39b   :  { %4428 = vmatmul.mubr.bf16.gmra.mrb[60].mxu0 %v8792_v58  ;;  %v7543_v58 = vld [vmem:[%s9763_s5 + $0x40] sm:$0xff]  }
 0x39c   :  { %4437 = vmatprep.mubr.bf16.mxu0 %v9816_v38  ;;  %6530 = vmatpush3.bf16.msra.mxu0 %v7543_v58  ;;  %v7557_v58 = vld [vmem:[%s9763_s5 + $0xc0] sm:$0xff]  }
 0x39d   :  { %6531 = vmatprep.subr.bf16.mxu0 %v7600_v20 }
 0x3a3   :  { %4438 = vmatmul.mubr.bf16.gmra.mrb[64].mxu0 %v8808_v32  ;;  %v7545_v32 = vld [vmem:[%s9763_s5 + $0x48] sm:$0xff]  }
 0x3a4   :  { %4447 = vmatprep.mubr.bf16.mxu0 %v9816_v38  ;;  %6532 = vmatpush3.bf16.msra.mxu0 %v7545_v32 }
 0x3a5   :  { %6533 = vmatprep.subr.bf16.mxu0 %v7600_v20 }
 0x3a8   :  { %6534 = vmatpush3.bf16.msra.mxu0 %v7547_v13 }
 0x3a9   :  { %6535 = vmatprep.subr.bf16.mxu0 %v7600_v20 }
 0x3ab   :  { %4448 = vmatmul.mubr.bf16.gmra.mrb[68].mxu0 %v8823_v2  ;;  %v7546_v2 = vld [vmem:[%s9763_s5 + $0x10] sm:$0xff]  }
 0x3ac   :  { %4457 = vmatprep.mubr.bf16.mxu0 %v9816_v38  ;;  %v7544_v38 = vld [vmem:[%s9763_s5 + $0x8] sm:$0xff]   ;;  %6536 = vmatpush3.bf16.msra.mxu0 %v7549_v30 }
 0x3ad   :  { %6552 = vmatpush3.bf16.msra.mxu1 %v7544_v38  ;;  %6537 = vmatprep.subr.bf16.mxu0 %v7600_v20  ;;  %v7559_v30 = vld [vmem:[%s9763_s5 + $0xc8] sm:$0xff]  }
 0x3ae   :  { %6553 = vmatprep.subr.bf16.mxu1 %v7600_v20 }
 0x3b0   :  { %6538 = vmatpush3.bf16.msra.mxu0 %v7552_v52 }
 0x3b1   :  { %6554 = vmatpush3.bf16.msra.mxu1 %v7546_v2  ;;  %6539 = vmatprep.subr.bf16.mxu0 %v7600_v20 }
 0x3b2   :  { %6555 = vmatprep.subr.bf16.mxu1 %v7600_v20 }
 0x3b3   :  { %4458 = vmatmul.mubr.bf16.gmra.mrb[72].mxu0 %v8838_v5  ;;  %v7548_v5 = vld [vmem:[%s9763_s5 + $0x18] sm:$0xff]  }
 0x3b4   :  { %6540 = vmatpush3.bf16.msra.mxu0 %v7554_v26  ;;  %6545 = vmatprep.mubr.msk.bf16.mxu0 %vm7601_vm1, %v7600_v20 }
 0x3b5   :  { %6556 = vmatpush3.bf16.msra.mxu1 %v7548_v5  ;;  %6541 = vmatprep.subr.bf16.mxu0 %v7600_v20 }
 0x3b6   :  { %6557 = vmatprep.subr.bf16.mxu1 %v7600_v20 }
 0x3b8   :  { %6542 = vmatpush3.bf16.msra.mxu0 %v7556_v59 }
 0x3b9   :  { %6558 = vmatpush3.bf16.msra.mxu1 %v7550_v48  ;;  %6543 = vmatprep.subr.bf16.mxu0 %v7600_v20 }
 0x3ba   :  { %6559 = vmatprep.subr.bf16.mxu1 %v7600_v20 }
 0x3bc   :  { %6544 = vmatpush3.bf16.msra.mxu0 %v7558_v61 }
 0x3bd   :  { %6560 = vmatpush3.bf16.msra.mxu1 %v7551_v41  ;;  %6569 = vmatprep.subr.bf16.mxu0 %v7600_v20 }
 0x3be   :  { %6561 = vmatprep.subr.bf16.mxu1 %v7600_v20 }
 0x3c1   :  { %6562 = vmatpush3.bf16.msra.mxu1 %v7553_v49 }
 0x3c2   :  { %6563 = vmatprep.subr.bf16.mxu1 %v7600_v20 }
 0x3c5   :  { %6564 = vmatpush3.bf16.msra.mxu1 %v7555_v54 }
 0x3c6   :  { %6589 = vmatprep.subr.bf16.mxu1 %v7600_v20 }
 0x43e   :  { %v4894_v62 = vpop.f32.mrb[56].mxu1 }
 0x43f   :  { %v4896_v63 = vpop.f32.mrb[57].mxu1 }
 0x440   :  { %v4973_v27 = vmax.f32 %v4894_v62, %v4896_v63  ;;  %v4898_v14 = vpop.f32.mrb[58].mxu1  ;;  %v7560_v62 = vld [vmem:[%s9763_s5 + $0x80] sm:$0xff]   ;;  %v7561_v63 = vld [vmem:[%s9763_s5 + $0xd0] sm:$0xff]  }
 0x441   :  { %v4900_v42 = vpop.f32.mrb[59].mxu1 }
 0x442   :  { %v4974_v36 = vmax.f32 %v4898_v14, %v4900_v42 }
 0x446   :  { %v4904_v34 = vpop.f32.mrb[60].mxu1 }
 0x447   :  { %v4906_v43 = vpop.f32.mrb[61].mxu1 }
 0x448   :  { %v4975_v55 = vmax.f32 %v4904_v34, %v4906_v43  ;;  %v4908_v56 = vpop.f32.mrb[62].mxu1  ;;  %v7562_v43 = vld [vmem:[%s9763_s5 + $0x88] sm:$0xff]  }
 0x449   :  { %v4910_v57 = vpop.f32.mrb[63].mxu1 }
 0x44a   :  { %v4976_v6 = vmax.f32 %v4908_v56, %v4910_v57 }
 0x44e   :  { %v4914_v0 = vpop.f32.mrb[64].mxu1 }
 0x44f   :  { %v4916_v33 = vpop.f32.mrb[65].mxu1 }
 0x450   :  { %v4977_v7 = vmax.f32 %v4914_v0, %v4916_v33  ;;  %v4918_v28 = vpop.f32.mrb[66].mxu1 }
 0x451   :  { %v4920_v60 = vpop.f32.mrb[67].mxu1 }
 0x452   :  { %v4978_v18 = vmax.f32 %v4918_v28, %v4920_v60 }
 0x456   :  { %v9533_v8 = vpop.f32.mrb[68].mxu1 }
 0x457   :  { %v9535_v23 = vpop.f32.mrb[69].mxu1 }
 0x458   :  { %v4979_v9 = vmax.f32 %v9533_v8, %v9535_v23  ;;  %v9539_v53 = vpop.f32.mrb[70].mxu1  ;;  %v7567_v8 = vld [vmem:[%s9763_s5 + $0xe8] sm:$0xff]  }
 0x459   :  { %v9541_v40 = vpop.f32.mrb[71].mxu1 }
 0x45a   :  { %v4980_v24 = vmax.f32 %v9539_v53, %v9541_v40 }
 0x45e   :  { %v9545_v29 = vpop.f32.mrb[72].mxu1 }
 0x45f   :  { %v9547_v35 = vpop.f32.mrb[73].mxu1 }
 0x460   :  { %v4981_v19 = vmax.f32 %v9545_v29, %v9547_v35  ;;  %v9551_v39 = vpop.f32.mrb[74].mxu1  ;;  %v7571_v29 = vld [vmem:[%s9763_s5 + $0xf8] sm:$0xff]  }
 0x461   :  { %v9553_v51 = vpop.f32.mrb[75].mxu1 }
 0x462   :  { %v4982_v21 = vmax.f32 %v9551_v39, %v9553_v51  ;;  %v7572_v39 = vld [vmem:[%s9763_s5 + $0xb0] sm:$0xff]  }
 0x466   :  { %v4419_v45 = vpop.f32.mrb[56].mxu0 }
 0x467   :  { %v4421_v44 = vpop.f32.mrb[57].mxu0 }
 0x468   :  { %v4963_v1 = vmax.f32 %v4419_v45, %v4421_v44  ;;  %v4423_v10 = vpop.f32.mrb[58].mxu0  ;;  %v7565_v45 = vld [vmem:[%s9763_s5 + $0xe0] sm:$0xff]  }
 0x469   :  { %v4425_v50 = vpop.f32.mrb[59].mxu0 }
 0x46a   :  { %v4983_v11 = vmax.f32 %v4963_v1, %v4973_v27  ;;  %v4964_v47 = vmax.f32 %v4423_v10, %v4425_v50 }
 0x46c   :  { %v4999_v16 = vadd.f32 %v9560_v12, %v4983_v11  ;;  %v4984_v17 = vmax.f32 %v4964_v47, %v4974_v36  ;;  %v7566_v47 = vld [vmem:[%s9763_s5 + $0x98] sm:$0xff]  }
 0x46e   :  { %v5000_v31 = vadd.f32 %v9560_v12, %v4984_v17  ;;  %v4429_v37 = vpop.f32.mrb[60].mxu0  ;;  %v5009_v15 = vmax.f32 %v4999_v16, 0.0 }
 0x46f   :  { %v4431_v22 = vpop.f32.mrb[61].mxu0 }
 0x470   :  { %v5010_v25 = vmax.f32 %v5000_v31, 0.0  ;;  %v4965_v3 = vmax.f32 %v4429_v37, %v4431_v22  ;;  %v4433_v4 = vpop.f32.mrb[62].mxu0  ;;  %v7568_v37 = vld [vmem:[%s9763_s5 + $0xa0] sm:$0xff]   ;;  %v7569_v22 = vld [vmem:[%s9763_s5 + $0xf0] sm:$0xff]  }
 0x471   :  { %v4435_v46 = vpop.f32.mrb[63].mxu0 }
 0x472   :  { %v5019_v38 = vpack.c.bf16 %v5010_v25, %v5009_v15  ;;  %v4985_v32 = vmax.f32 %v4965_v3, %v4975_v55  ;;  %v4966_v2 = vmax.f32 %v4433_v4, %v4435_v46  ;;  %v7563_v55 = vld [vmem:[%s9763_s5 + $0xd8] sm:$0xff]  }
 0x474   :  { %v5001_v5 = vadd.f32 %v9560_v12, %v4985_v32  ;;  %v4986_v13 = vmax.f32 %v4966_v2, %v4976_v6  ;;  %6566 = vmatmul.mubr.bf16.vlgmr.msra.gmra.mrb[76].mxu1 %v5019_v38  ;;  %v7575_v32 = vld [vmem:[%s9763_s5 + $0x108] sm:$0xff]   ;;  %v7576_v2 = vld [vmem:[%s9763_s5 + $0x110] sm:$0xff]  }
 0x475   :  { %6590 = vmatpush3.bf16.msra.mxu1 %v7557_v58  ;;  %6605 = vmatprep.mubr.msk.bf16.mxu1 %vm7601_vm1, %v7600_v20  ;;  %v7570_v58 = vld [vmem:[%s9763_s5 + $0xa8] sm:$0xff]  }
 0x476   :  { %v5002_v48 = vadd.f32 %v9560_v12, %v4986_v13  ;;  %v4439_v41 = vpop.f32.mrb[64].mxu0  ;;  %6591 = vmatprep.subr.bf16.mxu1 %v7600_v20  ;;  %v5011_v49 = vmax.f32 %v5001_v5, 0.0  ;;  %v7577_v5 = vld [vmem:[%s9763_s5 + $0x118] sm:$0xff]   ;;  %v7578_v13 = vld [vmem:[%s9763_s5 + $0x120] sm:$0xff]  }
 0x477   :  { %v4441_v52 = vpop.f32.mrb[65].mxu0 }
 0x478   :  { %v5012_v26 = vmax.f32 %v5002_v48, 0.0  ;;  %v4967_v54 = vmax.f32 %v4439_v41, %v4441_v52  ;;  %v4443_v59 = vpop.f32.mrb[66].mxu0  ;;  %v7580_v48 = vld [vmem:[%s9763_s5 + $0x130] sm:$0xff]   ;;  %v7581_v41 = vld [vmem:[%s9763_s5 + $0x138] sm:$0xff]   ;;  %v7582_v52 = vld [vmem:[%s9765_s7] sm:$0xff]  }
 0x479   :  { %6592 = vmatpush3.bf16.msra.mxu1 %v7559_v30  ;;  %v4445_v61 = vpop.f32.mrb[67].mxu0  ;;  %v7579_v30 = vld [vmem:[%s9763_s5 + $0x128] sm:$0xff]  }
 0x47a   :  { %v5020_v27 = vpack.c.bf16 %v5012_v26, %v5011_v49  ;;  %v4987_v14 = vmax.f32 %v4967_v54, %v4977_v7  ;;  %v4968_v42 = vmax.f32 %v4443_v59, %v4445_v61  ;;  %6593 = vmatprep.subr.bf16.mxu1 %v7600_v20  ;;  %v7583_v49 = vld [vmem:[%s9765_s7 + $0x8] sm:$0xff]   ;;  %v7584_v26 = vld [vmem:[%s9765_s7 + $0x10] sm:$0xff]   ;;  %v7585_v54 = vld [vmem:[%s9765_s7 + $0x18] sm:$0xff]  }
 0x47b   :  { %v7586_v59 = vld [vmem:[%s9765_s7 + $0x20] sm:$0xff]   ;;  %v7587_v61 = vld [vmem:[%s9765_s7 + $0x28] sm:$0xff]  }
 0x47c   :  { %v5003_v36 = vadd.f32 %v9560_v12, %v4987_v14  ;;  %v4988_v34 = vmax.f32 %v4968_v42, %v4978_v18  ;;  %6546 = vmatmul.mubr.bf16.vlgmr.msra.gmra.mrb[76].mxu0 %v5020_v27  ;;  %v7564_v18 = vld [vmem:[%s9763_s5 + $0x90] sm:$0xff]   ;;  %v7590_v14 = vld [vmem:[%s9766_s9] sm:$0xff]   ;;  %v7591_v42 = vld [vmem:[%s9766_s9 + $0x8] sm:$0xff]  }
 0x47d   :  { %6570 = vmatpush3.bf16.msra.mxu0 %v7560_v62  ;;  %6594 = vmatpush3.bf16.msra.mxu1 %v7561_v63  ;;  %v7588_v62 = vld [vmem:[%s9765_s7 + $0x30] sm:$0xff]   ;;  %v7589_v63 = vld [vmem:[%s9765_s7 + $0x38] ss:$0 sps:$4 sm:$0xff]  }
 0x47e   :  { %v5004_v56 = vadd.f32 %v9560_v12, %v4988_v34  ;;  %v4449_v57 = vpop.f32.mrb[68].mxu0  ;;  %6571 = vmatprep.subr.bf16.mxu0 %v7600_v20  ;;  %6595 = vmatprep.subr.bf16.mxu1 %v7600_v20  ;;  %v5013_v0 = vmax.f32 %v5003_v36, 0.0  ;;  %v5644_v27 = vsel %vm5642_vm2, %v7589_v63, 0  ;;  %v7592_v36 = vld [vmem:[%s9766_s9 + $0x10] sm:$0xff]   ;;  %v7593_v34 = vld [vmem:[%s9766_s9 + $0x18] sm:$0xff]  }
 0x47f   :  { %v4451_v6 = vpop.f32.mrb[69].mxu0  ;;  %6585 = vmatprep.mubr.msk.bf16.mxu0 %vm7601_vm1, %v7600_v20 }
 0x480   :  { %v5014_v33 = vmax.f32 %v5004_v56, 0.0  ;;  %v4969_v7 = vmax.f32 %v4449_v57, %v4451_v6  ;;  %v4453_v28 = vpop.f32.mrb[70].mxu0 }
 0x481   :  { %6572 = vmatpush3.bf16.msra.mxu0 %v7562_v43  ;;  %6596 = vmatpush3.bf16.msra.mxu1 %v7563_v55  ;;  %v4455_v60 = vpop.f32.mrb[71].mxu0 }
 0x482   :  { %v5021_v44 = vpack.c.bf16 %v5014_v33, %v5013_v0  ;;  %v4989_v1 = vmax.f32 %v4969_v7, %v4979_v9  ;;  %v4970_v10 = vmax.f32 %v4453_v28, %v4455_v60  ;;  %6573 = vmatprep.subr.bf16.mxu0 %v7600_v20  ;;  %6597 = vmatprep.subr.bf16.mxu1 %v7600_v20 }
 0x484   :  { %v5005_v50 = vadd.f32 %v9560_v12, %v4989_v1  ;;  %v4990_v11 = vmax.f32 %v4970_v10, %v4980_v24 }
 0x485   :  { %6574 = vmatpush3.bf16.msra.mxu0 %v7564_v18  ;;  %6598 = vmatpush3.bf16.msra.mxu1 %v7565_v45 }
 0x486   :  { %v5006_v23 = vadd.f32 %v9560_v12, %v4990_v11  ;;  %v4459_v9 = vpop.f32.mrb[72].mxu0  ;;  %6575 = vmatprep.subr.bf16.mxu0 %v7600_v20  ;;  %6599 = vmatprep.subr.bf16.mxu1 %v7600_v20  ;;  %v5015_v53 = vmax.f32 %v5005_v50, 0.0 }
 0x487   :  { %v4461_v16 = vpop.f32.mrb[73].mxu0 }
 0x488   :  { %v5016_v40 = vmax.f32 %v5006_v23, 0.0  ;;  %v4971_v24 = vmax.f32 %v4459_v9, %v4461_v16  ;;  %v4463_v17 = vpop.f32.mrb[74].mxu0 }
 0x489   :  { %6576 = vmatpush3.bf16.msra.mxu0 %v7566_v47  ;;  %6600 = vmatpush3.bf16.msra.mxu1 %v7567_v8  ;;  %v4465_v31 = vpop.f32.mrb[75].mxu0 }
 0x48a   :  { %v5022_v15 = vpack.c.bf16 %v5016_v40, %v5015_v53  ;;  %v4991_v25 = vmax.f32 %v4971_v24, %v4981_v19  ;;  %v4972_v3 = vmax.f32 %v4463_v17, %v4465_v31  ;;  %6577 = vmatprep.subr.bf16.mxu0 %v7600_v20  ;;  %6601 = vmatprep.subr.bf16.mxu1 %v7600_v20  ;;  %v6449_v40 = vld [vmem:[%s9767_s6] ss:$0 sm:$0xff] }
 0x48c   :  { %v5007_v4 = vadd.f32 %v9560_v12, %v4991_v25  ;;  %v4992_v46 = vmax.f32 %v4972_v3, %v4982_v21  ;;  %v7573_v21 = vld [vmem:[%s9763_s5 + $0xb8] sm:$0xff]  }
 0x48d   :  { %6578 = vmatpush3.bf16.msra.mxu0 %v7568_v37  ;;  %6602 = vmatpush3.bf16.msra.mxu1 %v7569_v22 }
 0x48e   :  { %v5008_v35 = vadd.f32 %v9560_v12, %v4992_v46  ;;  %6579 = vmatprep.subr.bf16.mxu0 %v7600_v20  ;;  %6603 = vmatprep.subr.bf16.mxu1 %v7600_v20  ;;  %v5017_v19 = vmax.f32 %v5007_v4, 0.0  ;;  %v7574_v12 = vld [vmem:[%s9763_s5 + $0x100] sm:$0xff]  }
 0x490   :  { %v5018_v38 = vmax.f32 %v5008_v35, 0.0 }
 0x491   :  { %6580 = vmatpush3.bf16.msra.mxu0 %v7570_v58  ;;  %6604 = vmatpush3.bf16.msra.mxu1 %v7571_v29  ;;  %v7594_v58 = vld [vmem:[%s9766_s9 + $0x20] sm:$0xff]   ;;  %v7595_v29 = vld [vmem:[%s9766_s9 + $0x28] ss:$0 sps:$4 sm:$0x33]  }
 0x492   :  { %v5023_v51 = vpack.c.bf16 %v5018_v38, %v5017_v19  ;;  %6581 = vmatprep.subr.bf16.mxu0 %v7600_v20  ;;  %6629 = vmatprep.subr.bf16.mxu1 %v7600_v20  ;;  %v5747_v35 = vsel %vm5745_vm4, %v7595_v29, 0  ;;  %v6450_v19 = vld [vmem:[%s9768_s8] ss:$0 sm:$0xff] }
 0x494   :  { %6606 = vmatmul.mubr.bf16.vlgmr.msra.gmra.mrb[80].mxu1 %v5022_v15 }
 0x495   :  { %6582 = vmatpush3.bf16.msra.mxu0 %v7572_v39  ;;  %6645 = vmatprep.mubr.msk.bf16.mxu1 %vm7601_vm1, %v7600_v20 }
 0x496   :  { %6583 = vmatprep.subr.bf16.mxu0 %v7600_v20  ;;  %6630 = vmatpush3.bf16.msra.mxu1 %v7582_v52 }
 0x497   :  { %6631 = vmatprep.subr.bf16.mxu1 %v7600_v20 }
 0x499   :  { %6584 = vmatpush3.bf16.msra.mxu0 %v7573_v21 }
 0x49a   :  { %6609 = vmatprep.subr.bf16.mxu0 %v7600_v20  ;;  %6632 = vmatpush3.bf16.msra.mxu1 %v7583_v49 }
 0x49b   :  { %6633 = vmatprep.subr.bf16.mxu1 %v7600_v20 }
 0x49c   :  { %6586 = vmatmul.mubr.bf16.vlgmr.msra.gmra.mrb[80].mxu0 %v5021_v44 }
 0x49d   :  { %6610 = vmatpush3.bf16.msra.mxu0 %v7574_v12  ;;  %6625 = vmatprep.mubr.msk.bf16.mxu0 %vm7601_vm1, %v7600_v20 }
 0x49e   :  { %6611 = vmatprep.subr.bf16.mxu0 %v7600_v20  ;;  %6634 = vmatpush3.bf16.msra.mxu1 %v7584_v26 }
 0x49f   :  { %6635 = vmatprep.subr.bf16.mxu1 %v7600_v20 }
 0x4a1   :  { %6612 = vmatpush3.bf16.msra.mxu0 %v7575_v32 }
 0x4a2   :  { %6613 = vmatprep.subr.bf16.mxu0 %v7600_v20  ;;  %6636 = vmatpush3.bf16.msra.mxu1 %v7585_v54 }
 0x4a3   :  { %6637 = vmatprep.subr.bf16.mxu1 %v7600_v20 }
 0x4a5   :  { %6614 = vmatpush3.bf16.msra.mxu0 %v7576_v2 }
 0x4a6   :  { %6615 = vmatprep.subr.bf16.mxu0 %v7600_v20  ;;  %6638 = vmatpush3.bf16.msra.mxu1 %v7586_v59 }
 0x4a7   :  { %6639 = vmatprep.subr.bf16.mxu1 %v7600_v20 }
 0x4a9   :  { %6616 = vmatpush3.bf16.msra.mxu0 %v7577_v5 }
 0x4aa   :  { %6617 = vmatprep.subr.bf16.mxu0 %v7600_v20  ;;  %6640 = vmatpush3.bf16.msra.mxu1 %v7587_v61 }
 0x4ab   :  { %6641 = vmatprep.subr.bf16.mxu1 %v7600_v20 }
 0x4ad   :  { %6618 = vmatpush3.bf16.msra.mxu0 %v7578_v13  ;;  %v6460_v13 = vld [vmem:[%s9769_s10] ss:$0 sm:$0xff] }
 0x4ae   :  { %6619 = vmatprep.subr.bf16.mxu0 %v7600_v20  ;;  %6642 = vmatpush3.bf16.msra.mxu1 %v7588_v62 }
 0x4af   :  { %6643 = vmatprep.subr.bf16.mxu1 %v7600_v20 }
 0x4b1   :  { %6620 = vmatpush3.bf16.msra.mxu0 %v7579_v30 }
 0x4b2   :  { %6621 = vmatprep.subr.bf16.mxu0 %v7600_v20  ;;  %6644 = vmatpush3.bf16.msra.mxu1 %v5644_v27 }
 0x4b5   :  { %6622 = vmatpush3.bf16.msra.mxu0 %v7580_v48 }
 0x4b6   :  { %6623 = vmatprep.subr.bf16.mxu0 %v7600_v20 }
 0x4b9   :  { %6624 = vmatpush3.bf16.msra.mxu0 %v7581_v41 }
 0x4ba   :  { %6649 = vmatprep.subr.bf16.mxu0 %v7600_v20 }
 0x4bc   :  { %6626 = vmatmul.mubr.bf16.vlgmr.msra.gmra.mrb[84].mxu0 %v5023_v51 }
 0x4bd   :  { %6661 = vmatprep.mubr.msk.bf16.mxu0 %vm7601_vm1, %v7600_v20  ;;  %6650 = vmatpush3.bf16.msra.mxu0 %v7590_v14 }
 0x4be   :  { %6651 = vmatprep.subr.bf16.mxu0 %v7600_v20 }
 0x4c1   :  { %6652 = vmatpush3.bf16.msra.mxu0 %v7591_v42 }
 0x4c2   :  { %6653 = vmatprep.subr.bf16.mxu0 %v7600_v20 }
 0x4c5   :  { %6654 = vmatpush3.bf16.msra.mxu0 %v7592_v36 }
 0x4c6   :  { %6655 = vmatprep.subr.bf16.mxu0 %v7600_v20 }
 0x4c9   :  { %6656 = vmatpush3.bf16.msra.mxu0 %v7593_v34 }
 0x4ca   :  { %6657 = vmatprep.subr.bf16.mxu0 %v7600_v20 }
 0x4cd   :  { %6658 = vmatpush3.bf16.msra.mxu0 %v7594_v58 }
 0x4ce   :  { %6659 = vmatprep.subr.bf16.mxu0 %v7600_v20 }
 0x4d1   :  { %6660 = vmatpush3.bf16.msra.mxu0 %v5747_v35 }
 0x547   :  { %v5228_v43 = vpop.f32.mrb[76].mxu1 }
 0x548   :  { %v6567_v55 = vpop.f32.mrb[77].mxu1 }
 0x549   :  { %v5231_v56 = vpop.f32.mrb[78].mxu1 }
 0x54a   :  { %v6568_v57 = vpop.f32.mrb[79].mxu1 }
 0x54f   :  { %v5139_v6 = vpop.f32.mrb[76].mxu0 }
 0x550   :  { %v5229_v0 = vadd.f32 %v5228_v43, %v5139_v6  ;;  %v6547_v33 = vpop.f32.mrb[77].mxu0 }
 0x551   :  { %v5142_v7 = vpop.f32.mrb[78].mxu0 }
 0x552   :  { %v5232_v28 = vadd.f32 %v5231_v56, %v5142_v7  ;;  %v6548_v60 = vpop.f32.mrb[79].mxu0 }
 0x567   :  { %v5442_v18 = vpop.f32.mrb[80].mxu1 }
 0x568   :  { %v6607_v45 = vpop.f32.mrb[81].mxu1 }
 0x569   :  { %v5445_v44 = vpop.f32.mrb[82].mxu1 }
 0x56a   :  { %v6608_v1 = vpop.f32.mrb[83].mxu1 }
 0x56f   :  { %v5334_v10 = vpop.f32.mrb[80].mxu0 }
 0x570   :  { %v5341_v50 = vadd.f32 %v5334_v10, %v5229_v0  ;;  %v6587_v11 = vpop.f32.mrb[81].mxu0 }
 0x571   :  { %v5337_v47 = vpop.f32.mrb[82].mxu0 }
 0x572   :  { %v5342_v8 = vadd.f32 %v5337_v47, %v5232_v28  ;;  %v6588_v23 = vpop.f32.mrb[83].mxu0  ;;  %v5449_v9 = vadd.f32 %v5442_v18, %v5341_v50 }
 0x574   :  { %v5450_v16 = vadd.f32 %v5445_v44, %v5342_v8 }
 0x58f   :  { %v5550_v53 = vpop.f32.mrb[84].mxu0 }
 0x590   :  { %v5557_v24 = vadd.f32 %v5550_v53, %v5449_v9  ;;  %v6627_v17 = vpop.f32.mrb[85].mxu0 }
 0x591   :  { %v5553_v31 = vpop.f32.mrb[86].mxu0 }
 0x592   :  { %v5566_v37 = vadd.f32 %v6449_v40, %v5557_v24  ;;  %v5558_v22 = vadd.f32 %v5553_v31, %v5450_v16  ;;  %v6628_v15 = vpop.f32.mrb[87].mxu0 }
 0x594   :  { %v5567_v25 = vadd.f32 %v6449_v40, %v5558_v22  ;;  %v5568_v3 = vmax.f32 %v5566_v37, 0.0 }
 0x596   :  { %v5569_v4 = vmax.f32 %v5567_v25, 0.0 }
 0x598   :  { %v5570_v46 = vpack.c.bf16 %v5569_v4, %v5568_v3 }
 0x59a   :  { %6646 = vmatmul.mubr.msk.bf16.vlgmr.msra.gmra.mrb[84].mxu1 %vm5638_vm3, %v5570_v46 }
 0x66d   :  { %v5680_v38 = vpop.f32.mrb[84].mxu1 }
 0x66e   :  { %v5681_v39 = vadd.f32 %v6450_v19, %v5680_v38  ;;  %v6647_v51 = vpop.f32.mrb[85].mxu1 }
 0x66f   :  { %v5683_v21 = vpop.f32.mrb[86].mxu1 }
 0x670   :  { %v5684_v12 = vadd.f32 %v6450_v19, %v5683_v21  ;;  %v6648_v32 = vpop.f32.mrb[87].mxu1  ;;  %v5687_v2 = vmax.f32 %v5681_v39, 0.0 }
 0x672   :  { %v5688_v5 = vmax.f32 %v5684_v12, 0.0 }
 0x674   :  { %v5689_v20 = vpack.c.bf16 %v5688_v5, %v5687_v2 }
 0x676   :  { %6662 = vmatmul.mubr.msk.bf16.vlgmr.msra.gmra.mrb[88].mxu0 %vm5741_vm5, %v5689_v20 }
 0x749   :  { %v5783_v30 = vpop.f32.mrb[88].mxu0 }
 0x74a   :  { %v5784_v48 = vadd.f32 %v6460_v13, %v5783_v30  ;;  %v6663_v41 = vpop.f32.mrb[89].mxu0 }
 0x74b   :  { %v5786_v52 = vpop.f32.mrb[90].mxu0 }
 0x74c   :  { %5791 = vst.msk [vmem:[%s9770_s11] sm:$0xff] %vm5790_vm6, %v5784_v48  ;;  %v5787_v49 = vadd.f32 %v6460_v13, %v5786_v52  ;;  %v6664_v26 = vpop.f32.mrb[91].mxu0 }
 0x74e   :  { %5792 = vst.msk [vmem:[%s9770_s11 + $0x8] sm:$0xff] %vm5790_vm6, %v5787_v49 }

</bundles_post_ra>
